<compile_context>
chip_gen: v7x
topology: tpu7x:2x2x1
jax: 0.10.0
libtpu: 0.0.40
codegen_flags: <defaults>
</compile_context>

<pallas_src>
import numpy as np
import jax
import jax.numpy as jnp
from jax.experimental import pallas as pl
from jax.experimental.pallas import tpu as pltpu


# ==========================================================================
# Parameter initialization (natural per-module layout, gate order i,f,o,g)
# ==========================================================================
def init_params(key, cfg):
    d_l, d_a, d_v = cfg['input_dims']
    dh_l, dh_a, dh_v = cfg['h_dims']
    fd, hd = cfg['final_dims'], cfg['h_dim']
    d_agg = 2 * dh_a + 2 * dh_v + dh_l

    keys = iter(jax.random.split(key, 32))
    w = lambda *s: jax.random.normal(next(keys), s, jnp.float32) * 0.1

    return {
        'word':    dict(wih=w(d_l, 4, dh_l), whh=w(dh_l, 4, dh_l), b=w(4, dh_l)),
        'covarep': dict(wih=w(d_a, 4, dh_a), whh=w(dh_a, 4, dh_a), b=w(4, dh_a)),
        'facet':   dict(wih=w(d_v, 4, dh_v), whh=w(dh_v, 4, dh_v), b=w(4, dh_v)),
        'agg':     dict(wih=w(d_agg, 4, hd), whh=w(hd, 4, hd), b=w(4, hd)),
        'coatt_la': dict(W=w(dh_a, dh_l), P=w(dh_l, dh_a)),
        'coatt_lv': dict(W=w(dh_v, dh_l), P=w(dh_l, dh_v)),
        'head': dict(
            wl_w=w(dh_l, dh_l), wl_b=w(1, dh_l),
            wf_w=w(1, dh_l),    wf_b=w(1, 1),
            att_w=w(1, dh_l),   att_b=w(1, 1),
            out_w=w(2 * hd, fd), out_b=w(1, fd),
            fin_w=w(1, fd),     fin_b=w(1, 1),
        ),
    }


# ==========================================================================
# Offline weight fusion + packing into a single lane-dense (rows, 128) buffer
# ==========================================================================
def pack_params(params, cfg):
    d_l, d_a, d_v = cfg['input_dims']
    dh_l, dh_a, dh_v = cfg['h_dims']
    fd, hd = cfg['final_dims'], cfg['h_dim']
    H = dh_l + dh_a + dh_v                      # fused modality hidden width
    D = d_l + d_a + d_v

    f = lambda a: np.asarray(a, np.float32)

    # ---- fused block-diagonal modality LSTM (gate-major layout i|f|o|g) ----
    wih = np.zeros((D, 4 * H), np.float32)
    whh = np.zeros((H, 4 * H), np.float32)
    b = np.zeros((1, 4 * H), np.float32)
    in_off = {'word': (0, d_l), 'covarep': (d_l, d_a), 'facet': (d_l + d_a, d_v)}
    hid_off = {'word': (0, dh_l), 'covarep': (dh_l, dh_a), 'facet': (dh_l + dh_a, dh_v)}
    for m in ('word', 'covarep', 'facet'):
        io, isz = in_off[m]
        ho, hsz = hid_off[m]
        wih_m, whh_m, b_m = f(params[m]['wih']), f(params[m]['whh']), f(params[m]['b'])
        for g in range(4):
            col = g * H + ho
            wih[io:io + isz, col:col + hsz] = wih_m[:, g, :]
            whh[ho:ho + hsz, col:col + hsz] = whh_m[:, g, :]
            b[0, col:col + hsz] = b_m[g, :]

    # ---- aggregate LSTM: decompose Wih_agg by input row-blocks --------------
    # coatt_LAV column order = [cov | att_la | facet | att_lv | word]
    agg_wih = f(params['agg']['wih']).reshape(-1, 4 * hd)
    cov_rows = agg_wih[0:dh_a]
    attla_rows = agg_wih[dh_a:2 * dh_a]
    facet_rows = agg_wih[2 * dh_a:2 * dh_a + dh_v]
    attlv_rows = agg_wih[2 * dh_a + dh_v:2 * dh_a + 2 * dh_v]
    word_rows = agg_wih[2 * dh_a + 2 * dh_v:]
    w_hid2agg = np.zeros((H, 4 * hd), np.float32)   # acts on fused hidden [word|cov|facet]
    w_hid2agg[0:dh_l] = word_rows
    w_hid2agg[dh_l:dh_l + dh_a] = cov_rows
    w_hid2agg[dh_l + dh_a:H] = facet_rows
    whh_agg = f(params['agg']['whh']).reshape(hd, 4 * hd)
    b_agg = f(params['agg']['b']).reshape(1, 4 * hd)

    # ---- co-attention weights, zero-row padded to act on the fused hidden ---
    la_W = np.zeros((H, H), np.float32)
    la_W[dh_l:dh_l + dh_a, 0:dh_l] = f(params['coatt_la']['W'])
    la_P = np.zeros((H, dh_a), np.float32)
    la_P[0:dh_l] = f(params['coatt_la']['P'])
    lv_W = np.zeros((H, H), np.float32)
    lv_W[dh_l + dh_a:H, 0:dh_l] = f(params['coatt_lv']['W'])
    lv_P = np.zeros((H, dh_v), np.float32)
    lv_P[0:dh_l] = f(params['coatt_lv']['P'])

    # ---- head ----------------------------------------------------------------
    hp = params['head']
    wl_w = np.zeros((H, dh_l), np.float32)
    wl_w[0:dh_l] = f(hp['wl_w'])
    misc = np.zeros((1, 8), np.float32)
    misc[0, 0] = f(hp['wf_b'])[0, 0]
    misc[0, 1] = f(hp['att_b'])[0, 0]
    misc[0, 2] = f(hp['fin_b'])[0, 0]

    entries = [
        ('wih_fused', wih), ('whh_fused', whh), ('b_fused', b),
        ('la_W', la_W), ('la_P', la_P), ('lv_W', lv_W), ('lv_P', lv_P),
        ('w_hid2agg', w_hid2agg), ('w_attla2agg', attla_rows),
        ('w_attlv2agg', attlv_rows), ('whh_agg', whh_agg), ('b_agg', b_agg),
        ('wl_w', wl_w), ('wl_b', f(hp['wl_b'])), ('wf_w', f(hp['wf_w'])),
        ('att_w', f(hp['att_w'])), ('out_w', f(hp['out_w'])),
        ('out_b', f(hp['out_b'])), ('fin_w', f(hp['fin_w'])), ('misc_b', misc),
    ]

    width = 128 * max(1, max(-(-a.shape[1] // 128) for _, a in entries))
    offsets, chunks, row = {}, [], 0
    for name, a in entries:
        r, c = a.shape
        rp = -(-r // 8) * 8                         # pad rows to a sublane tile
        buf = np.zeros((rp, width), np.float32)
        buf[:r, :c] = a
        offsets[name] = (row, r, c)
        chunks.append(buf)
        row += rp
    return jnp.asarray(np.concatenate(chunks, axis=0)), offsets


# ==========================================================================
# Fused forward kernel + wrapper
# ==========================================================================
def make_forward(cfg, offsets):
    dh_l, dh_a, dh_v = cfg['h_dims']
    hd = cfg['h_dim']
    H = dh_l + dh_a + dh_v
    f32 = jnp.float32

    def kernel(x_ref, w_ref, out_ref, hs_ref):
        B, T, D = x_ref.shape

        def W(name):                      # zero-cost static carve-out of a weight
            off, r, c = offsets[name]
            return w_ref[off:off + r, 0:c]

        # ---------------- fused block-diagonal modality LSTM ------------------
        wih, whh, bias = W('wih_fused'), W('whh_fused'), W('b_fused')
        x2 = x_ref[...].reshape(B * T, D)
        xg = (jnp.dot(x2, wih, preferred_element_type=f32) + bias).reshape(B, T, 4 * H)
        h = jnp.zeros((B, H), f32)
        c = jnp.zeros((B, H), f32)
        for t in range(T):                 # T static -> fully unrolled
            gates = xg[:, t, :] + jnp.dot(h, whh, preferred_element_type=f32)
            sg = jax.nn.sigmoid(gates[:, :3 * H])     # one sigmoid: i|f|o gates
            gg = jnp.tanh(gates[:, 3 * H:])           # one tanh:    g gate
            c = sg[:, H:2 * H] * c + sg[:, :H] * gg
            h = sg[:, 2 * H:3 * H] * jnp.tanh(c)
            hs_ref[:, t:t + 1, :] = h[:, None, :]
        hs = hs_ref[...]                   # (B, T, H): lanes = [word | cov | facet]
        hs2 = hs.reshape(B * T, H)

        # -------- co-attention (cov -> word, facet -> word) --------------------
        # TODO(synk): `Coattention` class was not in the spec; standard
        # affinity-softmax co-attention: scores = (x W) y^T / sqrt(d_word).
        scale = 1.0 / float(dh_l) ** 0.5

        def coatt(Wp, Pp, dh):
            xproj = jnp.dot(hs2, Wp, preferred_element_type=f32).reshape(B, T, H)
            yproj = jnp.dot(hs2, Pp, preferred_element_type=f32).reshape(B, T, dh)
            s = jnp.einsum('btk,buk->btu', xproj, hs,
                           preferred_element_type=f32) * scale
            a = jax.nn.softmax(s, axis=-1)
            return jnp.einsum('btu,buk->btk', a, yproj, preferred_element_type=f32)

        att_la = coatt(W('la_W'), W('la_P'), dh_a)     # (B, T, dh_a)
        att_lv = coatt(W('lv_W'), W('lv_P'), dh_v)     # (B, T, dh_v)

        # ---- aggregate-LSTM input projection (== cat([...]) @ Wih_agg) --------
        xg_agg = (jnp.dot(hs2, W('w_hid2agg'), preferred_element_type=f32)
                  + jnp.dot(att_la.reshape(B * T, dh_a), W('w_attla2agg'),
                            preferred_element_type=f32)
                  + jnp.dot(att_lv.reshape(B * T, dh_v), W('w_attlv2agg'),
                            preferred_element_type=f32)
                  + W('b_agg')).reshape(B, T, 4 * hd)

        # ---------------- word branch of head (needed before the agg loop) -----
        wlin = (jnp.dot(hs2, W('wl_w'), preferred_element_type=f32)
                + W('wl_b')).reshape(B, T, dh_l)
        sq = jnp.sum(wlin * wlin, axis=-1, keepdims=True)
        wlin = (jnp.sqrt(sq) / (1.0 + sq)) * wlin                       # squash

        misc = W('misc_b')                  # (1,8): [wf_b, att_b, fin_b, ...]
        wfinal = jnp.sum(wlin * W('wf_w'), axis=-1) + misc[:, 0:1]      # (B, T)
        # TODO(synk): `Attention` class was not in the spec; soft attention with
        # score = Linear(dh_l->1)(word_LSTM_linear), softmax over time, applied
        # to the aggregate-LSTM outputs.
        s_att = jnp.sum(wlin * W('att_w'), axis=-1) + misc[:, 1:2]      # (B, T)
        aw = jax.nn.softmax(s_att, axis=-1)                             # (B, T)

        # ---------------- aggregate LSTM (mean & att-sum on the fly) -----------
        whh_a = W('whh_agg')
        hA = jnp.zeros((B, hd), f32)
        cA = jnp.zeros((B, hd), f32)
        h_sum = jnp.zeros((B, hd), f32)
        h_att = jnp.zeros((B, hd), f32)
        for t in range(T):
            gates = xg_agg[:, t, :] + jnp.dot(hA, whh_a, preferred_element_type=f32)
            sg = jax.nn.sigmoid(gates[:, :3 * hd])
            gg = jnp.tanh(gates[:, 3 * hd:])
            cA = sg[:, hd:2 * hd] * cA + sg[:, :hd] * gg
            hA = sg[:, 2 * hd:3 * hd] * jnp.tanh(cA)
            h_sum = h_sum + hA
            h_att = h_att + aw[:, t:t + 1] * hA
        fusion = h_sum * (1.0 / T)                                      # mean over time

        # ---------------- output head (dropouts are identity) ------------------
        ow = W('out_w')                                                 # (2*hd, fd)
        pre = (jnp.dot(fusion, ow[:hd], preferred_element_type=f32)
               + jnp.dot(h_att, ow[hd:], preferred_element_type=f32)
               + W('out_b'))
        relu = jnp.maximum(pre, 0.0)                                    # (B, fd)
        final = jnp.sum(relu * W('fin_w'), axis=-1, keepdims=True) + misc[:, 2:3]

        # single lane-dense packed output: lane 0 = final, lanes 1..T = wfinal
        out_ref[...] = jnp.zeros_like(out_ref)
        out_ref[:, 0:1] = final
        out_ref[:, 1:1 + T] = wfinal

    @jax.jit
    def forward(wbuf, x):
        """x: (T, B, d_l+d_a+d_v) -> (final (B,), word_LSTM_final (B, T))."""
        T, B, _ = x.shape
        xb = jnp.transpose(x, (1, 0, 2))            # one tiny layout op in XLA
        out = pl.pallas_call(
            kernel,
            out_shape=jax.ShapeDtypeStruct((B, 128), jnp.float32),
            in_specs=[pl.BlockSpec(memory_space=pltpu.MemorySpace.VMEM),
                      pl.BlockSpec(memory_space=pltpu.MemorySpace.VMEM)],
            out_specs=pl.BlockSpec(memory_space=pltpu.MemorySpace.VMEM),
            scratch_shapes=[pltpu.VMEM((B, T, H), jnp.float32)],
        )(xb, wbuf)
        return out[:, 0], out[:, 1:1 + T]

    return forward


if __name__ == "__main__":
    cfg = dict(input_dims=[12, 10, 6], h_dims=[16, 8, 8],
               final_dims=8, h_dim=16, dropout1=0.0, dropout2=0.0)
    T, B = 8, 2
    d_total = sum(cfg['input_dims'])

    key = jax.random.PRNGKey(0)
    kx, kp = jax.random.split(key)
    x = jax.random.normal(kx, (T, B, d_total), jnp.float32)
    params = init_params(kp, cfg)

    wbuf, offsets = pack_params(params, cfg)
    forward = make_forward(cfg, offsets)

    final, wordfinal = forward(wbuf, x)
    final, wordfinal = jax.block_until_ready((final, wordfinal))

    assert final.shape == (B,), final.shape
    assert wordfinal.shape == (B, T), wordfinal.shape
    assert bool(jnp.all(jnp.isfinite(final))) and bool(jnp.all(jnp.isfinite(wordfinal)))
    print("KERNEL_OK")
</pallas_src>

<mosaic_0001>
module attributes {stable_mosaic.version = 11 : i64} {
  func.func @kernel(%arg0: memref<2x8x28xf32, #tpu.memory_space<vmem>>, %arg1: memref<384x128xf32, #tpu.memory_space<vmem>>, %arg2: memref<2x128xf32, #tpu.memory_space<vmem>>, %arg3: memref<2x8x32xf32, #tpu.memory_space<vmem>>) attributes {dimension_semantics = [], scalar_prefetch = 0 : i64, scratch_operands = 1 : i64, tpu.core_type = #tpu.core_type<tc>} {
    %c0 = arith.constant 0 : index
    %c0_0 = arith.constant 0 : index
    %0 = vector.load %arg1[%c0, %c0_0] : memref<384x128xf32, #tpu.memory_space<vmem>>, vector<28x128xf32>
    %c32 = arith.constant 32 : index
    %c0_1 = arith.constant 0 : index
    %1 = vector.load %arg1[%c32, %c0_1] : memref<384x128xf32, #tpu.memory_space<vmem>>, vector<32x128xf32>
    %c64 = arith.constant 64 : index
    %c0_2 = arith.constant 0 : index
    %2 = vector.load %arg1[%c64, %c0_2] : memref<384x128xf32, #tpu.memory_space<vmem>>, vector<1x128xf32>
    %c0_3 = arith.constant 0 : index
    %c0_4 = arith.constant 0 : index
    %c0_5 = arith.constant 0 : index
    %3 = vector.load %arg0[%c0_3, %c0_4, %c0_5] : memref<2x8x28xf32, #tpu.memory_space<vmem>>, vector<2x8x28xf32>
    %4 = vector.shape_cast %3 : vector<2x8x28xf32> to vector<16x28xf32>
    %cst = arith.constant dense<0.000000e+00> : vector<16x128xf32>
    %5 = tpu.matmul %4, %0, %cst {dimension_numbers = #tpu.dot_dimension_numbers<[1], [0], [0], [1], [0, 0, 1, 1], [], []>} : vector<16x28xf32>, vector<28x128xf32>, vector<16x128xf32> -> vector<16x128xf32>
    %6 = vector.broadcast %2 : vector<1x128xf32> to vector<16x128xf32>
    %7 = arith.addf %5, %6 : vector<16x128xf32>
    %8 = vector.shape_cast %7 : vector<16x128xf32> to vector<2x8x128xf32>
    %cst_6 = arith.constant 0.000000e+00 : f32
    %9 = vector.broadcast %cst_6 : f32 to vector<2x32xf32>
    %cst_7 = arith.constant 0.000000e+00 : f32
    %10 = vector.broadcast %cst_7 : f32 to vector<2x32xf32>
    %11 = vector.extract_strided_slice %8 {offsets = [0, 0, 0], sizes = [2, 1, 128], strides = [1, 1, 1]} : vector<2x8x128xf32> to vector<2x1x128xf32>
    %12 = vector.shape_cast %11 : vector<2x1x128xf32> to vector<2x128xf32>
    %cst_8 = arith.constant dense<0.000000e+00> : vector<2x128xf32>
    %13 = tpu.matmul %9, %1, %cst_8 {dimension_numbers = #tpu.dot_dimension_numbers<[1], [0], [0], [1], [0, 0, 1, 1], [], []>} : vector<2x32xf32>, vector<32x128xf32>, vector<2x128xf32> -> vector<2x128xf32>
    %14 = arith.addf %12, %13 : vector<2x128xf32>
    %15 = vector.extract_strided_slice %14 {offsets = [0, 0], sizes = [2, 96], strides = [1, 1]} : vector<2x128xf32> to vector<2x96xf32>
    %16 = arith.negf %15 : vector<2x96xf32>
    %17 = math.exp %16 : vector<2x96xf32>
    %cst_9 = arith.constant 1.000000e+00 : f32
    %18 = vector.broadcast %cst_9 : f32 to vector<2x96xf32>
    %19 = arith.addf %18, %17 : vector<2x96xf32>
    %20 = arith.divf %18, %19 : vector<2x96xf32>
    %21 = vector.extract_strided_slice %14 {offsets = [0, 96], sizes = [2, 32], strides = [1, 1]} : vector<2x128xf32> to vector<2x32xf32>
    %22 = math.tanh %21 : vector<2x32xf32>
    %23 = vector.extract_strided_slice %20 {offsets = [0, 32], sizes = [2, 32], strides = [1, 1]} : vector<2x96xf32> to vector<2x32xf32>
    %24 = arith.mulf %23, %10 : vector<2x32xf32>
    %25 = vector.extract_strided_slice %20 {offsets = [0, 0], sizes = [2, 32], strides = [1, 1]} : vector<2x96xf32> to vector<2x32xf32>
    %26 = arith.mulf %25, %22 : vector<2x32xf32>
    %27 = arith.addf %24, %26 : vector<2x32xf32>
    %28 = vector.extract_strided_slice %20 {offsets = [0, 64], sizes = [2, 32], strides = [1, 1]} : vector<2x96xf32> to vector<2x32xf32>
    %29 = math.tanh %27 : vector<2x32xf32>
    %30 = arith.mulf %28, %29 : vector<2x32xf32>
    %31 = vector.shape_cast %30 : vector<2x32xf32> to vector<2x1x32xf32>
    %c0_10 = arith.constant 0 : index
    %c0_11 = arith.constant 0 : index
    %c0_12 = arith.constant 0 : index
    %32 = vector.load %arg3[%c0_10, %c0_11, %c0_12] : memref<2x8x32xf32, #tpu.memory_space<vmem>>, vector<2x1x32xf32>
    tpu.vector_store %arg3[%c0_10, %c0_11, %c0_12], %31 {strides = array<i32>} : memref<2x8x32xf32, #tpu.memory_space<vmem>>, vector<2x1x32xf32>,
    %33 = vector.extract_strided_slice %8 {offsets = [0, 1, 0], sizes = [2, 1, 128], strides = [1, 1, 1]} : vector<2x8x128xf32> to vector<2x1x128xf32>
    %34 = vector.shape_cast %33 : vector<2x1x128xf32> to vector<2x128xf32>
    %cst_13 = arith.constant dense<0.000000e+00> : vector<2x128xf32>
    %35 = tpu.matmul %30, %1, %cst_13 {dimension_numbers = #tpu.dot_dimension_numbers<[1], [0], [0], [1], [0, 0, 1, 1], [], []>} : vector<2x32xf32>, vector<32x128xf32>, vector<2x128xf32> -> vector<2x128xf32>
    %36 = arith.addf %34, %35 : vector<2x128xf32>
    %37 = vector.extract_strided_slice %36 {offsets = [0, 0], sizes = [2, 96], strides = [1, 1]} : vector<2x128xf32> to vector<2x96xf32>
    %38 = arith.negf %37 : vector<2x96xf32>
    %39 = math.exp %38 : vector<2x96xf32>
    %cst_14 = arith.constant 1.000000e+00 : f32
    %40 = vector.broadcast %cst_14 : f32 to vector<2x96xf32>
    %41 = arith.addf %40, %39 : vector<2x96xf32>
    %42 = arith.divf %40, %41 : vector<2x96xf32>
    %43 = vector.extract_strided_slice %36 {offsets = [0, 96], sizes = [2, 32], strides = [1, 1]} : vector<2x128xf32> to vector<2x32xf32>
    %44 = math.tanh %43 : vector<2x32xf32>
    %45 = vector.extract_strided_slice %42 {offsets = [0, 32], sizes = [2, 32], strides = [1, 1]} : vector<2x96xf32> to vector<2x32xf32>
    %46 = arith.mulf %45, %27 : vector<2x32xf32>
    %47 = vector.extract_strided_slice %42 {offsets = [0, 0], sizes = [2, 32], strides = [1, 1]} : vector<2x96xf32> to vector<2x32xf32>
    %48 = arith.mulf %47, %44 : vector<2x32xf32>
    %49 = arith.addf %46, %48 : vector<2x32xf32>
    %50 = vector.extract_strided_slice %42 {offsets = [0, 64], sizes = [2, 32], strides = [1, 1]} : vector<2x96xf32> to vector<2x32xf32>
    %51 = math.tanh %49 : vector<2x32xf32>
    %52 = arith.mulf %50, %51 : vector<2x32xf32>
    %53 = vector.shape_cast %52 : vector<2x32xf32> to vector<2x1x32xf32>
    %c0_15 = arith.constant 0 : index
    %c1 = arith.constant 1 : index
    %c0_16 = arith.constant 0 : index
    %54 = vector.load %arg3[%c0_15, %c1, %c0_16] : memref<2x8x32xf32, #tpu.memory_space<vmem>>, vector<2x1x32xf32>
    tpu.vector_store %arg3[%c0_15, %c1, %c0_16], %53 {strides = array<i32>} : memref<2x8x32xf32, #tpu.memory_space<vmem>>, vector<2x1x32xf32>,
    %55 = vector.extract_strided_slice %8 {offsets = [0, 2, 0], sizes = [2, 1, 128], strides = [1, 1, 1]} : vector<2x8x128xf32> to vector<2x1x128xf32>
    %56 = vector.shape_cast %55 : vector<2x1x128xf32> to vector<2x128xf32>
    %cst_17 = arith.constant dense<0.000000e+00> : vector<2x128xf32>
    %57 = tpu.matmul %52, %1, %cst_17 {dimension_numbers = #tpu.dot_dimension_numbers<[1], [0], [0], [1], [0, 0, 1, 1], [], []>} : vector<2x32xf32>, vector<32x128xf32>, vector<2x128xf32> -> vector<2x128xf32>
    %58 = arith.addf %56, %57 : vector<2x128xf32>
    %59 = vector.extract_strided_slice %58 {offsets = [0, 0], sizes = [2, 96], strides = [1, 1]} : vector<2x128xf32> to vector<2x96xf32>
    %60 = arith.negf %59 : vector<2x96xf32>
    %61 = math.exp %60 : vector<2x96xf32>
    %cst_18 = arith.constant 1.000000e+00 : f32
    %62 = vector.broadcast %cst_18 : f32 to vector<2x96xf32>
    %63 = arith.addf %62, %61 : vector<2x96xf32>
    %64 = arith.divf %62, %63 : vector<2x96xf32>
    %65 = vector.extract_strided_slice %58 {offsets = [0, 96], sizes = [2, 32], strides = [1, 1]} : vector<2x128xf32> to vector<2x32xf32>
    %66 = math.tanh %65 : vector<2x32xf32>
    %67 = vector.extract_strided_slice %64 {offsets = [0, 32], sizes = [2, 32], strides = [1, 1]} : vector<2x96xf32> to vector<2x32xf32>
    %68 = arith.mulf %67, %49 : vector<2x32xf32>
    %69 = vector.extract_strided_slice %64 {offsets = [0, 0], sizes = [2, 32], strides = [1, 1]} : vector<2x96xf32> to vector<2x32xf32>
    %70 = arith.mulf %69, %66 : vector<2x32xf32>
    %71 = arith.addf %68, %70 : vector<2x32xf32>
    %72 = vector.extract_strided_slice %64 {offsets = [0, 64], sizes = [2, 32], strides = [1, 1]} : vector<2x96xf32> to vector<2x32xf32>
    %73 = math.tanh %71 : vector<2x32xf32>
    %74 = arith.mulf %72, %73 : vector<2x32xf32>
    %75 = vector.shape_cast %74 : vector<2x32xf32> to vector<2x1x32xf32>
    %c0_19 = arith.constant 0 : index
    %c2 = arith.constant 2 : index
    %c0_20 = arith.constant 0 : index
    %76 = vector.load %arg3[%c0_19, %c2, %c0_20] : memref<2x8x32xf32, #tpu.memory_space<vmem>>, vector<2x1x32xf32>
    tpu.vector_store %arg3[%c0_19, %c2, %c0_20], %75 {strides = array<i32>} : memref<2x8x32xf32, #tpu.memory_space<vmem>>, vector<2x1x32xf32>,
    %77 = vector.extract_strided_slice %8 {offsets = [0, 3, 0], sizes = [2, 1, 128], strides = [1, 1, 1]} : vector<2x8x128xf32> to vector<2x1x128xf32>
    %78 = vector.shape_cast %77 : vector<2x1x128xf32> to vector<2x128xf32>
    %cst_21 = arith.constant dense<0.000000e+00> : vector<2x128xf32>
    %79 = tpu.matmul %74, %1, %cst_21 {dimension_numbers = #tpu.dot_dimension_numbers<[1], [0], [0], [1], [0, 0, 1, 1], [], []>} : vector<2x32xf32>, vector<32x128xf32>, vector<2x128xf32> -> vector<2x128xf32>
    %80 = arith.addf %78, %79 : vector<2x128xf32>
    %81 = vector.extract_strided_slice %80 {offsets = [0, 0], sizes = [2, 96], strides = [1, 1]} : vector<2x128xf32> to vector<2x96xf32>
    %82 = arith.negf %81 : vector<2x96xf32>
    %83 = math.exp %82 : vector<2x96xf32>
    %cst_22 = arith.constant 1.000000e+00 : f32
    %84 = vector.broadcast %cst_22 : f32 to vector<2x96xf32>
    %85 = arith.addf %84, %83 : vector<2x96xf32>
    %86 = arith.divf %84, %85 : vector<2x96xf32>
    %87 = vector.extract_strided_slice %80 {offsets = [0, 96], sizes = [2, 32], strides = [1, 1]} : vector<2x128xf32> to vector<2x32xf32>
    %88 = math.tanh %87 : vector<2x32xf32>
    %89 = vector.extract_strided_slice %86 {offsets = [0, 32], sizes = [2, 32], strides = [1, 1]} : vector<2x96xf32> to vector<2x32xf32>
    %90 = arith.mulf %89, %71 : vector<2x32xf32>
    %91 = vector.extract_strided_slice %86 {offsets = [0, 0], sizes = [2, 32], strides = [1, 1]} : vector<2x96xf32> to vector<2x32xf32>
    %92 = arith.mulf %91, %88 : vector<2x32xf32>
    %93 = arith.addf %90, %92 : vector<2x32xf32>
    %94 = vector.extract_strided_slice %86 {offsets = [0, 64], sizes = [2, 32], strides = [1, 1]} : vector<2x96xf32> to vector<2x32xf32>
    %95 = math.tanh %93 : vector<2x32xf32>
    %96 = arith.mulf %94, %95 : vector<2x32xf32>
    %97 = vector.shape_cast %96 : vector<2x32xf32> to vector<2x1x32xf32>
    %c0_23 = arith.constant 0 : index
    %c3 = arith.constant 3 : index
    %c0_24 = arith.constant 0 : index
    %98 = vector.load %arg3[%c0_23, %c3, %c0_24] : memref<2x8x32xf32, #tpu.memory_space<vmem>>, vector<2x1x32xf32>
    tpu.vector_store %arg3[%c0_23, %c3, %c0_24], %97 {strides = array<i32>} : memref<2x8x32xf32, #tpu.memory_space<vmem>>, vector<2x1x32xf32>,
    %99 = vector.extract_strided_slice %8 {offsets = [0, 4, 0], sizes = [2, 1, 128], strides = [1, 1, 1]} : vector<2x8x128xf32> to vector<2x1x128xf32>
    %100 = vector.shape_cast %99 : vector<2x1x128xf32> to vector<2x128xf32>
    %cst_25 = arith.constant dense<0.000000e+00> : vector<2x128xf32>
    %101 = tpu.matmul %96, %1, %cst_25 {dimension_numbers = #tpu.dot_dimension_numbers<[1], [0], [0], [1], [0, 0, 1, 1], [], []>} : vector<2x32xf32>, vector<32x128xf32>, vector<2x128xf32> -> vector<2x128xf32>
    %102 = arith.addf %100, %101 : vector<2x128xf32>
    %103 = vector.extract_strided_slice %102 {offsets = [0, 0], sizes = [2, 96], strides = [1, 1]} : vector<2x128xf32> to vector<2x96xf32>
    %104 = arith.negf %103 : vector<2x96xf32>
    %105 = math.exp %104 : vector<2x96xf32>
    %cst_26 = arith.constant 1.000000e+00 : f32
    %106 = vector.broadcast %cst_26 : f32 to vector<2x96xf32>
    %107 = arith.addf %106, %105 : vector<2x96xf32>
    %108 = arith.divf %106, %107 : vector<2x96xf32>
    %109 = vector.extract_strided_slice %102 {offsets = [0, 96], sizes = [2, 32], strides = [1, 1]} : vector<2x128xf32> to vector<2x32xf32>
    %110 = math.tanh %109 : vector<2x32xf32>
    %111 = vector.extract_strided_slice %108 {offsets = [0, 32], sizes = [2, 32], strides = [1, 1]} : vector<2x96xf32> to vector<2x32xf32>
    %112 = arith.mulf %111, %93 : vector<2x32xf32>
    %113 = vector.extract_strided_slice %108 {offsets = [0, 0], sizes = [2, 32], strides = [1, 1]} : vector<2x96xf32> to vector<2x32xf32>
    %114 = arith.mulf %113, %110 : vector<2x32xf32>
    %115 = arith.addf %112, %114 : vector<2x32xf32>
    %116 = vector.extract_strided_slice %108 {offsets = [0, 64], sizes = [2, 32], strides = [1, 1]} : vector<2x96xf32> to vector<2x32xf32>
    %117 = math.tanh %115 : vector<2x32xf32>
    %118 = arith.mulf %116, %117 : vector<2x32xf32>
    %119 = vector.shape_cast %118 : vector<2x32xf32> to vector<2x1x32xf32>
    %c0_27 = arith.constant 0 : index
    %c4 = arith.constant 4 : index
    %c0_28 = arith.constant 0 : index
    %120 = vector.load %arg3[%c0_27, %c4, %c0_28] : memref<2x8x32xf32, #tpu.memory_space<vmem>>, vector<2x1x32xf32>
    tpu.vector_store %arg3[%c0_27, %c4, %c0_28], %119 {strides = array<i32>} : memref<2x8x32xf32, #tpu.memory_space<vmem>>, vector<2x1x32xf32>,
    %121 = vector.extract_strided_slice %8 {offsets = [0, 5, 0], sizes = [2, 1, 128], strides = [1, 1, 1]} : vector<2x8x128xf32> to vector<2x1x128xf32>
    %122 = vector.shape_cast %121 : vector<2x1x128xf32> to vector<2x128xf32>
    %cst_29 = arith.constant dense<0.000000e+00> : vector<2x128xf32>
    %123 = tpu.matmul %118, %1, %cst_29 {dimension_numbers = #tpu.dot_dimension_numbers<[1], [0], [0], [1], [0, 0, 1, 1], [], []>} : vector<2x32xf32>, vector<32x128xf32>, vector<2x128xf32> -> vector<2x128xf32>
    %124 = arith.addf %122, %123 : vector<2x128xf32>
    %125 = vector.extract_strided_slice %124 {offsets = [0, 0], sizes = [2, 96], strides = [1, 1]} : vector<2x128xf32> to vector<2x96xf32>
    %126 = arith.negf %125 : vector<2x96xf32>
    %127 = math.exp %126 : vector<2x96xf32>
    %cst_30 = arith.constant 1.000000e+00 : f32
    %128 = vector.broadcast %cst_30 : f32 to vector<2x96xf32>
    %129 = arith.addf %128, %127 : vector<2x96xf32>
    %130 = arith.divf %128, %129 : vector<2x96xf32>
    %131 = vector.extract_strided_slice %124 {offsets = [0, 96], sizes = [2, 32], strides = [1, 1]} : vector<2x128xf32> to vector<2x32xf32>
    %132 = math.tanh %131 : vector<2x32xf32>
    %133 = vector.extract_strided_slice %130 {offsets = [0, 32], sizes = [2, 32], strides = [1, 1]} : vector<2x96xf32> to vector<2x32xf32>
    %134 = arith.mulf %133, %115 : vector<2x32xf32>
    %135 = vector.extract_strided_slice %130 {offsets = [0, 0], sizes = [2, 32], strides = [1, 1]} : vector<2x96xf32> to vector<2x32xf32>
    %136 = arith.mulf %135, %132 : vector<2x32xf32>
    %137 = arith.addf %134, %136 : vector<2x32xf32>
    %138 = vector.extract_strided_slice %130 {offsets = [0, 64], sizes = [2, 32], strides = [1, 1]} : vector<2x96xf32> to vector<2x32xf32>
    %139 = math.tanh %137 : vector<2x32xf32>
    %140 = arith.mulf %138, %139 : vector<2x32xf32>
    %141 = vector.shape_cast %140 : vector<2x32xf32> to vector<2x1x32xf32>
    %c0_31 = arith.constant 0 : index
    %c5 = arith.constant 5 : index
    %c0_32 = arith.constant 0 : index
    %142 = vector.load %arg3[%c0_31, %c5, %c0_32] : memref<2x8x32xf32, #tpu.memory_space<vmem>>, vector<2x1x32xf32>
    tpu.vector_store %arg3[%c0_31, %c5, %c0_32], %141 {strides = array<i32>} : memref<2x8x32xf32, #tpu.memory_space<vmem>>, vector<2x1x32xf32>,
    %143 = vector.extract_strided_slice %8 {offsets = [0, 6, 0], sizes = [2, 1, 128], strides = [1, 1, 1]} : vector<2x8x128xf32> to vector<2x1x128xf32>
    %144 = vector.shape_cast %143 : vector<2x1x128xf32> to vector<2x128xf32>
    %cst_33 = arith.constant dense<0.000000e+00> : vector<2x128xf32>
    %145 = tpu.matmul %140, %1, %cst_33 {dimension_numbers = #tpu.dot_dimension_numbers<[1], [0], [0], [1], [0, 0, 1, 1], [], []>} : vector<2x32xf32>, vector<32x128xf32>, vector<2x128xf32> -> vector<2x128xf32>
    %146 = arith.addf %144, %145 : vector<2x128xf32>
    %147 = vector.extract_strided_slice %146 {offsets = [0, 0], sizes = [2, 96], strides = [1, 1]} : vector<2x128xf32> to vector<2x96xf32>
    %148 = arith.negf %147 : vector<2x96xf32>
    %149 = math.exp %148 : vector<2x96xf32>
    %cst_34 = arith.constant 1.000000e+00 : f32
    %150 = vector.broadcast %cst_34 : f32 to vector<2x96xf32>
    %151 = arith.addf %150, %149 : vector<2x96xf32>
    %152 = arith.divf %150, %151 : vector<2x96xf32>
    %153 = vector.extract_strided_slice %146 {offsets = [0, 96], sizes = [2, 32], strides = [1, 1]} : vector<2x128xf32> to vector<2x32xf32>
    %154 = math.tanh %153 : vector<2x32xf32>
    %155 = vector.extract_strided_slice %152 {offsets = [0, 32], sizes = [2, 32], strides = [1, 1]} : vector<2x96xf32> to vector<2x32xf32>
    %156 = arith.mulf %155, %137 : vector<2x32xf32>
    %157 = vector.extract_strided_slice %152 {offsets = [0, 0], sizes = [2, 32], strides = [1, 1]} : vector<2x96xf32> to vector<2x32xf32>
    %158 = arith.mulf %157, %154 : vector<2x32xf32>
    %159 = arith.addf %156, %158 : vector<2x32xf32>
    %160 = vector.extract_strided_slice %152 {offsets = [0, 64], sizes = [2, 32], strides = [1, 1]} : vector<2x96xf32> to vector<2x32xf32>
    %161 = math.tanh %159 : vector<2x32xf32>
    %162 = arith.mulf %160, %161 : vector<2x32xf32>
    %163 = vector.shape_cast %162 : vector<2x32xf32> to vector<2x1x32xf32>
    %c0_35 = arith.constant 0 : index
    %c6 = arith.constant 6 : index
    %c0_36 = arith.constant 0 : index
    %164 = vector.load %arg3[%c0_35, %c6, %c0_36] : memref<2x8x32xf32, #tpu.memory_space<vmem>>, vector<2x1x32xf32>
    tpu.vector_store %arg3[%c0_35, %c6, %c0_36], %163 {strides = array<i32>} : memref<2x8x32xf32, #tpu.memory_space<vmem>>, vector<2x1x32xf32>,
    %165 = vector.extract_strided_slice %8 {offsets = [0, 7, 0], sizes = [2, 1, 128], strides = [1, 1, 1]} : vector<2x8x128xf32> to vector<2x1x128xf32>
    %166 = vector.shape_cast %165 : vector<2x1x128xf32> to vector<2x128xf32>
    %cst_37 = arith.constant dense<0.000000e+00> : vector<2x128xf32>
    %167 = tpu.matmul %162, %1, %cst_37 {dimension_numbers = #tpu.dot_dimension_numbers<[1], [0], [0], [1], [0, 0, 1, 1], [], []>} : vector<2x32xf32>, vector<32x128xf32>, vector<2x128xf32> -> vector<2x128xf32>
    %168 = arith.addf %166, %167 : vector<2x128xf32>
    %169 = vector.extract_strided_slice %168 {offsets = [0, 0], sizes = [2, 96], strides = [1, 1]} : vector<2x128xf32> to vector<2x96xf32>
    %170 = arith.negf %169 : vector<2x96xf32>
    %171 = math.exp %170 : vector<2x96xf32>
    %cst_38 = arith.constant 1.000000e+00 : f32
    %172 = vector.broadcast %cst_38 : f32 to vector<2x96xf32>
    %173 = arith.addf %172, %171 : vector<2x96xf32>
    %174 = arith.divf %172, %173 : vector<2x96xf32>
    %175 = vector.extract_strided_slice %168 {offsets = [0, 96], sizes = [2, 32], strides = [1, 1]} : vector<2x128xf32> to vector<2x32xf32>
    %176 = math.tanh %175 : vector<2x32xf32>
    %177 = vector.extract_strided_slice %174 {offsets = [0, 32], sizes = [2, 32], strides = [1, 1]} : vector<2x96xf32> to vector<2x32xf32>
    %178 = arith.mulf %177, %159 : vector<2x32xf32>
    %179 = vector.extract_strided_slice %174 {offsets = [0, 0], sizes = [2, 32], strides = [1, 1]} : vector<2x96xf32> to vector<2x32xf32>
    %180 = arith.mulf %179, %176 : vector<2x32xf32>
    %181 = arith.addf %178, %180 : vector<2x32xf32>
    %182 = vector.extract_strided_slice %174 {offsets = [0, 64], sizes = [2, 32], strides = [1, 1]} : vector<2x96xf32> to vector<2x32xf32>
    %183 = math.tanh %181 : vector<2x32xf32>
    %184 = arith.mulf %182, %183 : vector<2x32xf32>
    %185 = vector.shape_cast %184 : vector<2x32xf32> to vector<2x1x32xf32>
    %c0_39 = arith.constant 0 : index
    %c7 = arith.constant 7 : index
    %c0_40 = arith.constant 0 : index
    %186 = vector.load %arg3[%c0_39, %c7, %c0_40] : memref<2x8x32xf32, #tpu.memory_space<vmem>>, vector<2x1x32xf32>
    tpu.vector_store %arg3[%c0_39, %c7, %c0_40], %185 {strides = array<i32>} : memref<2x8x32xf32, #tpu.memory_space<vmem>>, vector<2x1x32xf32>,
    %c0_41 = arith.constant 0 : index
    %c0_42 = arith.constant 0 : index
    %c0_43 = arith.constant 0 : index
    %187 = vector.load %arg3[%c0_41, %c0_42, %c0_43] : memref<2x8x32xf32, #tpu.memory_space<vmem>>, vector<2x8x32xf32>
    %188 = vector.shape_cast %187 : vector<2x8x32xf32> to vector<16x32xf32>
    %c72 = arith.constant 72 : index
    %c0_44 = arith.constant 0 : index
    %189 = vector.load %arg1[%c72, %c0_44] : memref<384x128xf32, #tpu.memory_space<vmem>>, vector<32x32xf32>
    %c104 = arith.constant 104 : index
    %c0_45 = arith.constant 0 : index
    %190 = vector.load %arg1[%c104, %c0_45] : memref<384x128xf32, #tpu.memory_space<vmem>>, vector<32x8xf32>
    %cst_46 = arith.constant dense<0.000000e+00> : vector<16x32xf32>
    %191 = tpu.matmul %188, %189, %cst_46 {dimension_numbers = #tpu.dot_dimension_numbers<[1], [0], [0], [1], [0, 0, 1, 1], [], []>} : vector<16x32xf32>, vector<32x32xf32>, vector<16x32xf32> -> vector<16x32xf32>
    %192 = vector.shape_cast %191 : vector<16x32xf32> to vector<2x8x32xf32>
    %cst_47 = arith.constant dense<0.000000e+00> : vector<16x8xf32>
    %193 = tpu.matmul %188, %190, %cst_47 {dimension_numbers = #tpu.dot_dimension_numbers<[1], [0], [0], [1], [0, 0, 1, 1], [], []>} : vector<16x32xf32>, vector<32x8xf32>, vector<16x8xf32> -> vector<16x8xf32>
    %194 = vector.shape_cast %193 : vector<16x8xf32> to vector<2x8x8xf32>
    "tpu.trace_start"() <{level = 10 : i32, message = "btk,buk->btu"}> : () -> ()
    %cst_48 = arith.constant dense<0.000000e+00> : vector<2x8x8xf32>
    %195 = tpu.matmul %192, %187, %cst_48 {dimension_numbers = #tpu.dot_dimension_numbers<[2], [2], [1], [1], [0, 0, 0, 1, 1, 1], [0], [0]>} : vector<2x8x32xf32>, vector<2x8x32xf32>, vector<2x8x8xf32> -> vector<2x8x8xf32>
    "tpu.trace_stop"() : () -> ()
    %cst_49 = arith.constant 2.500000e-01 : f32
    %196 = vector.broadcast %cst_49 : f32 to vector<2x8x8xf32>
    %197 = arith.mulf %195, %196 : vector<2x8x8xf32>
    %cst_50 = arith.constant dense<0xFF800000> : vector<2x8xf32>
    %198 = vector.multi_reduction <maximumf>, %197, %cst_50 [2] : vector<2x8x8xf32> to vector<2x8xf32>
    %cst_51 = arith.constant 0xFF800000 : f32
    %199 = vector.broadcast %cst_51 : f32 to vector<2x8xf32>
    %200 = arith.maximumf %199, %198 : vector<2x8xf32>
    %201 = vector.shape_cast %200 : vector<2x8xf32> to vector<2x8x1xf32>
    %202 = vector.broadcast %201 : vector<2x8x1xf32> to vector<2x8x8xf32>
    %203 = arith.subf %197, %202 : vector<2x8x8xf32>
    %204 = math.exp %203 : vector<2x8x8xf32>
    %cst_52 = arith.constant dense<0.000000e+00> : vector<2x8xf32>
    %205 = vector.multi_reduction <add>, %204, %cst_52 [2] : vector<2x8x8xf32> to vector<2x8xf32>
    %206 = vector.shape_cast %205 : vector<2x8xf32> to vector<2x8x1xf32>
    %207 = vector.broadcast %206 : vector<2x8x1xf32> to vector<2x8x8xf32>
    %208 = arith.divf %204, %207 : vector<2x8x8xf32>
    "tpu.trace_start"() <{level = 10 : i32, message = "btu,buk->btk"}> : () -> ()
    %cst_53 = arith.constant dense<0.000000e+00> : vector<2x8x8xf32>
    %209 = tpu.matmul %208, %194, %cst_53 {dimension_numbers = #tpu.dot_dimension_numbers<[2], [1], [1], [2], [0, 0, 0, 1, 1, 2], [0], [0]>} : vector<2x8x8xf32>, vector<2x8x8xf32>, vector<2x8x8xf32> -> vector<2x8x8xf32>
    "tpu.trace_stop"() : () -> ()
    %c136 = arith.constant 136 : index
    %c0_54 = arith.constant 0 : index
    %210 = vector.load %arg1[%c136, %c0_54] : memref<384x128xf32, #tpu.memory_space<vmem>>, vector<32x32xf32>
    %c168 = arith.constant 168 : index
    %c0_55 = arith.constant 0 : index
    %211 = vector.load %arg1[%c168, %c0_55] : memref<384x128xf32, #tpu.memory_space<vmem>>, vector<32x8xf32>
    %cst_56 = arith.constant dense<0.000000e+00> : vector<16x32xf32>
    %212 = tpu.matmul %188, %210, %cst_56 {dimension_numbers = #tpu.dot_dimension_numbers<[1], [0], [0], [1], [0, 0, 1, 1], [], []>} : vector<16x32xf32>, vector<32x32xf32>, vector<16x32xf32> -> vector<16x32xf32>
    %213 = vector.shape_cast %212 : vector<16x32xf32> to vector<2x8x32xf32>
    %cst_57 = arith.constant dense<0.000000e+00> : vector<16x8xf32>
    %214 = tpu.matmul %188, %211, %cst_57 {dimension_numbers = #tpu.dot_dimension_numbers<[1], [0], [0], [1], [0, 0, 1, 1], [], []>} : vector<16x32xf32>, vector<32x8xf32>, vector<16x8xf32> -> vector<16x8xf32>
    %215 = vector.shape_cast %214 : vector<16x8xf32> to vector<2x8x8xf32>
    "tpu.trace_start"() <{level = 10 : i32, message = "btk,buk->btu"}> : () -> ()
    %cst_58 = arith.constant dense<0.000000e+00> : vector<2x8x8xf32>
    %216 = tpu.matmul %213, %187, %cst_58 {dimension_numbers = #tpu.dot_dimension_numbers<[2], [2], [1], [1], [0, 0, 0, 1, 1, 1], [0], [0]>} : vector<2x8x32xf32>, vector<2x8x32xf32>, vector<2x8x8xf32> -> vector<2x8x8xf32>
    "tpu.trace_stop"() : () -> ()
    %cst_59 = arith.constant 2.500000e-01 : f32
    %217 = vector.broadcast %cst_59 : f32 to vector<2x8x8xf32>
    %218 = arith.mulf %216, %217 : vector<2x8x8xf32>
    %cst_60 = arith.constant dense<0xFF800000> : vector<2x8xf32>
    %219 = vector.multi_reduction <maximumf>, %218, %cst_60 [2] : vector<2x8x8xf32> to vector<2x8xf32>
    %cst_61 = arith.constant 0xFF800000 : f32
    %220 = vector.broadcast %cst_61 : f32 to vector<2x8xf32>
    %221 = arith.maximumf %220, %219 : vector<2x8xf32>
    %222 = vector.shape_cast %221 : vector<2x8xf32> to vector<2x8x1xf32>
    %223 = vector.broadcast %222 : vector<2x8x1xf32> to vector<2x8x8xf32>
    %224 = arith.subf %218, %223 : vector<2x8x8xf32>
    %225 = math.exp %224 : vector<2x8x8xf32>
    %cst_62 = arith.constant dense<0.000000e+00> : vector<2x8xf32>
    %226 = vector.multi_reduction <add>, %225, %cst_62 [2] : vector<2x8x8xf32> to vector<2x8xf32>
    %227 = vector.shape_cast %226 : vector<2x8xf32> to vector<2x8x1xf32>
    %228 = vector.broadcast %227 : vector<2x8x1xf32> to vector<2x8x8xf32>
    %229 = arith.divf %225, %228 : vector<2x8x8xf32>
    "tpu.trace_start"() <{level = 10 : i32, message = "btu,buk->btk"}> : () -> ()
    %cst_63 = arith.constant dense<0.000000e+00> : vector<2x8x8xf32>
    %230 = tpu.matmul %229, %215, %cst_63 {dimension_numbers = #tpu.dot_dimension_numbers<[2], [1], [1], [2], [0, 0, 0, 1, 1, 2], [0], [0]>} : vector<2x8x8xf32>, vector<2x8x8xf32>, vector<2x8x8xf32> -> vector<2x8x8xf32>
    "tpu.trace_stop"() : () -> ()
    %c200 = arith.constant 200 : index
    %c0_64 = arith.constant 0 : index
    %231 = vector.load %arg1[%c200, %c0_64] : memref<384x128xf32, #tpu.memory_space<vmem>>, vector<32x64xf32>
    %cst_65 = arith.constant dense<0.000000e+00> : vector<16x64xf32>
    %232 = tpu.matmul %188, %231, %cst_65 {dimension_numbers = #tpu.dot_dimension_numbers<[1], [0], [0], [1], [0, 0, 1, 1], [], []>} : vector<16x32xf32>, vector<32x64xf32>, vector<16x64xf32> -> vector<16x64xf32>
    %233 = vector.shape_cast %209 : vector<2x8x8xf32> to vector<16x8xf32>
    %c232 = arith.constant 232 : index
    %c0_66 = arith.constant 0 : index
    %234 = vector.load %arg1[%c232, %c0_66] : memref<384x128xf32, #tpu.memory_space<vmem>>, vector<8x64xf32>
    %cst_67 = arith.constant dense<0.000000e+00> : vector<16x64xf32>
    %235 = tpu.matmul %233, %234, %cst_67 {dimension_numbers = #tpu.dot_dimension_numbers<[1], [0], [0], [1], [0, 0, 1, 1], [], []>} : vector<16x8xf32>, vector<8x64xf32>, vector<16x64xf32> -> vector<16x64xf32>
    %236 = arith.addf %232, %235 : vector<16x64xf32>
    %237 = vector.shape_cast %230 : vector<2x8x8xf32> to vector<16x8xf32>
    %c240 = arith.constant 240 : index
    %c0_68 = arith.constant 0 : index
    %238 = vector.load %arg1[%c240, %c0_68] : memref<384x128xf32, #tpu.memory_space<vmem>>, vector<8x64xf32>
    %cst_69 = arith.constant dense<0.000000e+00> : vector<16x64xf32>
    %239 = tpu.matmul %237, %238, %cst_69 {dimension_numbers = #tpu.dot_dimension_numbers<[1], [0], [0], [1], [0, 0, 1, 1], [], []>} : vector<16x8xf32>, vector<8x64xf32>, vector<16x64xf32> -> vector<16x64xf32>
    %240 = arith.addf %236, %239 : vector<16x64xf32>
    %c264 = arith.constant 264 : index
    %c0_70 = arith.constant 0 : index
    %241 = vector.load %arg1[%c264, %c0_70] : memref<384x128xf32, #tpu.memory_space<vmem>>, vector<1x64xf32>
    %242 = vector.broadcast %241 : vector<1x64xf32> to vector<16x64xf32>
    %243 = arith.addf %240, %242 : vector<16x64xf32>
    %244 = vector.shape_cast %243 : vector<16x64xf32> to vector<2x8x64xf32>
    %c272 = arith.constant 272 : index
    %c0_71 = arith.constant 0 : index
    %245 = vector.load %arg1[%c272, %c0_71] : memref<384x128xf32, #tpu.memory_space<vmem>>, vector<32x16xf32>
    %cst_72 = arith.constant dense<0.000000e+00> : vector<16x16xf32>
    %246 = tpu.matmul %188, %245, %cst_72 {dimension_numbers = #tpu.dot_dimension_numbers<[1], [0], [0], [1], [0, 0, 1, 1], [], []>} : vector<16x32xf32>, vector<32x16xf32>, vector<16x16xf32> -> vector<16x16xf32>
    %c304 = arith.constant 304 : index
    %c0_73 = arith.constant 0 : index
    %247 = vector.load %arg1[%c304, %c0_73] : memref<384x128xf32, #tpu.memory_space<vmem>>, vector<1x16xf32>
    %248 = vector.broadcast %247 : vector<1x16xf32> to vector<16x16xf32>
    %249 = arith.addf %246, %248 : vector<16x16xf32>
    %250 = vector.shape_cast %249 : vector<16x16xf32> to vector<2x8x16xf32>
    %251 = arith.mulf %250, %250 : vector<2x8x16xf32>
    %cst_74 = arith.constant dense<0.000000e+00> : vector<2x8xf32>
    %252 = vector.multi_reduction <add>, %251, %cst_74 [2] : vector<2x8x16xf32> to vector<2x8xf32>
    %253 = vector.shape_cast %252 : vector<2x8xf32> to vector<2x8x1xf32>
    %254 = math.sqrt %253 : vector<2x8x1xf32>
    %cst_75 = arith.constant 1.000000e+00 : f32
    %255 = vector.broadcast %cst_75 : f32 to vector<2x8x1xf32>
    %256 = arith.addf %255, %253 : vector<2x8x1xf32>
    %257 = arith.divf %254, %256 : vector<2x8x1xf32>
    %258 = vector.broadcast %257 : vector<2x8x1xf32> to vector<2x8x16xf32>
    %259 = arith.mulf %258, %250 : vector<2x8x16xf32>
    %c376 = arith.constant 376 : index
    %c0_76 = arith.constant 0 : index
    %260 = vector.load %arg1[%c376, %c0_76] : memref<384x128xf32, #tpu.memory_space<vmem>>, vector<1x8xf32>
    %c312 = arith.constant 312 : index
    %c0_77 = arith.constant 0 : index
    %261 = vector.load %arg1[%c312, %c0_77] : memref<384x128xf32, #tpu.memory_space<vmem>>, vector<1x16xf32>
    %262 = vector.shape_cast %261 : vector<1x16xf32> to vector<1x1x16xf32>
    %263 = vector.broadcast %262 : vector<1x1x16xf32> to vector<2x8x16xf32>
    %264 = arith.mulf %259, %263 : vector<2x8x16xf32>
    %cst_78 = arith.constant dense<0.000000e+00> : vector<2x8xf32>
    %265 = vector.multi_reduction <add>, %264, %cst_78 [2] : vector<2x8x16xf32> to vector<2x8xf32>
    %266 = vector.extract_strided_slice %260 {offsets = [0, 0], sizes = [1, 1], strides = [1, 1]} : vector<1x8xf32> to vector<1x1xf32>
    %267 = vector.broadcast %266 : vector<1x1xf32> to vector<2x8xf32>
    %268 = arith.addf %265, %267 : vector<2x8xf32>
    %c320 = arith.constant 320 : index
    %c0_79 = arith.constant 0 : index
    %269 = vector.load %arg1[%c320, %c0_79] : memref<384x128xf32, #tpu.memory_space<vmem>>, vector<1x16xf32>
    %270 = vector.shape_cast %269 : vector<1x16xf32> to vector<1x1x16xf32>
    %271 = vector.broadcast %270 : vector<1x1x16xf32> to vector<2x8x16xf32>
    %272 = arith.mulf %259, %271 : vector<2x8x16xf32>
    %cst_80 = arith.constant dense<0.000000e+00> : vector<2x8xf32>
    %273 = vector.multi_reduction <add>, %272, %cst_80 [2] : vector<2x8x16xf32> to vector<2x8xf32>
    %274 = vector.extract_strided_slice %260 {offsets = [0, 1], sizes = [1, 1], strides = [1, 1]} : vector<1x8xf32> to vector<1x1xf32>
    %275 = vector.broadcast %274 : vector<1x1xf32> to vector<2x8xf32>
    %276 = arith.addf %273, %275 : vector<2x8xf32>
    %cst_81 = arith.constant dense<0xFF800000> : vector<2xf32>
    %277 = vector.multi_reduction <maximumf>, %276, %cst_81 [1] : vector<2x8xf32> to vector<2xf32>
    %cst_82 = arith.constant 0xFF800000 : f32
    %278 = vector.broadcast %cst_82 : f32 to vector<2xf32>
    %279 = arith.maximumf %278, %277 : vector<2xf32>
    %280 = vector.shape_cast %279 : vector<2xf32> to vector<2x1xf32>
    %281 = vector.broadcast %280 : vector<2x1xf32> to vector<2x8xf32>
    %282 = arith.subf %276, %281 : vector<2x8xf32>
    %283 = math.exp %282 : vector<2x8xf32>
    %cst_83 = arith.constant dense<0.000000e+00> : vector<2xf32>
    %284 = vector.multi_reduction <add>, %283, %cst_83 [1] : vector<2x8xf32> to vector<2xf32>
    %285 = vector.shape_cast %284 : vector<2xf32> to vector<2x1xf32>
    %286 = vector.broadcast %285 : vector<2x1xf32> to vector<2x8xf32>
    %287 = arith.divf %283, %286 : vector<2x8xf32>
    %c248 = arith.constant 248 : index
    %c0_84 = arith.constant 0 : index
    %288 = vector.load %arg1[%c248, %c0_84] : memref<384x128xf32, #tpu.memory_space<vmem>>, vector<16x64xf32>
    %cst_85 = arith.constant 0.000000e+00 : f32
    %289 = vector.broadcast %cst_85 : f32 to vector<2x16xf32>
    %cst_86 = arith.constant 0.000000e+00 : f32
    %290 = vector.broadcast %cst_86 : f32 to vector<2x16xf32>
    %cst_87 = arith.constant 0.000000e+00 : f32
    %291 = vector.broadcast %cst_87 : f32 to vector<2x16xf32>
    %cst_88 = arith.constant 0.000000e+00 : f32
    %292 = vector.broadcast %cst_88 : f32 to vector<2x16xf32>
    %293 = vector.extract_strided_slice %244 {offsets = [0, 0, 0], sizes = [2, 1, 64], strides = [1, 1, 1]} : vector<2x8x64xf32> to vector<2x1x64xf32>
    %294 = vector.shape_cast %293 : vector<2x1x64xf32> to vector<2x64xf32>
    %cst_89 = arith.constant dense<0.000000e+00> : vector<2x64xf32>
    %295 = tpu.matmul %289, %288, %cst_89 {dimension_numbers = #tpu.dot_dimension_numbers<[1], [0], [0], [1], [0, 0, 1, 1], [], []>} : vector<2x16xf32>, vector<16x64xf32>, vector<2x64xf32> -> vector<2x64xf32>
    %296 = arith.addf %294, %295 : vector<2x64xf32>
    %297 = vector.extract_strided_slice %296 {offsets = [0, 0], sizes = [2, 48], strides = [1, 1]} : vector<2x64xf32> to vector<2x48xf32>
    %298 = arith.negf %297 : vector<2x48xf32>
    %299 = math.exp %298 : vector<2x48xf32>
    %cst_90 = arith.constant 1.000000e+00 : f32
    %300 = vector.broadcast %cst_90 : f32 to vector<2x48xf32>
    %301 = arith.addf %300, %299 : vector<2x48xf32>
    %302 = arith.divf %300, %301 : vector<2x48xf32>
    %303 = vector.extract_strided_slice %296 {offsets = [0, 48], sizes = [2, 16], strides = [1, 1]} : vector<2x64xf32> to vector<2x16xf32>
    %304 = math.tanh %303 : vector<2x16xf32>
    %305 = vector.extract_strided_slice %302 {offsets = [0, 16], sizes = [2, 16], strides = [1, 1]} : vector<2x48xf32> to vector<2x16xf32>
    %306 = arith.mulf %305, %290 : vector<2x16xf32>
    %307 = vector.extract_strided_slice %302 {offsets = [0, 0], sizes = [2, 16], strides = [1, 1]} : vector<2x48xf32> to vector<2x16xf32>
    %308 = arith.mulf %307, %304 : vector<2x16xf32>
    %309 = arith.addf %306, %308 : vector<2x16xf32>
    %310 = vector.extract_strided_slice %302 {offsets = [0, 32], sizes = [2, 16], strides = [1, 1]} : vector<2x48xf32> to vector<2x16xf32>
    %311 = math.tanh %309 : vector<2x16xf32>
    %312 = arith.mulf %310, %311 : vector<2x16xf32>
    %313 = arith.addf %291, %312 : vector<2x16xf32>
    %314 = vector.extract_strided_slice %287 {offsets = [0, 0], sizes = [2, 1], strides = [1, 1]} : vector<2x8xf32> to vector<2x1xf32>
    %315 = vector.broadcast %314 : vector<2x1xf32> to vector<2x16xf32>
    %316 = arith.mulf %315, %312 : vector<2x16xf32>
    %317 = arith.addf %292, %316 : vector<2x16xf32>
    %318 = vector.extract_strided_slice %244 {offsets = [0, 1, 0], sizes = [2, 1, 64], strides = [1, 1, 1]} : vector<2x8x64xf32> to vector<2x1x64xf32>
    %319 = vector.shape_cast %318 : vector<2x1x64xf32> to vector<2x64xf32>
    %cst_91 = arith.constant dense<0.000000e+00> : vector<2x64xf32>
    %320 = tpu.matmul %312, %288, %cst_91 {dimension_numbers = #tpu.dot_dimension_numbers<[1], [0], [0], [1], [0, 0, 1, 1], [], []>} : vector<2x16xf32>, vector<16x64xf32>, vector<2x64xf32> -> vector<2x64xf32>
    %321 = arith.addf %319, %320 : vector<2x64xf32>
    %322 = vector.extract_strided_slice %321 {offsets = [0, 0], sizes = [2, 48], strides = [1, 1]} : vector<2x64xf32> to vector<2x48xf32>
    %323 = arith.negf %322 : vector<2x48xf32>
    %324 = math.exp %323 : vector<2x48xf32>
    %cst_92 = arith.constant 1.000000e+00 : f32
    %325 = vector.broadcast %cst_92 : f32 to vector<2x48xf32>
    %326 = arith.addf %325, %324 : vector<2x48xf32>
    %327 = arith.divf %325, %326 : vector<2x48xf32>
    %328 = vector.extract_strided_slice %321 {offsets = [0, 48], sizes = [2, 16], strides = [1, 1]} : vector<2x64xf32> to vector<2x16xf32>
    %329 = math.tanh %328 : vector<2x16xf32>
    %330 = vector.extract_strided_slice %327 {offsets = [0, 16], sizes = [2, 16], strides = [1, 1]} : vector<2x48xf32> to vector<2x16xf32>
    %331 = arith.mulf %330, %309 : vector<2x16xf32>
    %332 = vector.extract_strided_slice %327 {offsets = [0, 0], sizes = [2, 16], strides = [1, 1]} : vector<2x48xf32> to vector<2x16xf32>
    %333 = arith.mulf %332, %329 : vector<2x16xf32>
    %334 = arith.addf %331, %333 : vector<2x16xf32>
    %335 = vector.extract_strided_slice %327 {offsets = [0, 32], sizes = [2, 16], strides = [1, 1]} : vector<2x48xf32> to vector<2x16xf32>
    %336 = math.tanh %334 : vector<2x16xf32>
    %337 = arith.mulf %335, %336 : vector<2x16xf32>
    %338 = arith.addf %313, %337 : vector<2x16xf32>
    %339 = vector.extract_strided_slice %287 {offsets = [0, 1], sizes = [2, 1], strides = [1, 1]} : vector<2x8xf32> to vector<2x1xf32>
    %340 = vector.broadcast %339 : vector<2x1xf32> to vector<2x16xf32>
    %341 = arith.mulf %340, %337 : vector<2x16xf32>
    %342 = arith.addf %317, %341 : vector<2x16xf32>
    %343 = vector.extract_strided_slice %244 {offsets = [0, 2, 0], sizes = [2, 1, 64], strides = [1, 1, 1]} : vector<2x8x64xf32> to vector<2x1x64xf32>
    %344 = vector.shape_cast %343 : vector<2x1x64xf32> to vector<2x64xf32>
    %cst_93 = arith.constant dense<0.000000e+00> : vector<2x64xf32>
    %345 = tpu.matmul %337, %288, %cst_93 {dimension_numbers = #tpu.dot_dimension_numbers<[1], [0], [0], [1], [0, 0, 1, 1], [], []>} : vector<2x16xf32>, vector<16x64xf32>, vector<2x64xf32> -> vector<2x64xf32>
    %346 = arith.addf %344, %345 : vector<2x64xf32>
    %347 = vector.extract_strided_slice %346 {offsets = [0, 0], sizes = [2, 48], strides = [1, 1]} : vector<2x64xf32> to vector<2x48xf32>
    %348 = arith.negf %347 : vector<2x48xf32>
    %349 = math.exp %348 : vector<2x48xf32>
    %cst_94 = arith.constant 1.000000e+00 : f32
    %350 = vector.broadcast %cst_94 : f32 to vector<2x48xf32>
    %351 = arith.addf %350, %349 : vector<2x48xf32>
    %352 = arith.divf %350, %351 : vector<2x48xf32>
    %353 = vector.extract_strided_slice %346 {offsets = [0, 48], sizes = [2, 16], strides = [1, 1]} : vector<2x64xf32> to vector<2x16xf32>
    %354 = math.tanh %353 : vector<2x16xf32>
    %355 = vector.extract_strided_slice %352 {offsets = [0, 16], sizes = [2, 16], strides = [1, 1]} : vector<2x48xf32> to vector<2x16xf32>
    %356 = arith.mulf %355, %334 : vector<2x16xf32>
    %357 = vector.extract_strided_slice %352 {offsets = [0, 0], sizes = [2, 16], strides = [1, 1]} : vector<2x48xf32> to vector<2x16xf32>
    %358 = arith.mulf %357, %354 : vector<2x16xf32>
    %359 = arith.addf %356, %358 : vector<2x16xf32>
    %360 = vector.extract_strided_slice %352 {offsets = [0, 32], sizes = [2, 16], strides = [1, 1]} : vector<2x48xf32> to vector<2x16xf32>
    %361 = math.tanh %359 : vector<2x16xf32>
    %362 = arith.mulf %360, %361 : vector<2x16xf32>
    %363 = arith.addf %338, %362 : vector<2x16xf32>
    %364 = vector.extract_strided_slice %287 {offsets = [0, 2], sizes = [2, 1], strides = [1, 1]} : vector<2x8xf32> to vector<2x1xf32>
    %365 = vector.broadcast %364 : vector<2x1xf32> to vector<2x16xf32>
    %366 = arith.mulf %365, %362 : vector<2x16xf32>
    %367 = arith.addf %342, %366 : vector<2x16xf32>
    %368 = vector.extract_strided_slice %244 {offsets = [0, 3, 0], sizes = [2, 1, 64], strides = [1, 1, 1]} : vector<2x8x64xf32> to vector<2x1x64xf32>
    %369 = vector.shape_cast %368 : vector<2x1x64xf32> to vector<2x64xf32>
    %cst_95 = arith.constant dense<0.000000e+00> : vector<2x64xf32>
    %370 = tpu.matmul %362, %288, %cst_95 {dimension_numbers = #tpu.dot_dimension_numbers<[1], [0], [0], [1], [0, 0, 1, 1], [], []>} : vector<2x16xf32>, vector<16x64xf32>, vector<2x64xf32> -> vector<2x64xf32>
    %371 = arith.addf %369, %370 : vector<2x64xf32>
    %372 = vector.extract_strided_slice %371 {offsets = [0, 0], sizes = [2, 48], strides = [1, 1]} : vector<2x64xf32> to vector<2x48xf32>
    %373 = arith.negf %372 : vector<2x48xf32>
    %374 = math.exp %373 : vector<2x48xf32>
    %cst_96 = arith.constant 1.000000e+00 : f32
    %375 = vector.broadcast %cst_96 : f32 to vector<2x48xf32>
    %376 = arith.addf %375, %374 : vector<2x48xf32>
    %377 = arith.divf %375, %376 : vector<2x48xf32>
    %378 = vector.extract_strided_slice %371 {offsets = [0, 48], sizes = [2, 16], strides = [1, 1]} : vector<2x64xf32> to vector<2x16xf32>
    %379 = math.tanh %378 : vector<2x16xf32>
    %380 = vector.extract_strided_slice %377 {offsets = [0, 16], sizes = [2, 16], strides = [1, 1]} : vector<2x48xf32> to vector<2x16xf32>
    %381 = arith.mulf %380, %359 : vector<2x16xf32>
    %382 = vector.extract_strided_slice %377 {offsets = [0, 0], sizes = [2, 16], strides = [1, 1]} : vector<2x48xf32> to vector<2x16xf32>
    %383 = arith.mulf %382, %379 : vector<2x16xf32>
    %384 = arith.addf %381, %383 : vector<2x16xf32>
    %385 = vector.extract_strided_slice %377 {offsets = [0, 32], sizes = [2, 16], strides = [1, 1]} : vector<2x48xf32> to vector<2x16xf32>
    %386 = math.tanh %384 : vector<2x16xf32>
    %387 = arith.mulf %385, %386 : vector<2x16xf32>
    %388 = arith.addf %363, %387 : vector<2x16xf32>
    %389 = vector.extract_strided_slice %287 {offsets = [0, 3], sizes = [2, 1], strides = [1, 1]} : vector<2x8xf32> to vector<2x1xf32>
    %390 = vector.broadcast %389 : vector<2x1xf32> to vector<2x16xf32>
    %391 = arith.mulf %390, %387 : vector<2x16xf32>
    %392 = arith.addf %367, %391 : vector<2x16xf32>
    %393 = vector.extract_strided_slice %244 {offsets = [0, 4, 0], sizes = [2, 1, 64], strides = [1, 1, 1]} : vector<2x8x64xf32> to vector<2x1x64xf32>
    %394 = vector.shape_cast %393 : vector<2x1x64xf32> to vector<2x64xf32>
    %cst_97 = arith.constant dense<0.000000e+00> : vector<2x64xf32>
    %395 = tpu.matmul %387, %288, %cst_97 {dimension_numbers = #tpu.dot_dimension_numbers<[1], [0], [0], [1], [0, 0, 1, 1], [], []>} : vector<2x16xf32>, vector<16x64xf32>, vector<2x64xf32> -> vector<2x64xf32>
    %396 = arith.addf %394, %395 : vector<2x64xf32>
    %397 = vector.extract_strided_slice %396 {offsets = [0, 0], sizes = [2, 48], strides = [1, 1]} : vector<2x64xf32> to vector<2x48xf32>
    %398 = arith.negf %397 : vector<2x48xf32>
    %399 = math.exp %398 : vector<2x48xf32>
    %cst_98 = arith.constant 1.000000e+00 : f32
    %400 = vector.broadcast %cst_98 : f32 to vector<2x48xf32>
    %401 = arith.addf %400, %399 : vector<2x48xf32>
    %402 = arith.divf %400, %401 : vector<2x48xf32>
    %403 = vector.extract_strided_slice %396 {offsets = [0, 48], sizes = [2, 16], strides = [1, 1]} : vector<2x64xf32> to vector<2x16xf32>
    %404 = math.tanh %403 : vector<2x16xf32>
    %405 = vector.extract_strided_slice %402 {offsets = [0, 16], sizes = [2, 16], strides = [1, 1]} : vector<2x48xf32> to vector<2x16xf32>
    %406 = arith.mulf %405, %384 : vector<2x16xf32>
    %407 = vector.extract_strided_slice %402 {offsets = [0, 0], sizes = [2, 16], strides = [1, 1]} : vector<2x48xf32> to vector<2x16xf32>
    %408 = arith.mulf %407, %404 : vector<2x16xf32>
    %409 = arith.addf %406, %408 : vector<2x16xf32>
    %410 = vector.extract_strided_slice %402 {offsets = [0, 32], sizes = [2, 16], strides = [1, 1]} : vector<2x48xf32> to vector<2x16xf32>
    %411 = math.tanh %409 : vector<2x16xf32>
    %412 = arith.mulf %410, %411 : vector<2x16xf32>
    %413 = arith.addf %388, %412 : vector<2x16xf32>
    %414 = vector.extract_strided_slice %287 {offsets = [0, 4], sizes = [2, 1], strides = [1, 1]} : vector<2x8xf32> to vector<2x1xf32>
    %415 = vector.broadcast %414 : vector<2x1xf32> to vector<2x16xf32>
    %416 = arith.mulf %415, %412 : vector<2x16xf32>
    %417 = arith.addf %392, %416 : vector<2x16xf32>
    %418 = vector.extract_strided_slice %244 {offsets = [0, 5, 0], sizes = [2, 1, 64], strides = [1, 1, 1]} : vector<2x8x64xf32> to vector<2x1x64xf32>
    %419 = vector.shape_cast %418 : vector<2x1x64xf32> to vector<2x64xf32>
    %cst_99 = arith.constant dense<0.000000e+00> : vector<2x64xf32>
    %420 = tpu.matmul %412, %288, %cst_99 {dimension_numbers = #tpu.dot_dimension_numbers<[1], [0], [0], [1], [0, 0, 1, 1], [], []>} : vector<2x16xf32>, vector<16x64xf32>, vector<2x64xf32> -> vector<2x64xf32>
    %421 = arith.addf %419, %420 : vector<2x64xf32>
    %422 = vector.extract_strided_slice %421 {offsets = [0, 0], sizes = [2, 48], strides = [1, 1]} : vector<2x64xf32> to vector<2x48xf32>
    %423 = arith.negf %422 : vector<2x48xf32>
    %424 = math.exp %423 : vector<2x48xf32>
    %cst_100 = arith.constant 1.000000e+00 : f32
    %425 = vector.broadcast %cst_100 : f32 to vector<2x48xf32>
    %426 = arith.addf %425, %424 : vector<2x48xf32>
    %427 = arith.divf %425, %426 : vector<2x48xf32>
    %428 = vector.extract_strided_slice %421 {offsets = [0, 48], sizes = [2, 16], strides = [1, 1]} : vector<2x64xf32> to vector<2x16xf32>
    %429 = math.tanh %428 : vector<2x16xf32>
    %430 = vector.extract_strided_slice %427 {offsets = [0, 16], sizes = [2, 16], strides = [1, 1]} : vector<2x48xf32> to vector<2x16xf32>
    %431 = arith.mulf %430, %409 : vector<2x16xf32>
    %432 = vector.extract_strided_slice %427 {offsets = [0, 0], sizes = [2, 16], strides = [1, 1]} : vector<2x48xf32> to vector<2x16xf32>
    %433 = arith.mulf %432, %429 : vector<2x16xf32>
    %434 = arith.addf %431, %433 : vector<2x16xf32>
    %435 = vector.extract_strided_slice %427 {offsets = [0, 32], sizes = [2, 16], strides = [1, 1]} : vector<2x48xf32> to vector<2x16xf32>
    %436 = math.tanh %434 : vector<2x16xf32>
    %437 = arith.mulf %435, %436 : vector<2x16xf32>
    %438 = arith.addf %413, %437 : vector<2x16xf32>
    %439 = vector.extract_strided_slice %287 {offsets = [0, 5], sizes = [2, 1], strides = [1, 1]} : vector<2x8xf32> to vector<2x1xf32>
    %440 = vector.broadcast %439 : vector<2x1xf32> to vector<2x16xf32>
    %441 = arith.mulf %440, %437 : vector<2x16xf32>
    %442 = arith.addf %417, %441 : vector<2x16xf32>
    %443 = vector.extract_strided_slice %244 {offsets = [0, 6, 0], sizes = [2, 1, 64], strides = [1, 1, 1]} : vector<2x8x64xf32> to vector<2x1x64xf32>
    %444 = vector.shape_cast %443 : vector<2x1x64xf32> to vector<2x64xf32>
    %cst_101 = arith.constant dense<0.000000e+00> : vector<2x64xf32>
    %445 = tpu.matmul %437, %288, %cst_101 {dimension_numbers = #tpu.dot_dimension_numbers<[1], [0], [0], [1], [0, 0, 1, 1], [], []>} : vector<2x16xf32>, vector<16x64xf32>, vector<2x64xf32> -> vector<2x64xf32>
    %446 = arith.addf %444, %445 : vector<2x64xf32>
    %447 = vector.extract_strided_slice %446 {offsets = [0, 0], sizes = [2, 48], strides = [1, 1]} : vector<2x64xf32> to vector<2x48xf32>
    %448 = arith.negf %447 : vector<2x48xf32>
    %449 = math.exp %448 : vector<2x48xf32>
    %cst_102 = arith.constant 1.000000e+00 : f32
    %450 = vector.broadcast %cst_102 : f32 to vector<2x48xf32>
    %451 = arith.addf %450, %449 : vector<2x48xf32>
    %452 = arith.divf %450, %451 : vector<2x48xf32>
    %453 = vector.extract_strided_slice %446 {offsets = [0, 48], sizes = [2, 16], strides = [1, 1]} : vector<2x64xf32> to vector<2x16xf32>
    %454 = math.tanh %453 : vector<2x16xf32>
    %455 = vector.extract_strided_slice %452 {offsets = [0, 16], sizes = [2, 16], strides = [1, 1]} : vector<2x48xf32> to vector<2x16xf32>
    %456 = arith.mulf %455, %434 : vector<2x16xf32>
    %457 = vector.extract_strided_slice %452 {offsets = [0, 0], sizes = [2, 16], strides = [1, 1]} : vector<2x48xf32> to vector<2x16xf32>
    %458 = arith.mulf %457, %454 : vector<2x16xf32>
    %459 = arith.addf %456, %458 : vector<2x16xf32>
    %460 = vector.extract_strided_slice %452 {offsets = [0, 32], sizes = [2, 16], strides = [1, 1]} : vector<2x48xf32> to vector<2x16xf32>
    %461 = math.tanh %459 : vector<2x16xf32>
    %462 = arith.mulf %460, %461 : vector<2x16xf32>
    %463 = arith.addf %438, %462 : vector<2x16xf32>
    %464 = vector.extract_strided_slice %287 {offsets = [0, 6], sizes = [2, 1], strides = [1, 1]} : vector<2x8xf32> to vector<2x1xf32>
    %465 = vector.broadcast %464 : vector<2x1xf32> to vector<2x16xf32>
    %466 = arith.mulf %465, %462 : vector<2x16xf32>
    %467 = arith.addf %442, %466 : vector<2x16xf32>
    %468 = vector.extract_strided_slice %244 {offsets = [0, 7, 0], sizes = [2, 1, 64], strides = [1, 1, 1]} : vector<2x8x64xf32> to vector<2x1x64xf32>
    %469 = vector.shape_cast %468 : vector<2x1x64xf32> to vector<2x64xf32>
    %cst_103 = arith.constant dense<0.000000e+00> : vector<2x64xf32>
    %470 = tpu.matmul %462, %288, %cst_103 {dimension_numbers = #tpu.dot_dimension_numbers<[1], [0], [0], [1], [0, 0, 1, 1], [], []>} : vector<2x16xf32>, vector<16x64xf32>, vector<2x64xf32> -> vector<2x64xf32>
    %471 = arith.addf %469, %470 : vector<2x64xf32>
    %472 = vector.extract_strided_slice %471 {offsets = [0, 0], sizes = [2, 48], strides = [1, 1]} : vector<2x64xf32> to vector<2x48xf32>
    %473 = arith.negf %472 : vector<2x48xf32>
    %474 = math.exp %473 : vector<2x48xf32>
    %cst_104 = arith.constant 1.000000e+00 : f32
    %475 = vector.broadcast %cst_104 : f32 to vector<2x48xf32>
    %476 = arith.addf %475, %474 : vector<2x48xf32>
    %477 = arith.divf %475, %476 : vector<2x48xf32>
    %478 = vector.extract_strided_slice %471 {offsets = [0, 48], sizes = [2, 16], strides = [1, 1]} : vector<2x64xf32> to vector<2x16xf32>
    %479 = math.tanh %478 : vector<2x16xf32>
    %480 = vector.extract_strided_slice %477 {offsets = [0, 16], sizes = [2, 16], strides = [1, 1]} : vector<2x48xf32> to vector<2x16xf32>
    %481 = arith.mulf %480, %459 : vector<2x16xf32>
    %482 = vector.extract_strided_slice %477 {offsets = [0, 0], sizes = [2, 16], strides = [1, 1]} : vector<2x48xf32> to vector<2x16xf32>
    %483 = arith.mulf %482, %479 : vector<2x16xf32>
    %484 = arith.addf %481, %483 : vector<2x16xf32>
    %485 = vector.extract_strided_slice %477 {offsets = [0, 32], sizes = [2, 16], strides = [1, 1]} : vector<2x48xf32> to vector<2x16xf32>
    %486 = math.tanh %484 : vector<2x16xf32>
    %487 = arith.mulf %485, %486 : vector<2x16xf32>
    %488 = arith.addf %463, %487 : vector<2x16xf32>
    %489 = vector.extract_strided_slice %287 {offsets = [0, 7], sizes = [2, 1], strides = [1, 1]} : vector<2x8xf32> to vector<2x1xf32>
    %490 = vector.broadcast %489 : vector<2x1xf32> to vector<2x16xf32>
    %491 = arith.mulf %490, %487 : vector<2x16xf32>
    %492 = arith.addf %467, %491 : vector<2x16xf32>
    %cst_105 = arith.constant 1.250000e-01 : f32
    %493 = vector.broadcast %cst_105 : f32 to vector<2x16xf32>
    %494 = arith.mulf %488, %493 : vector<2x16xf32>
    %c328 = arith.constant 328 : index
    %c0_106 = arith.constant 0 : index
    %495 = vector.load %arg1[%c328, %c0_106] : memref<384x128xf32, #tpu.memory_space<vmem>>, vector<32x8xf32>
    %496 = vector.extract_strided_slice %495 {offsets = [0, 0], sizes = [16, 8], strides = [1, 1]} : vector<32x8xf32> to vector<16x8xf32>
    %cst_107 = arith.constant dense<0.000000e+00> : vector<2x8xf32>
    %497 = tpu.matmul %494, %496, %cst_107 {dimension_numbers = #tpu.dot_dimension_numbers<[1], [0], [0], [1], [0, 0, 1, 1], [], []>} : vector<2x16xf32>, vector<16x8xf32>, vector<2x8xf32> -> vector<2x8xf32>
    %498 = vector.extract_strided_slice %495 {offsets = [16, 0], sizes = [16, 8], strides = [1, 1]} : vector<32x8xf32> to vector<16x8xf32>
    %cst_108 = arith.constant dense<0.000000e+00> : vector<2x8xf32>
    %499 = tpu.matmul %492, %498, %cst_108 {dimension_numbers = #tpu.dot_dimension_numbers<[1], [0], [0], [1], [0, 0, 1, 1], [], []>} : vector<2x16xf32>, vector<16x8xf32>, vector<2x8xf32> -> vector<2x8xf32>
    %500 = arith.addf %497, %499 : vector<2x8xf32>
    %c360 = arith.constant 360 : index
    %c0_109 = arith.constant 0 : index
    %501 = vector.load %arg1[%c360, %c0_109] : memref<384x128xf32, #tpu.memory_space<vmem>>, vector<1x8xf32>
    %502 = vector.broadcast %501 : vector<1x8xf32> to vector<2x8xf32>
    %503 = arith.addf %500, %502 : vector<2x8xf32>
    %cst_110 = arith.constant 0.000000e+00 : f32
    %504 = vector.broadcast %cst_110 : f32 to vector<2x8xf32>
    %505 = arith.maximumf %503, %504 : vector<2x8xf32>
    %c368 = arith.constant 368 : index
    %c0_111 = arith.constant 0 : index
    %506 = vector.load %arg1[%c368, %c0_111] : memref<384x128xf32, #tpu.memory_space<vmem>>, vector<1x8xf32>
    %507 = vector.broadcast %506 : vector<1x8xf32> to vector<2x8xf32>
    %508 = arith.mulf %505, %507 : vector<2x8xf32>
    %cst_112 = arith.constant dense<0.000000e+00> : vector<2xf32>
    %509 = vector.multi_reduction <add>, %508, %cst_112 [1] : vector<2x8xf32> to vector<2xf32>
    %510 = vector.shape_cast %509 : vector<2xf32> to vector<2x1xf32>
    %511 = vector.extract_strided_slice %260 {offsets = [0, 2], sizes = [1, 1], strides = [1, 1]} : vector<1x8xf32> to vector<1x1xf32>
    %512 = vector.broadcast %511 : vector<1x1xf32> to vector<2x1xf32>
    %513 = arith.addf %510, %512 : vector<2x1xf32>
    %cst_113 = arith.constant 0.000000e+00 : f32
    %514 = vector.broadcast %cst_113 : f32 to vector<2x128xf32>
    %c0_114 = arith.constant 0 : index
    %c0_115 = arith.constant 0 : index
    %515 = vector.load %arg2[%c0_114, %c0_115] : memref<2x128xf32, #tpu.memory_space<vmem>>, vector<2x128xf32>
    tpu.vector_store %arg2[%c0_114, %c0_115], %514 {strides = array<i32>} : memref<2x128xf32, #tpu.memory_space<vmem>>, vector<2x128xf32>,
    %c0_116 = arith.constant 0 : index
    %c0_117 = arith.constant 0 : index
    %516 = vector.load %arg2[%c0_116, %c0_117] : memref<2x128xf32, #tpu.memory_space<vmem>>, vector<2x1xf32>
    tpu.vector_store %arg2[%c0_116, %c0_117], %513 {strides = array<i32>} : memref<2x128xf32, #tpu.memory_space<vmem>>, vector<2x1xf32>,
    %c0_118 = arith.constant 0 : index
    %c1_119 = arith.constant 1 : index
    %517 = vector.load %arg2[%c0_118, %c1_119] : memref<2x128xf32, #tpu.memory_space<vmem>>, vector<2x8xf32>
    tpu.vector_store %arg2[%c0_118, %c1_119], %268 {strides = array<i32>} : memref<2x128xf32, #tpu.memory_space<vmem>>, vector<2x8xf32>,
    return
  }
}

</mosaic_0001>

<bundles_post_ra>
// kernel: forward.1
= control target key start
LH: loop header
LB: loop body
LE: loop exit
PB: predicated region body
PF: predicated region fallthrough
CT: control target
= control target key end

     0   :  { %7 = vsyncpa [#allocation4], 0  ;;  %s5457_s9 = smov [#allocation3]   ;;  %s6222_s0 = inlined_call_operand.vmem [shape: f32[2,8,28], index: 0, kind: input, shape index: {}]   ;;  %s6223_s1 = inlined_call_operand.hbm [shape: f32[384,128], index: 1, kind: input, shape index: {}]   ;;  %s6224_s2 = inlined_call_operand.vmem [shape: f32[2,128], index: 2, kind: output, shape index: {}]  }
   0x1   :  { %s15_s10 = sshll.u32 %s5457_s9, 4  ;;  %s5433_s13 = scalar_lea.hbm %s6223_s1, 6144  ;;  %s16_s10 = int_to_ptr.vmem [resolvable:$true] %s15_s10 }
   0x2   :  { %p5434_p0 = scmp.ne.s32.totalorder %s6223_s1, %s5433_s13  ;;  %p5437_p1 = scmp.lt.u32.totalorder %s5433_s13, %s6223_s1 }
   0x4   :  { %p5439_p2 = pnand %p5437_p1, %p5434_p0 }
   0x6   :  { %5442 = shalt.err (!%p5439_p2)
}
   0x7   :  { %s5443_s18 = scalar_lea.vmem %s16_s10, 6144  ;;  %p5448_p4 = scmp.lt.s32.totalorder %s16_s10, %s16_s10 }
   0x8   :  { %p5444_p3 = scmp.ne.s32.totalorder %s16_s10, %s5443_s18  ;;  %p5449_p5 = scmp.lt.s32.totalorder %s5443_s18, %s5443_s18 }
   0xa   :  { %p5450_p6 = por %p5449_p5, %p5448_p4 }
   0xc   :  { %p5451_p7 = pnand %p5450_p6, %p5444_p3 }
   0xe   :  { %5454 = shalt.err (!%p5451_p7)
}
   0xf   :  { %s5458_s19 = smov 128   ;;  %s5459_s20 = smov 8  }
  0x10   :  { %21 = dma.hbm_to_vmem [thread:$0]  %s6223_s1, 6144, %s16_s10, [#allocation4], %s5458_s19, %s5458_s19, %s5459_s20  }
  0x11   :  { %5455 = dma.done.wait [#allocation4], 6144  }
  0x12   :  { %5456 = vsyncadd [#allocation4], 4294961152  ;;  %v5460_v0 = vmov 0.0|0.0   ;;  %vm5461_vm0 = vmmov 0   ;;  %v5462_v1 = vmov 0.0   ;;  %vm47_vm1 = vcmask 1043456  }
  0x13   :  { %4994 = vmatprep.subr.bf16.mxu1 %v5460_v0  ;;  %4718 = vmatprep.mubr.msk.f32.mxu1 %vm5461_vm0, %v5462_v1  ;;  %4452 = vst [vmem:[%s6224_s2] sm:$0x3] %v5462_v1  ;;  %vm5463_vm2 = vmmov 1   ;;  %v25_v3 = vld [vmem:[#allocation3] sm:$0xff]  ;;  %v26_v4 = vld [vmem:[#allocation3 + $0x8] sm:$0xff]  ;;  %vm40_vm4 = vcmask 228352   ;;  %v27_v8 = vld [vmem:[#allocation3 + $0x10] sm:$0xff] }
  0x14   :  { %vm5506_vm3 = vmpackc.low %vm47_vm1, %vm5463_vm2  ;;  %v29_v5 = vld [vmem:[#allocation3 + $0x20] sm:$0xff]  ;;  %v4984_v6 = vpack.c.bf16 %v26_v4, %v25_v3  ;;  %v30_v7 = vld [vmem:[#allocation3 + $0x28] sm:$0xff]  ;;  %vm266_vm5 = vcmask 1041409   ;;  %s5465_s28 = smov 64   ;;  %vm126_vm6 = vcmask 261120   ;;  %vm262_vm7 = vcmask 253952  }
  0x15   :  { %v28_v9 = vld [vmem:[#allocation3 + $0x18] sm:$0xf]  ;;  %v5510_v10 = vpack.c.bf16 %v30_v7, %v29_v5  ;;  %v31_v12 = vld [vmem:[#allocation3 + $0x30] sm:$0xff]  ;;  %v4479_v17 = vld [vmem:[#allocation3 + $0x40] ss:$0 sm:$0xff]  ;;  %vm410_vm8 = vcmask 254977  }
  0x16   :  { %v4988_v11 = vpack.c.bf16 %v28_v9, %v27_v8  ;;  %v32_v13 = vld [vmem:[#allocation3 + $0x38] sm:$0xff]  ;;  %v34_v14 = vld [vmem:[%s6222_s0] sm:$0xff]  ;;  %4985 = vmatprep.subr.bf16.mxu0 %v4984_v6  ;;  %vm558_vm9 = vcmask 256002   ;;  %vm707_vm10 = vcmask 257027   ;;  %vm856_vm11 = vcmask 258052   ;;  %s5466_s29 = smov 80  }
  0x17   :  { %4707 = vmatprep.mubr.msk.f32.mxu0 %vm40_vm4, %v34_v14  ;;  %4996 = vmatpush3.bf16.msra.mxu1 %v5510_v10  ;;  %v5517_v15 = vpack.c.bf16 %v32_v13, %v31_v12  ;;  %v35_v16 = vld [vmem:[%s6222_s0 + $0x8] sm:$0xff]  ;;  %s5464_s0 = smov 32   ;;  %vm1005_vm12 = vcmask 259077   ;;  %vm1154_vm13 = vcmask 260102   ;;  %vm1303_vm14 = vcmask 261127   ;;  %s5467_s30 = smov 16  }
  0x18   :  { %4987 = vmatpush3.bf16.msra.mxu0 %v4984_v6  ;;  %4997 = vmatprep.subr.bf16.mxu1 %v5460_v0  ;;  %vm1620_vm15 = vcmask 64512   ;;  %s5468_s3 = smov 96   ;;  %vm2601_vm1 = vcmask 130048   ;;  %s5469_s4 = smov 127  }
  0x19   :  { %4990 = vmatprep.subr.msk.bf16.mxu0 %vm5506_vm3, %v4988_v11  ;;  %s5471_s7 = smov 126  }
  0x1b   :  { %4999 = vmatpush3.bf16.msra.mxu1 %v5517_v15 }
  0x1c   :  { %4993 = vmatpush3.bf16.msk.msra.mxu0 %vm5506_vm3, %v4988_v11  ;;  %5006 = vmatprep.subr.bf16.mxu1 %v5460_v0 }
  0x1d   :  { %5000 = vmatprep.subr.bf16.mxu0 %v5460_v0 }
  0x1e   :  { %4719 = vmatmul.mubr.f32.vlgmr.msra.gmra.mrb[0].mxu1 %v5462_v1 }
  0x1f   :  { %4708 = vmatmul.mubr.msk.f32.vlgmr.msra.gmra.mrb[0].mxu0 %vm40_vm4, %v35_v16  ;;  %5008 = vmatpush3.bf16.msra.mxu1 %v5510_v10 }
  0x20   :  { %5002 = vmatpush3.bf16.msra.mxu0 %v5510_v10  ;;  %4729 = vmatprep.mubr.msk.f32.mxu0 %vm5461_vm0, %v5462_v1 }
  0x21   :  { %5003 = vmatprep.subr.bf16.mxu0 %v5460_v0  ;;  %5009 = vmatprep.subr.bf16.mxu1 %v5460_v0 }
  0x22   :  { %4740 = vmatprep.mubr.msk.f32.mxu1 %vm5461_vm0, %v5462_v1 }
  0x23   :  { %5011 = vmatpush3.bf16.msra.mxu1 %v5517_v15 }
  0x24   :  { %5005 = vmatpush3.bf16.msra.mxu0 %v5517_v15  ;;  %5018 = vmatprep.subr.bf16.mxu1 %v5460_v0 }
  0x25   :  { %5012 = vmatprep.subr.bf16.mxu0 %v5460_v0 }
  0xf1   :  { %v196_v18 = vpop.f32.mrb[0].mxu1 }
  0xf2   :  { %v4709_v19 = vpop.f32.mrb[0].mxu0  ;;  %v201_v20 = vrot.slane %v196_v18, 1  ;;  %v4720_v22 = vpop.f32.mrb[1].mxu1 }
  0xf3   :  { %v5544_v21 = vadd.f32 %v4709_v19, %v4479_v17  ;;  %v117_v23 = vpop.f32.mrb[1].mxu0 }
  0xf4   :  { %v5546_v24 = vadd.f32 %v4479_v17, %v117_v23 }
  0xf5   :  { %v205_v25 = vadd.f32 %v201_v20, %v5544_v21 }
  0xf6   :  { %v204_v26 = vadd.f32 %v196_v18, %v5546_v24 }
  0xf7   :  { %5145 = vtanh.f32 %v205_v25  ;;  %v4484_v29 = vmul.f32 -1.442695, %v205_v25 }
  0xf8   :  { %5147 = vtanh.f32 %v204_v26  ;;  %v4483_v30 = vmul.f32 -1.442695, %v204_v26 }
  0xf9   :  { %5149 = vpow2.f32 %v4484_v29 }
  0xfa   :  { %5151 = vpow2.f32 %v4483_v30 }
 0x101   :  { %v5146_v27 = vpop.eup %5145 }
 0x102   :  { %226 = vrot.lane.b32.xlu0 %v5146_v27, %s5464_s0  ;;  %v5148_v28 = vpop.eup %5147 }
 0x103   :  { %v5150_v31 = vpop.eup %5149 }
 0x104   :  { %v213_v32 = vadd.f32 1.0, %v5150_v31  ;;  %v5152_v33 = vpop.eup %5151 }
 0x105   :  { %v212_v34 = vadd.f32 1.0, %v5152_v33 }
 0x106   :  { %224 = vrot.lane.b32.xlu0 %v5148_v28, %s5464_s0  ;;  %5153 = vrcp.f32 %v213_v32 }
 0x107   :  { %5155 = vrcp.f32 %v212_v34 }
 0x110   :  { %v5154_v35 = vpop.eup %5153 }
 0x111   :  { %v5156_v38 = vpop.eup %5155  ;;  %v221_v41 = vmul.f32 0.0, %v5154_v35 }
 0x112   :  { %v220_v44 = vmul.f32 0.0, %v5156_v38 }
 0x174   :  { %v227_v36 = vpop.permute.xlu0 %226 }
 0x175   :  { %v231_v37 = vmul.f32 %v5154_v35, %v227_v36 }
 0x177   :  { %236 = vrot.lane.b32.xlu1 %v231_v37, %s5464_s0 }
 0x178   :  { %v225_v39 = vpop.permute.xlu0 %224 }
 0x179   :  { %v230_v40 = vmul.f32 %v5156_v38, %v225_v39 }
 0x17b   :  { %234 = vrot.lane.b32.xlu1 %v230_v40, %s5464_s0 }
 0x1e9   :  { %v237_v42 = vpop.permute.xlu1 %236 }
 0x1ea   :  { %v241_v43 = vadd.f32 %v237_v42, %v221_v41 }
 0x1ec   :  { %5157 = vtanh.f32 %v241_v43  ;;  %v365_v14 = vrot.slane %v241_v43, 7 }
 0x1ed   :  { %v235_v45 = vpop.permute.xlu1 %234 }
 0x1ee   :  { %v240_v46 = vadd.f32 %v235_v45, %v220_v44 }
 0x1f0   :  { %5159 = vtanh.f32 %v240_v46  ;;  %v364_v17 = vrot.slane %v240_v46, 7 }
 0x1f6   :  { %v5158_v47 = vpop.eup %5157 }
 0x1f7   :  { %248 = vrot.lane.b32.xlu0 %v5158_v47, %s5464_s0 }
 0x1fa   :  { %v5160_v48 = vpop.eup %5159 }
 0x1fb   :  { %246 = vrot.lane.b32.xlu1 %v5160_v48, %s5464_s0 }
 0x269   :  { %v249_v49 = vpop.permute.xlu0 %248 }
 0x26a   :  { %v5556_v50 = vmul.f32 %v5154_v35, %v249_v49 }
 0x26c   :  { %v265_v52 = vrot.slane %v5556_v50, 7 }
 0x26d   :  { %v247_v51 = vpop.permute.xlu1 %246 }
 0x26e   :  { %v5559_v53 = vmul.f32 %v5156_v38, %v247_v51 }
 0x270   :  { %v267_v54 = vsel %vm266_vm5, %v265_v52, %v5559_v53 }
 0x271   :  { %268 = vrot.lane.b32.xlu0 %v267_v54, %s5465_s28 }
 0x2e3   :  { %v269_v55 = vpop.permute.xlu0 %268 }
 0x2e4   :  { %4730 = vmatmul.mubr.msk.f32.vlgmr.msra.gmra.mrb[2].mxu0 %vm126_vm6, %v269_v55 }
 0x2e5   :  { %5014 = vmatpush3.bf16.msra.mxu0 %v5510_v10  ;;  %4751 = vmatprep.mubr.msk.f32.mxu0 %vm5461_vm0, %v5462_v1 }
 0x2e6   :  { %5015 = vmatprep.subr.bf16.mxu0 %v5460_v0 }
 0x2e9   :  { %5017 = vmatpush3.bf16.msra.mxu0 %v5517_v15 }
 0x2ea   :  { %5024 = vmatprep.subr.bf16.mxu0 %v5460_v0 }
 0x3b7   :  { %v338_v56 = vpop.f32.mrb[2].mxu0 }
 0x3b8   :  { %v343_v57 = vrot.slane %v338_v56, 7  ;;  %v347_v58 = vadd.f32 %v338_v56, %v5544_v21  ;;  %v4731_v59 = vpop.f32.mrb[3].mxu0 }
 0x3ba   :  { %v346_v60 = vadd.f32 %v343_v57, %v5546_v24  ;;  %5161 = vtanh.f32 %v347_v58  ;;  %v4487_v63 = vmul.f32 -1.442695, %v347_v58 }
 0x3bc   :  { %5163 = vtanh.f32 %v346_v60  ;;  %v4486_v2 = vmul.f32 -1.442695, %v346_v60 }
 0x3bd   :  { %5165 = vpow2.f32 %v4487_v63 }
 0x3be   :  { %5167 = vpow2.f32 %v4486_v2 }
 0x3c4   :  { %v5162_v61 = vpop.eup %5161 }
 0x3c5   :  { %374 = vrot.lane.b32.xlu0 %v5162_v61, %s5464_s0 }
 0x3c6   :  { %v5164_v62 = vpop.eup %5163 }
 0x3c7   :  { %372 = vrot.lane.b32.xlu1 %v5164_v62, %s5464_s0  ;;  %v5166_v3 = vpop.eup %5165 }
 0x3c8   :  { %v5168_v4 = vpop.eup %5167  ;;  %v355_v5 = vadd.f32 1.0, %v5166_v3 }
 0x3c9   :  { %v354_v6 = vadd.f32 1.0, %v5168_v4 }
 0x3ca   :  { %5169 = vrcp.f32 %v355_v5 }
 0x3cb   :  { %5171 = vrcp.f32 %v354_v6 }
 0x3d4   :  { %v5170_v7 = vpop.eup %5169 }
 0x3d5   :  { %v5172_v11 = vpop.eup %5171  ;;  %v369_v16 = vmul.f32 %v5170_v7, %v365_v14 }
 0x3d6   :  { %v368_v20 = vmul.f32 %v5172_v11, %v364_v17 }
 0x437   :  { %v375_v8 = vpop.permute.xlu0 %374 }
 0x438   :  { %v379_v9 = vmul.f32 %v5170_v7, %v375_v8 }
 0x439   :  { %v373_v12 = vpop.permute.xlu1 %372 }
 0x43a   :  { %384 = vrot.lane.b32.xlu0 %v379_v9, %s5464_s0  ;;  %v378_v13 = vmul.f32 %v5172_v11, %v373_v12 }
 0x43c   :  { %382 = vrot.lane.b32.xlu1 %v378_v13, %s5464_s0 }
 0x4ac   :  { %v385_v18 = vpop.permute.xlu0 %384 }
 0x4ad   :  { %v389_v19 = vadd.f32 %v385_v18, %v369_v16 }
 0x4ae   :  { %v383_v22 = vpop.permute.xlu1 %382 }
 0x4af   :  { %5173 = vtanh.f32 %v389_v19  ;;  %v388_v23 = vadd.f32 %v383_v22, %v368_v20  ;;  %v513_v57 = vrot.slane %v389_v19, 7 }
 0x4b1   :  { %5175 = vtanh.f32 %v388_v23  ;;  %v512_v56 = vrot.slane %v388_v23, 7 }
 0x4b9   :  { %v5174_v25 = vpop.eup %5173 }
 0x4ba   :  { %396 = vrot.lane.b32.xlu0 %v5174_v25, %s5464_s0 }
 0x4bb   :  { %v5176_v26 = vpop.eup %5175 }
 0x4bc   :  { %394 = vrot.lane.b32.xlu1 %v5176_v26, %s5464_s0 }
 0x52c   :  { %v397_v27 = vpop.permute.xlu0 %396 }
 0x52d   :  { %v5581_v30 = vmul.f32 %v5170_v7, %v397_v27 }
 0x52e   :  { %v395_v28 = vpop.permute.xlu1 %394 }
 0x52f   :  { %v5579_v29 = vmul.f32 %v5172_v11, %v395_v28 }
 0x531   :  { %v413_v31 = vrot.slane %v5579_v29, 1 }
 0x533   :  { %v414_v32 = vsel %vm266_vm5, %v5581_v30, %v413_v31 }
 0x534   :  { %415 = vrot.lane.b32.xlu1 %v414_v32, %s5465_s28 }
 0x5a6   :  { %v416_v33 = vpop.permute.xlu1 %415 }
 0x5a7   :  { %4741 = vmatmul.mubr.msk.f32.vlgmr.msra.gmra.mrb[2].mxu1 %vm126_vm6, %v416_v33 }
 0x5a8   :  { %5020 = vmatpush3.bf16.msra.mxu1 %v5510_v10  ;;  %4762 = vmatprep.mubr.msk.f32.mxu1 %vm5461_vm0, %v5462_v1 }
 0x5a9   :  { %5021 = vmatprep.subr.bf16.mxu1 %v5460_v0 }
 0x5ac   :  { %5023 = vmatpush3.bf16.msra.mxu1 %v5517_v15 }
 0x5ad   :  { %5030 = vmatprep.subr.bf16.mxu1 %v5460_v0 }
 0x67a   :  { %v485_v34 = vpop.f32.mrb[2].mxu1 }
 0x67b   :  { %v490_v35 = vrot.slane %v485_v34, 6  ;;  %v491_v36 = vrot.slane %v485_v34, 7  ;;  %v4742_v37 = vpop.f32.mrb[3].mxu1 }
 0x67d   :  { %v494_v38 = vadd.f32 %v490_v35, %v5546_v24  ;;  %v495_v39 = vadd.f32 %v491_v36, %v5544_v21 }
 0x67f   :  { %5177 = vtanh.f32 %v494_v38  ;;  %v4489_v42 = vmul.f32 -1.442695, %v494_v38  ;;  %v4490_v43 = vmul.f32 -1.442695, %v495_v39 }
 0x680   :  { %5179 = vtanh.f32 %v495_v39 }
 0x681   :  { %5181 = vpow2.f32 %v4489_v42 }
 0x682   :  { %5183 = vpow2.f32 %v4490_v43 }
 0x689   :  { %v5178_v40 = vpop.eup %5177 }
 0x68a   :  { %v5180_v41 = vpop.eup %5179  ;;  %520 = vrot.lane.b32.xlu0 %v5178_v40, %s5464_s0 }
 0x68b   :  { %522 = vrot.lane.b32.xlu1 %v5180_v41, %s5464_s0  ;;  %v5182_v44 = vpop.eup %5181 }
 0x68c   :  { %v5184_v45 = vpop.eup %5183  ;;  %v502_v46 = vadd.f32 1.0, %v5182_v44 }
 0x68d   :  { %v503_v47 = vadd.f32 1.0, %v5184_v45 }
 0x68e   :  { %5185 = vrcp.f32 %v502_v46 }
 0x68f   :  { %5187 = vrcp.f32 %v503_v47 }
 0x698   :  { %v5186_v48 = vpop.eup %5185 }
 0x699   :  { %v5188_v51 = vpop.eup %5187  ;;  %v516_v58 = vmul.f32 %v5186_v48, %v512_v56 }
 0x69a   :  { %v517_v59 = vmul.f32 %v5188_v51, %v513_v57 }
 0x6fc   :  { %v521_v49 = vpop.permute.xlu0 %520 }
 0x6fd   :  { %v523_v52 = vpop.permute.xlu1 %522  ;;  %v526_v54 = vmul.f32 %v5186_v48, %v521_v49 }
 0x6fe   :  { %v527_v55 = vmul.f32 %v5188_v51, %v523_v52 }
 0x6ff   :  { %530 = vrot.lane.b32.xlu0 %v526_v54, %s5464_s0 }
 0x700   :  { %532 = vrot.lane.b32.xlu1 %v527_v55, %s5464_s0 }
 0x771   :  { %v531_v60 = vpop.permute.xlu0 %530 }
 0x772   :  { %v533_v61 = vpop.permute.xlu1 %532  ;;  %v536_v62 = vadd.f32 %v531_v60, %v516_v58 }
 0x773   :  { %v537_v63 = vadd.f32 %v533_v61, %v517_v59 }
 0x774   :  { %5189 = vtanh.f32 %v536_v62  ;;  %v661_v38 = vrot.slane %v536_v62, 7 }
 0x775   :  { %5191 = vtanh.f32 %v537_v63  ;;  %v662_v39 = vrot.slane %v537_v63, 7 }
 0x77e   :  { %v5190_v2 = vpop.eup %5189 }
 0x77f   :  { %v5192_v3 = vpop.eup %5191  ;;  %542 = vrot.lane.b32.xlu0 %v5190_v2, %s5464_s0 }
 0x780   :  { %544 = vrot.lane.b32.xlu1 %v5192_v3, %s5464_s0 }
 0x7f1   :  { %v543_v4 = vpop.permute.xlu0 %542 }
 0x7f2   :  { %v545_v5 = vpop.permute.xlu1 %544  ;;  %v5602_v6 = vmul.f32 %v5186_v48, %v543_v4 }
 0x7f3   :  { %v5604_v7 = vmul.f32 %v5188_v51, %v545_v5 }
 0x7f4   :  { %v561_v8 = vrot.slane %v5602_v6, 2 }
 0x7f5   :  { %v562_v9 = vrot.slane %v5604_v7, 1 }
 0x7f7   :  { %v563_v11 = vsel %vm266_vm5, %v562_v9, %v561_v8 }
 0x7f8   :  { %564 = vrot.lane.b32.xlu0 %v563_v11, %s5465_s28 }
 0x86a   :  { %v565_v12 = vpop.permute.xlu0 %564 }
 0x86b   :  { %4752 = vmatmul.mubr.msk.f32.vlgmr.msra.gmra.mrb[4].mxu0 %vm126_vm6, %v565_v12 }
 0x86c   :  { %5026 = vmatpush3.bf16.msra.mxu0 %v5510_v10  ;;  %4773 = vmatprep.mubr.msk.f32.mxu0 %vm5461_vm0, %v5462_v1 }
 0x86d   :  { %5027 = vmatprep.subr.bf16.mxu0 %v5460_v0 }
 0x870   :  { %5029 = vmatpush3.bf16.msra.mxu0 %v5517_v15 }
 0x871   :  { %5036 = vmatprep.subr.bf16.mxu0 %v5460_v0 }
 0x93e   :  { %v634_v13 = vpop.f32.mrb[4].mxu0 }
 0x93f   :  { %v639_v14 = vrot.slane %v634_v13, 5  ;;  %v640_v16 = vrot.slane %v634_v13, 6  ;;  %v4753_v17 = vpop.f32.mrb[5].mxu0 }
 0x941   :  { %v643_v18 = vadd.f32 %v639_v14, %v5546_v24  ;;  %v644_v19 = vadd.f32 %v640_v16, %v5544_v21 }
 0x943   :  { %5193 = vtanh.f32 %v643_v18  ;;  %v4492_v23 = vmul.f32 -1.442695, %v643_v18  ;;  %v4493_v25 = vmul.f32 -1.442695, %v644_v19 }
 0x944   :  { %5195 = vtanh.f32 %v644_v19 }
 0x945   :  { %5197 = vpow2.f32 %v4492_v23 }
 0x946   :  { %5199 = vpow2.f32 %v4493_v25 }
 0x94d   :  { %v5194_v20 = vpop.eup %5193 }
 0x94e   :  { %v5196_v22 = vpop.eup %5195  ;;  %669 = vrot.lane.b32.xlu1 %v5194_v20, %s5464_s0 }
 0x94f   :  { %671 = vrot.lane.b32.xlu0 %v5196_v22, %s5464_s0  ;;  %v5198_v26 = vpop.eup %5197 }
 0x950   :  { %v5200_v27 = vpop.eup %5199  ;;  %v651_v28 = vadd.f32 1.0, %v5198_v26 }
 0x951   :  { %v652_v31 = vadd.f32 1.0, %v5200_v27 }
 0x952   :  { %5201 = vrcp.f32 %v651_v28 }
 0x953   :  { %5203 = vrcp.f32 %v652_v31 }
 0x95c   :  { %v5202_v32 = vpop.eup %5201 }
 0x95d   :  { %v5204_v34 = vpop.eup %5203  ;;  %v665_v40 = vmul.f32 %v5202_v32, %v661_v38 }
 0x95e   :  { %v666_v41 = vmul.f32 %v5204_v34, %v662_v39 }
 0x9c0   :  { %v670_v33 = vpop.permute.xlu1 %669 }
 0x9c1   :  { %v672_v35 = vpop.permute.xlu0 %671  ;;  %v675_v36 = vmul.f32 %v5202_v32, %v670_v33 }
 0x9c2   :  { %v676_v37 = vmul.f32 %v5204_v34, %v672_v35 }
 0x9c3   :  { %679 = vrot.lane.b32.xlu1 %v675_v36, %s5464_s0 }
 0x9c4   :  { %681 = vrot.lane.b32.xlu0 %v676_v37, %s5464_s0 }
 0xa35   :  { %v680_v42 = vpop.permute.xlu1 %679 }
 0xa36   :  { %v682_v43 = vpop.permute.xlu0 %681  ;;  %v685_v44 = vadd.f32 %v680_v42, %v665_v40 }
 0xa37   :  { %v686_v45 = vadd.f32 %v682_v43, %v666_v41 }
 0xa38   :  { %5205 = vtanh.f32 %v685_v44  ;;  %v810_v20 = vrot.slane %v685_v44, 7 }
 0xa39   :  { %5207 = vtanh.f32 %v686_v45  ;;  %v811_v22 = vrot.slane %v686_v45, 7 }
 0xa42   :  { %v5206_v46 = vpop.eup %5205 }
 0xa43   :  { %v5208_v47 = vpop.eup %5207  ;;  %691 = vrot.lane.b32.xlu1 %v5206_v46, %s5464_s0 }
 0xa44   :  { %693 = vrot.lane.b32.xlu0 %v5208_v47, %s5464_s0 }
 0xab5   :  { %v692_v48 = vpop.permute.xlu1 %691 }
 0xab6   :  { %v694_v49 = vpop.permute.xlu0 %693  ;;  %v5625_v51 = vmul.f32 %v5202_v32, %v692_v48 }
 0xab7   :  { %v5627_v52 = vmul.f32 %v5204_v34, %v694_v49 }
 0xab8   :  { %v710_v54 = vrot.slane %v5625_v51, 3 }
 0xab9   :  { %v711_v55 = vrot.slane %v5627_v52, 2 }
 0xabb   :  { %v712_v56 = vsel %vm266_vm5, %v711_v55, %v710_v54 }
 0xabc   :  { %713 = vrot.lane.b32.xlu1 %v712_v56, %s5465_s28 }
 0xb2e   :  { %v714_v57 = vpop.permute.xlu1 %713 }
 0xb2f   :  { %4763 = vmatmul.mubr.msk.f32.vlgmr.msra.gmra.mrb[4].mxu1 %vm126_vm6, %v714_v57 }
 0xb30   :  { %5032 = vmatpush3.bf16.msra.mxu1 %v5510_v10  ;;  %4784 = vmatprep.mubr.msk.f32.mxu1 %vm5461_vm0, %v5462_v1 }
 0xb31   :  { %5033 = vmatprep.subr.bf16.mxu1 %v5460_v0 }
 0xb34   :  { %5035 = vmatpush3.bf16.msra.mxu1 %v5517_v15 }
 0xc02   :  { %v783_v58 = vpop.f32.mrb[4].mxu1 }
 0xc03   :  { %v788_v59 = vrot.slane %v783_v58, 4  ;;  %v789_v60 = vrot.slane %v783_v58, 5  ;;  %v4764_v61 = vpop.f32.mrb[5].mxu1 }
 0xc05   :  { %v792_v62 = vadd.f32 %v788_v59, %v5546_v24  ;;  %v793_v63 = vadd.f32 %v789_v60, %v5544_v21 }
 0xc07   :  { %5209 = vtanh.f32 %v792_v62  ;;  %v4495_v4 = vmul.f32 -1.442695, %v792_v62  ;;  %v4496_v5 = vmul.f32 -1.442695, %v793_v63 }
 0xc08   :  { %5211 = vtanh.f32 %v793_v63 }
 0xc09   :  { %5213 = vpow2.f32 %v4495_v4 }
 0xc0a   :  { %5215 = vpow2.f32 %v4496_v5 }
 0xc11   :  { %v5210_v2 = vpop.eup %5209 }
 0xc12   :  { %v5212_v3 = vpop.eup %5211  ;;  %818 = vrot.lane.b32.xlu0 %v5210_v2, %s5464_s0 }
 0xc13   :  { %820 = vrot.lane.b32.xlu1 %v5212_v3, %s5464_s0  ;;  %v5214_v8 = vpop.eup %5213 }
 0xc14   :  { %v5216_v9 = vpop.eup %5215  ;;  %v800_v11 = vadd.f32 1.0, %v5214_v8 }
 0xc15   :  { %v801_v12 = vadd.f32 1.0, %v5216_v9 }
 0xc16   :  { %5217 = vrcp.f32 %v800_v11 }
 0xc17   :  { %5219 = vrcp.f32 %v801_v12 }
 0xc20   :  { %v5218_v13 = vpop.eup %5217 }
 0xc21   :  { %v5220_v16 = vpop.eup %5219  ;;  %v814_v23 = vmul.f32 %v5218_v13, %v810_v20 }
 0xc22   :  { %v815_v25 = vmul.f32 %v5220_v16, %v811_v22 }
 0xc84   :  { %v819_v14 = vpop.permute.xlu0 %818 }
 0xc85   :  { %v821_v17 = vpop.permute.xlu1 %820  ;;  %v824_v18 = vmul.f32 %v5218_v13, %v819_v14 }
 0xc86   :  { %v825_v19 = vmul.f32 %v5220_v16, %v821_v17 }
 0xc87   :  { %828 = vrot.lane.b32.xlu0 %v824_v18, %s5464_s0 }
 0xc88   :  { %830 = vrot.lane.b32.xlu1 %v825_v19, %s5464_s0 }
 0xcf9   :  { %v829_v26 = vpop.permute.xlu0 %828 }
 0xcfa   :  { %v831_v27 = vpop.permute.xlu1 %830  ;;  %v834_v28 = vadd.f32 %v829_v26, %v814_v23 }
 0xcfb   :  { %v835_v31 = vadd.f32 %v831_v27, %v815_v25 }
 0xcfc   :  { %5221 = vtanh.f32 %v834_v28  ;;  %v959_v2 = vrot.slane %v834_v28, 7 }
 0xcfd   :  { %5223 = vtanh.f32 %v835_v31  ;;  %v960_v3 = vrot.slane %v835_v31, 7 }
 0xd06   :  { %v5222_v32 = vpop.eup %5221 }
 0xd07   :  { %v5224_v33 = vpop.eup %5223  ;;  %840 = vrot.lane.b32.xlu0 %v5222_v32, %s5464_s0 }
 0xd08   :  { %842 = vrot.lane.b32.xlu1 %v5224_v33, %s5464_s0 }
 0xd79   :  { %v841_v34 = vpop.permute.xlu0 %840 }
 0xd7a   :  { %v843_v35 = vpop.permute.xlu1 %842  ;;  %v5647_v36 = vmul.f32 %v5218_v13, %v841_v34 }
 0xd7b   :  { %v5649_v37 = vmul.f32 %v5220_v16, %v843_v35 }
 0xd7c   :  { %v859_v38 = vrot.slane %v5647_v36, 4 }
 0xd7d   :  { %v860_v39 = vrot.slane %v5649_v37, 3 }
 0xd7f   :  { %v861_v40 = vsel %vm266_vm5, %v860_v39, %v859_v38 }
 0xd80   :  { %862 = vrot.lane.b32.xlu0 %v861_v40, %s5465_s28 }
 0xdf2   :  { %v863_v41 = vpop.permute.xlu0 %862 }
 0xdf3   :  { %4774 = vmatmul.mubr.msk.f32.vlgmr.msra.gmra.mrb[6].mxu0 %vm126_vm6, %v863_v41 }
 0xdf4   :  { %5038 = vmatpush3.bf16.msra.mxu0 %v5510_v10  ;;  %4795 = vmatprep.mubr.msk.f32.mxu0 %vm5461_vm0, %v5462_v1 }
 0xdf5   :  { %5039 = vmatprep.subr.bf16.mxu0 %v5460_v0 }
 0xdf8   :  { %5041 = vmatpush3.bf16.msra.mxu0 %v5517_v15 }
 0xec6   :  { %v932_v42 = vpop.f32.mrb[6].mxu0 }
 0xec7   :  { %v937_v43 = vrot.slane %v932_v42, 3  ;;  %v938_v44 = vrot.slane %v932_v42, 4  ;;  %v4775_v45 = vpop.f32.mrb[7].mxu0 }
 0xec9   :  { %v941_v46 = vadd.f32 %v937_v43, %v5546_v24  ;;  %v942_v47 = vadd.f32 %v938_v44, %v5544_v21 }
 0xecb   :  { %5225 = vtanh.f32 %v941_v46  ;;  %v4498_v10 = vmul.f32 -1.442695, %v941_v46  ;;  %v4499_v54 = vmul.f32 -1.442695, %v942_v47 }
 0xecc   :  { %5227 = vtanh.f32 %v942_v47 }
 0xecd   :  { %5229 = vpow2.f32 %v4498_v10 }
 0xece   :  { %5231 = vpow2.f32 %v4499_v54 }
 0xed5   :  { %v5226_v48 = vpop.eup %5225 }
 0xed6   :  { %v5228_v49 = vpop.eup %5227  ;;  %967 = vrot.lane.b32.xlu1 %v5226_v48, %s5464_s0 }
 0xed7   :  { %969 = vrot.lane.b32.xlu0 %v5228_v49, %s5464_s0  ;;  %v5230_v15 = vpop.eup %5229 }
 0xed8   :  { %v5232_v55 = vpop.eup %5231  ;;  %v949_v56 = vadd.f32 1.0, %v5230_v15 }
 0xed9   :  { %v950_v57 = vadd.f32 1.0, %v5232_v55 }
 0xeda   :  { %5233 = vrcp.f32 %v949_v56 }
 0xedb   :  { %5235 = vrcp.f32 %v950_v57 }
 0xee4   :  { %v5234_v58 = vpop.eup %5233 }
 0xee5   :  { %v5236_v60 = vpop.eup %5235  ;;  %v963_v4 = vmul.f32 %v5234_v58, %v959_v2 }
 0xee6   :  { %v964_v5 = vmul.f32 %v5236_v60, %v960_v3 }
 0xf48   :  { %v968_v59 = vpop.permute.xlu1 %967 }
 0xf49   :  { %v970_v61 = vpop.permute.xlu0 %969  ;;  %v973_v62 = vmul.f32 %v5234_v58, %v968_v59 }
 0xf4a   :  { %v974_v63 = vmul.f32 %v5236_v60, %v970_v61 }
 0xf4b   :  { %977 = vrot.lane.b32.xlu1 %v973_v62, %s5464_s0 }
 0xf4c   :  { %979 = vrot.lane.b32.xlu0 %v974_v63, %s5464_s0 }
 0xfbd   :  { %v978_v8 = vpop.permute.xlu1 %977 }
 0xfbe   :  { %v980_v9 = vpop.permute.xlu0 %979  ;;  %v983_v11 = vadd.f32 %v978_v8, %v963_v4 }
 0xfbf   :  { %v984_v12 = vadd.f32 %v980_v9, %v964_v5 }
 0xfc0   :  { %5237 = vtanh.f32 %v983_v11  ;;  %v1108_v10 = vrot.slane %v983_v11, 7 }
 0xfc1   :  { %5239 = vtanh.f32 %v984_v12  ;;  %v1109_v54 = vrot.slane %v984_v12, 7 }
 0xfca   :  { %v5238_v13 = vpop.eup %5237 }
 0xfcb   :  { %v5240_v14 = vpop.eup %5239  ;;  %989 = vrot.lane.b32.xlu1 %v5238_v13, %s5464_s0 }
 0xfcc   :  { %991 = vrot.lane.b32.xlu0 %v5240_v14, %s5464_s0 }
0x103d   :  { %v990_v16 = vpop.permute.xlu1 %989 }
0x103e   :  { %v992_v17 = vpop.permute.xlu0 %991  ;;  %v5669_v18 = vmul.f32 %v5234_v58, %v990_v16 }
0x103f   :  { %v5671_v19 = vmul.f32 %v5236_v60, %v992_v17 }
0x1040   :  { %v1008_v20 = vrot.slane %v5669_v18, 5 }
0x1041   :  { %v1009_v22 = vrot.slane %v5671_v19, 4 }
0x1043   :  { %v1010_v23 = vsel %vm266_vm5, %v1009_v22, %v1008_v20 }
0x1044   :  { %1011 = vrot.lane.b32.xlu1 %v1010_v23, %s5465_s28 }
0x10b6   :  { %v1012_v25 = vpop.permute.xlu1 %1011 }
0x10b7   :  { %4785 = vmatmul.mubr.msk.f32.vlgmr.msra.gmra.mrb[6].mxu1 %vm126_vm6, %v1012_v25 }
0x118a   :  { %v1081_v26 = vpop.f32.mrb[6].mxu1 }
0x118b   :  { %v1086_v27 = vrot.slane %v1081_v26, 2  ;;  %v1087_v28 = vrot.slane %v1081_v26, 3  ;;  %v4786_v31 = vpop.f32.mrb[7].mxu1 }
0x118d   :  { %v1090_v32 = vadd.f32 %v1086_v27, %v5546_v24  ;;  %v1091_v33 = vadd.f32 %v1087_v28, %v5544_v21 }
0x118f   :  { %5241 = vtanh.f32 %v1090_v32  ;;  %v4501_v38 = vmul.f32 -1.442695, %v1090_v32  ;;  %v4502_v39 = vmul.f32 -1.442695, %v1091_v33 }
0x1190   :  { %5243 = vtanh.f32 %v1091_v33 }
0x1191   :  { %5245 = vpow2.f32 %v4501_v38 }
0x1192   :  { %5247 = vpow2.f32 %v4502_v39 }
0x1199   :  { %v5242_v34 = vpop.eup %5241 }
0x119a   :  { %v5244_v35 = vpop.eup %5243  ;;  %1116 = vrot.lane.b32.xlu0 %v5242_v34, %s5464_s0 }
0x119b   :  { %1118 = vrot.lane.b32.xlu1 %v5244_v35, %s5464_s0  ;;  %v5246_v40 = vpop.eup %5245 }
0x119c   :  { %v5248_v41 = vpop.eup %5247  ;;  %v1098_v42 = vadd.f32 1.0, %v5246_v40 }
0x119d   :  { %v1099_v43 = vadd.f32 1.0, %v5248_v41 }
0x119e   :  { %5249 = vrcp.f32 %v1098_v42 }
0x119f   :  { %5251 = vrcp.f32 %v1099_v43 }
0x11a8   :  { %v5250_v44 = vpop.eup %5249 }
0x11a9   :  { %v5252_v46 = vpop.eup %5251  ;;  %v1112_v15 = vmul.f32 %v5250_v44, %v1108_v10 }
0x11aa   :  { %v1113_v55 = vmul.f32 %v5252_v46, %v1109_v54 }
0x120c   :  { %v1117_v45 = vpop.permute.xlu0 %1116 }
0x120d   :  { %v1119_v47 = vpop.permute.xlu1 %1118  ;;  %v1122_v48 = vmul.f32 %v5250_v44, %v1117_v45 }
0x120e   :  { %v1123_v49 = vmul.f32 %v5252_v46, %v1119_v47 }
0x120f   :  { %1126 = vrot.lane.b32.xlu0 %v1122_v48, %s5464_s0  ;;  %v1309_v48 = vld [vmem:[#allocation3 + $0x50] sm:$0xff] }
0x1210   :  { %1128 = vrot.lane.b32.xlu1 %v1123_v49, %s5464_s0 }
0x1281   :  { %v1127_v56 = vpop.permute.xlu0 %1126 }
0x1282   :  { %v1129_v57 = vpop.permute.xlu1 %1128  ;;  %v1132_v58 = vadd.f32 %v1127_v56, %v1112_v15 }
0x1283   :  { %v1133_v59 = vadd.f32 %v1129_v57, %v1113_v55 }
0x1284   :  { %5253 = vtanh.f32 %v1132_v58  ;;  %v1257_v38 = vrot.slane %v1132_v58, 7 }
0x1285   :  { %5255 = vtanh.f32 %v1133_v59  ;;  %v1258_v39 = vrot.slane %v1133_v59, 7 }
0x128e   :  { %v5254_v60 = vpop.eup %5253 }
0x128f   :  { %v5256_v61 = vpop.eup %5255  ;;  %1138 = vrot.lane.b32.xlu0 %v5254_v60, %s5464_s0 }
0x1290   :  { %1140 = vrot.lane.b32.xlu1 %v5256_v61, %s5464_s0 }
0x1301   :  { %v1139_v62 = vpop.permute.xlu0 %1138 }
0x1302   :  { %v1141_v63 = vpop.permute.xlu1 %1140  ;;  %v1144_v2 = vmul.f32 %v5250_v44, %v1139_v62 }
0x1303   :  { %v5686_v3 = vmul.f32 %v5252_v46, %v1141_v63 }
0x1304   :  { %v1157_v4 = vrot.slane %v1144_v2, 6 }
0x1305   :  { %v1158_v5 = vrot.slane %v5686_v3, 5 }
0x1307   :  { %v1159_v8 = vsel %vm266_vm5, %v1158_v5, %v1157_v4 }
0x1308   :  { %1160 = vrot.lane.b32.xlu0 %v1159_v8, %s5465_s28 }
0x137a   :  { %v1161_v9 = vpop.permute.xlu0 %1160 }
0x137b   :  { %4796 = vmatmul.mubr.msk.f32.vlgmr.msra.gmra.mrb[8].mxu0 %vm126_vm6, %v1161_v9 }
0x144e   :  { %v1230_v11 = vpop.f32.mrb[8].mxu0 }
0x144f   :  { %v1235_v12 = vrot.slane %v1230_v11, 1  ;;  %v1236_v13 = vrot.slane %v1230_v11, 2  ;;  %v4797_v14 = vpop.f32.mrb[9].mxu0 }
0x1451   :  { %v1239_v16 = vadd.f32 %v1235_v12, %v5546_v24  ;;  %v1240_v17 = vadd.f32 %v1236_v13, %v5544_v21 }
0x1453   :  { %5257 = vtanh.f32 %v1239_v16  ;;  %v4504_v23 = vmul.f32 -1.442695, %v1239_v16  ;;  %v4505_v25 = vmul.f32 -1.442695, %v1240_v17 }
0x1454   :  { %5259 = vtanh.f32 %v1240_v17 }
0x1455   :  { %5261 = vpow2.f32 %v4504_v23 }
0x1456   :  { %5263 = vpow2.f32 %v4505_v25 }
0x145d   :  { %v5258_v20 = vpop.eup %5257 }
0x145e   :  { %v5260_v22 = vpop.eup %5259  ;;  %1265 = vrot.lane.b32.xlu1 %v5258_v20, %s5464_s0 }
0x145f   :  { %1267 = vrot.lane.b32.xlu0 %v5260_v22, %s5464_s0  ;;  %v5262_v26 = vpop.eup %5261 }
0x1460   :  { %v5264_v27 = vpop.eup %5263  ;;  %v1247_v28 = vadd.f32 1.0, %v5262_v26 }
0x1461   :  { %v1248_v31 = vadd.f32 1.0, %v5264_v27 }
0x1462   :  { %5265 = vrcp.f32 %v1247_v28 }
0x1463   :  { %5267 = vrcp.f32 %v1248_v31 }
0x146c   :  { %v5266_v24 = vpop.eup %5265 }
0x146d   :  { %v5696_v32 = vpop.eup %5267  ;;  %v1261_v40 = vmul.f32 %v5266_v24, %v1257_v38  ;;  %v1790_v38 = vld [vmem:[#allocation3 + $0x90] sm:$0xff] }
0x146e   :  { %v1262_v41 = vmul.f32 %v5696_v32, %v1258_v39 }
0x14d0   :  { %v1266_v21 = vpop.permute.xlu1 %1265 }
0x14d1   :  { %v1268_v33 = vpop.permute.xlu0 %1267  ;;  %v1271_v34 = vmul.f32 %v5266_v24, %v1266_v21 }
0x14d2   :  { %v1272_v35 = vmul.f32 %v5696_v32, %v1268_v33 }
0x14d3   :  { %1275 = vrot.lane.b32.xlu1 %v1271_v34, %s5464_s0 }
0x14d4   :  { %1277 = vrot.lane.b32.xlu0 %v1272_v35, %s5464_s0  ;;  %v1789_v35 = vld [vmem:[#allocation3 + $0x88] sm:$0xff] }
0x14d5   :  { %v5058_v39 = vpack.c.bf16 %v1790_v38, %v1789_v35 }
0x1545   :  { %v1276_v42 = vpop.permute.xlu1 %1275 }
0x1546   :  { %v1278_v43 = vpop.permute.xlu0 %1277  ;;  %v1281_v44 = vadd.f32 %v1276_v42, %v1261_v40 }
0x1547   :  { %v1282_v45 = vadd.f32 %v1278_v43, %v1262_v41 }
0x1548   :  { %5269 = vtanh.f32 %v1281_v44  ;;  %v1791_v44 = vld [vmem:[#allocation3 + $0x98] sm:$0xff] }
0x1549   :  { %5271 = vtanh.f32 %v1282_v45  ;;  %v1792_v45 = vld [vmem:[#allocation3 + $0xa0] sm:$0xff] }
0x1552   :  { %v5270_v46 = vpop.eup %5269 }
0x1553   :  { %v5272_v47 = vpop.eup %5271  ;;  %1287 = vrot.lane.b32.xlu1 %v5270_v46, %s5464_s0 }
0x1554   :  { %1289 = vrot.lane.b32.xlu0 %v5272_v47, %s5464_s0 }
0x1557   :  { %256 = vrot.lane.b32.xlu1 %v5559_v53, %s5465_s28  ;;  %v1308_v53 = vld [vmem:[#allocation3 + $0x48] sm:$0xff] }
0x1558   :  { %404 = vrot.lane.b32.xlu0 %v5579_v29, %s5465_s28  ;;  %v5042_v29 = vpack.c.bf16 %v1309_v48, %v1308_v53  ;;  %v5062_v53 = vpack.c.bf16 %v1792_v45, %v1791_v44  ;;  %v2741_v44 = vld [vmem:[#allocation3 + $0xf8] sm:$0xff]  ;;  %v2742_v45 = vld [vmem:[#allocation3 + $0x100] sm:$0xff] }
0x155a   :  { %5043 = vmatprep.subr.bf16.mxu1 %v5042_v29 }
0x155b   :  { %552 = vrot.lane.b32.xlu1 %v5602_v6, %s5465_s28  ;;  %5045 = vmatpush3.bf16.msra.mxu1 %v5042_v29 }
0x155c   :  { %701 = vrot.lane.b32.xlu0 %v5625_v51, %s5465_s28  ;;  %v1312_v51 = vld [vmem:[#allocation3 + $0x68] sm:$0xff] }
0x155f   :  { %850 = vrot.lane.b32.xlu1 %v5647_v36, %s5465_s28  ;;  %v1313_v36 = vld [vmem:[#allocation3 + $0x70] sm:$0xff] }
0x1560   :  { %999 = vrot.lane.b32.xlu0 %v5669_v18, %s5465_s28  ;;  %v1315_v18 = vld [vmem:[#allocation3 + $0x80] sm:$0xff] }
0x1563   :  { %1148 = vrot.lane.b32.xlu1 %v1144_v2, %s5465_s28 }
0x1564   :  { %406 = vrot.lane.b32.xlu0 %v5581_v30, %s5465_s28  ;;  %v1310_v30 = vld [vmem:[#allocation3 + $0x58] sm:$0xff] }
0x1567   :  { %258 = vrot.lane.b32.xlu1 %v5556_v50, %s5465_s28  ;;  %v1311_v50 = vld [vmem:[#allocation3 + $0x60] sm:$0xff] }
0x1568   :  { %703 = vrot.lane.b32.xlu0 %v5627_v52, %s5465_s28  ;;  %v5046_v6 = vpack.c.bf16 %v1311_v50, %v1310_v30  ;;  %v5050_v52 = vpack.c.bf16 %v1313_v36, %v1312_v51  ;;  %v1793_v30 = vld [vmem:[#allocation3 + $0xa8] sm:$0xff]  ;;  %v1794_v50 = vld [vmem:[#allocation3 + $0xb0] sm:$0xff]  ;;  %v1795_v36 = vld [vmem:[#allocation3 + $0xb8] sm:$0xff] }
0x156a   :  { %5047 = vmatprep.subr.bf16.mxu1 %v5046_v6  ;;  %5051 = vmatprep.subr.bf16.mxu0 %v5050_v52 }
0x156b   :  { %554 = vrot.lane.b32.xlu1 %v5604_v7, %s5465_s28  ;;  %5049 = vmatpush3.bf16.msra.mxu1 %v5046_v6  ;;  %v1314_v7 = vld [vmem:[#allocation3 + $0x78] sm:$0xff]  ;;  %v5066_v6 = vpack.c.bf16 %v1794_v50, %v1793_v30 }
0x156c   :  { %1001 = vrot.lane.b32.xlu0 %v5671_v19, %s5465_s28  ;;  %4820 = vmatprep.subr.mxu1 %v5462_v1  ;;  %v5054_v19 = vpack.c.bf16 %v1315_v18, %v1314_v7 }
0x156d   :  { %5053 = vmatpush3.bf16.msra.mxu0 %v5050_v52  ;;  %v1796_v52 = vld [vmem:[#allocation3 + $0xc0] sm:$0xff] }
0x156e   :  { %5055 = vmatprep.subr.bf16.mxu0 %v5054_v19 }
0x156f   :  { %852 = vrot.lane.b32.xlu1 %v5649_v37, %s5465_s28 }
0x1571   :  { %5057 = vmatpush3.bf16.msra.mxu0 %v5054_v19  ;;  %v5070_v19 = vpack.c.bf16 %v1796_v52, %v1795_v36 }
0x1572   :  { %4830 = vmatprep.subr.mxu0 %v5462_v1 }
0x1573   :  { %1150 = vrot.lane.b32.xlu1 %v5686_v3, %s5465_s28 }
0x15c5   :  { %v1288_v37 = vpop.permute.xlu1 %1287 }
0x15c6   :  { %v1290_v49 = vpop.permute.xlu0 %1289  ;;  %v1293_v10 = vmul.f32 %v5266_v24, %v1288_v37 }
0x15c7   :  { %v1294_v15 = vmul.f32 %v5696_v32, %v1290_v49 }
0x15c8   :  { %1297 = vrot.lane.b32.xlu0 %v1293_v10, %s5465_s28 }
0x15c9   :  { %v257_v54 = vpop.permute.xlu1 %256 }
0x15ca   :  { %v405_v55 = vpop.permute.xlu0 %404  ;;  %263 = vst.msk [vmem:[#allocation2] sm:$0x1] %vm262_vm7, %v257_v54 }
0x15cb   :  { %411 = vst.msk [vmem:[#allocation2] sm:$0x2] %vm410_vm8, %v405_v55 }
0x15cc   :  { %1299 = vrot.lane.b32.xlu0 %v1294_v15, %s5465_s28 }
0x15cd   :  { %v553_v56 = vpop.permute.xlu1 %552 }
0x15ce   :  { %v702_v57 = vpop.permute.xlu0 %701  ;;  %559 = vst.msk [vmem:[#allocation2] sm:$0x4] %vm558_vm9, %v553_v56 }
0x15cf   :  { %708 = vst.msk [vmem:[#allocation2] sm:$0x8] %vm707_vm10, %v702_v57 }
0x15d1   :  { %v851_v58 = vpop.permute.xlu1 %850 }
0x15d2   :  { %v1000_v59 = vpop.permute.xlu0 %999  ;;  %857 = vst.msk [vmem:[#allocation2] sm:$0x10] %vm856_vm11, %v851_v58 }
0x15d3   :  { %1006 = vst.msk [vmem:[#allocation2] sm:$0x20] %vm1005_vm12, %v1000_v59 }
0x15d5   :  { %v1149_v60 = vpop.permute.xlu1 %1148 }
0x15d6   :  { %v407_v61 = vpop.permute.xlu0 %406  ;;  %1155 = vst.msk [vmem:[#allocation2] sm:$0x40] %vm1154_vm13, %v1149_v60 }
0x15d7   :  { %412 = vst.msk [vmem:[#allocation2 + $0x8] sm:$0x2] %vm410_vm8, %v407_v61  ;;  %vm4457_vm8 = vcmask 1024  }
0x15d9   :  { %v259_v62 = vpop.permute.xlu1 %258 }
0x15da   :  { %v704_v63 = vpop.permute.xlu0 %703  ;;  %264 = vst.msk [vmem:[#allocation2 + $0x8] sm:$0x1] %vm262_vm7, %v259_v62  ;;  %vm4269_vm7 = vcmask 130112  }
0x15db   :  { %709 = vst.msk [vmem:[#allocation2 + $0x8] sm:$0x8] %vm707_vm10, %v704_v63 }
0x15dd   :  { %v555_v2 = vpop.permute.xlu1 %554 }
0x15de   :  { %v1002_v3 = vpop.permute.xlu0 %1001  ;;  %560 = vst.msk [vmem:[#allocation2 + $0x8] sm:$0x4] %vm558_vm9, %v555_v2  ;;  %vm4472_vm9 = vcmask 66568  }
0x15df   :  { %1007 = vst.msk [vmem:[#allocation2 + $0x8] sm:$0x20] %vm1005_vm12, %v1002_v3 }
0x15e1   :  { %v853_v4 = vpop.permute.xlu1 %852 }
0x15e2   :  { %858 = vst.msk [vmem:[#allocation2 + $0x8] sm:$0x10] %vm856_vm11, %v853_v4 }
0x15e5   :  { %v1151_v5 = vpop.permute.xlu1 %1150 }
0x15e6   :  { %1156 = vst.msk [vmem:[#allocation2 + $0x8] sm:$0x40] %vm1154_vm13, %v1151_v5 }
0x163a   :  { %v1298_v8 = vpop.permute.xlu0 %1297 }
0x163b   :  { %1304 = vst.msk [vmem:[#allocation2] sm:$0x80] %vm1303_vm14, %v1298_v8 }
0x163e   :  { %v1300_v9 = vpop.permute.xlu0 %1299 }
0x163f   :  { %1305 = vst.msk [vmem:[#allocation2 + $0x8] sm:$0x80] %vm1303_vm14, %v1300_v9 }
0x1642   :  { %v5750_v11 = vld [vmem:[#allocation2] sm:$0xff] }
0x1643   :  { %4806 = vmatprep.mubr.msk.f32.mxu1 %vm126_vm6, %v5750_v11  ;;  %4817 = vmatprep.mubr.msk.f32.mxu0 %vm126_vm6, %v5750_v11 }
0x1646   :  { %v5756_v12 = vld [vmem:[#allocation2 + $0x8] sm:$0xff] }
0x1647   :  { %4807 = vmatmul.mubr.msk.f32.vlgmr.msra.gmra.mrb[8].mxu1 %vm126_vm6, %v5756_v12  ;;  %4818 = vmatmul.mubr.msk.f32.vlgmr.msra.gmra.mrb[10].mxu0 %vm126_vm6, %v5756_v12 }
0x1648   :  { %4821 = vmatpush3.xpose.msk.msra.mxu1 %vm126_vm6, %v5750_v11  ;;  %4822 = vmatprep.mubr.msk.f32.mxu1 %vm5461_vm0, %v5462_v1 }
0x1649   :  { %4825 = vmatprep.subr.mxu1 %v5462_v1  ;;  %4832 = vmatprep.mubr.msk.f32.mxu0 %vm5461_vm0, %v5462_v1 }
0x171a   :  { %v4808_v13 = vpop.f32.mrb[8].mxu1  ;;  %v4819_v14 = vpop.f32.mrb[10].mxu0 }
0x171b   :  { %v1388_v16 = vpop.f32.mrb[9].mxu1  ;;  %v1463_v17 = vpop.f32.mrb[11].mxu0 }
0x171c   :  { %4823 = vmatmul.mubr.msk.f32.vlgmr.msra.gmra.mrb[10].mxu1 %vm126_vm6, %v1388_v16  ;;  %4831 = vmatpush3.msra.mxu0 %v1463_v17 }
0x171d   :  { %4826 = vmatpush3.xpose.msk.msra.mxu1 %vm126_vm6, %v5756_v12  ;;  %4827 = vmatprep.mubr.msk.f32.mxu1 %vm5461_vm0, %v5462_v1 }
0x171e   :  { %4835 = vmatprep.subr.mxu1 %v5462_v1  ;;  %5059 = vmatprep.subr.bf16.mxu0 %v5058_v39 }
0x1720   :  { %4828 = vmatmul.mubr.msk.f32.vlgmr.msra.gmra.mrb[12].mxu1 %vm126_vm6, %v4808_v13 }
0x1721   :  { %4836 = vmatpush3.msra.mxu1 %v4819_v14  ;;  %4837 = vmatprep.mubr.msk.f32.mxu1 %vm5461_vm0, %v5462_v1 }
0x1722   :  { %5067 = vmatprep.subr.bf16.mxu1 %v5066_v6 }
0x17ef   :  { %v1541_v20 = vpop.f32.mrb[10].mxu1 }
0x17f0   :  { %v1618_v22 = vmul.f32 0.25, %v1541_v20  ;;  %v4824_v23 = vpop.f32.mrb[11].mxu1 }
0x17f1   :  { %v2515_v23 = vld [vmem:[#allocation3 + $0x110] sm:$0xff] }
0x17f2   :  { %v1621_v25 = vsel %vm1620_vm15, %v1618_v22, -inf }
0x17f3   :  { %1622 = vmax.xlane.f32.xlu1 %v1621_v25  ;;  %v1614_v26 = vpop.f32.mrb[12].mxu1  ;;  %v2516_v25 = vld [vmem:[#allocation3 + $0x118] sm:$0xff] }
0x17f4   :  { %v4829_v27 = vpop.f32.mrb[13].mxu1  ;;  %v1619_v32 = vmul.f32 0.25, %v1614_v26  ;;  %v5082_v26 = vpack.c.bf16 %v2516_v25, %v2515_v23 }
0x17f5   :  { %v2267_v27 = vld [vmem:[#allocation3 + $0xe8] sm:$0xff] }
0x17f6   :  { %v1624_v34 = vsel %vm1620_vm15, %v1619_v32, -inf }
0x1880   :  { %v1623_v28 = vpop.xlane.xlu1 %1622 }
0x1881   :  { %v1627_v31 = vsub.f32 %v1618_v22, %v1623_v28 }
0x1883   :  { %v1629_v24 = vmul.f32 1.442695, %v1627_v31 }
0x1885   :  { %5273 = vpow2.f32 %v1629_v24  ;;  %v2517_v24 = vld [vmem:[#allocation3 + $0x120] sm:$0xff] }
0x188f   :  { %v5274_v21 = vpop.eup %5273 }
0x1890   :  { %v1633_v33 = vsel %vm1620_vm15, %v5274_v21, 0.0 }
0x1891   :  { %1634 = vadd.xlane.f32.xlu0 %v1633_v33  ;;  %v2263_v33 = vld [vmem:[#allocation3 + $0xc8] sm:$0xff] }
0x1895   :  { %1625 = vmax.xlane.f32.xlu0 %v1624_v34  ;;  %v2264_v34 = vld [vmem:[#allocation3 + $0xd0] sm:$0xff] }
0x191e   :  { %v1635_v40 = vpop.xlane.xlu0 %1634 }
0x191f   :  { %5275 = vrcp.f32 %v1635_v40 }
0x1922   :  { %v1626_v41 = vpop.xlane.xlu0 %1625 }
0x1923   :  { %v1628_v42 = vsub.f32 %v1619_v32, %v1626_v41  ;;  %v5074_v41 = vpack.c.bf16 %v2264_v34, %v2263_v33 }
0x1925   :  { %v1631_v43 = vmul.f32 1.442695, %v1628_v42  ;;  %v2265_v42 = vld [vmem:[#allocation3 + $0xd8] sm:$0xff] }
0x1927   :  { %5277 = vpow2.f32 %v1631_v43  ;;  %v2266_v43 = vld [vmem:[#allocation3 + $0xe0] sm:$0xff] }
0x1929   :  { %v5276_v46 = vpop.eup %5275 }
0x192a   :  { %v1640_v47 = vmul.f32 %v5276_v46, %v5274_v21  ;;  %v2518_v21 = vld [vmem:[#allocation3 + $0x128] sm:$0xff]  ;;  %v5078_v46 = vpack.c.bf16 %v2266_v43, %v2265_v42 }
0x192b   :  { %v5086_v40 = vpack.c.bf16 %v2518_v21, %v2517_v24 }
0x192c   :  { %4833 = vmatmul.mubr.msk.f32.vlgmr.msra.gmra.mrb[12].mxu0 %vm1620_vm15, %v1640_v47  ;;  %v5826_v47 = vpack.c.bf16 %v2742_v45, %v2741_v44 }
0x192d   :  { %5061 = vmatpush3.bf16.msra.mxu0 %v5058_v39  ;;  %4848 = vmatprep.mubr.msk.f32.mxu0 %vm126_vm6, %v5750_v11 }
0x192e   :  { %5063 = vmatprep.subr.bf16.mxu0 %v5062_v53 }
0x1931   :  { %v5278_v48 = vpop.eup %5277  ;;  %5065 = vmatpush3.bf16.msra.mxu0 %v5062_v53  ;;  %v2424_v53 = vld [vmem:[#allocation3 + $0xf0] sm:$0xff] }
0x1932   :  { %v1636_v29 = vsel %vm1620_vm15, %v5278_v48, 0.0  ;;  %4862 = vmatprep.subr.mxu0 %v5462_v1 }
0x1933   :  { %1637 = vadd.xlane.f32.xlu1 %v1636_v29 }
0x1934   :  { %4849 = vmatmul.mubr.msk.f32.vlgmr.msra.gmra.mrb[14].mxu0 %vm126_vm6, %v5756_v12 }
0x1935   :  { %4864 = vmatprep.mubr.msk.f32.mxu0 %vm5461_vm0, %v5462_v1 }
0x193a   :  { %4863 = vmatpush3.xpose.msk.msra.mxu0 %vm126_vm6, %v5750_v11 }
0x193b   :  { %4872 = vmatprep.subr.mxu0 %v5462_v1 }
0x19c0   :  { %v1638_v51 = vpop.xlane.xlu1 %1637 }
0x19c1   :  { %5279 = vrcp.f32 %v1638_v51 }
0x19cb   :  { %v5280_v7 = vpop.eup %5279 }
0x19cc   :  { %v1642_v18 = vmul.f32 %v5280_v7, %v5278_v48  ;;  %v4532_v7 = vld [vmem:[#allocation3 + $0x108] ss:$0 sm:$0xff] }
0x19ce   :  { %4838 = vmatmul.mubr.msk.f32.vlgmr.msra.gmra.mrb[14].mxu1 %vm1620_vm15, %v1642_v18 }
0x19cf   :  { %5069 = vmatpush3.bf16.msra.mxu1 %v5066_v6  ;;  %4859 = vmatprep.mubr.msk.f32.mxu1 %vm126_vm6, %v5750_v11 }
0x19d0   :  { %5071 = vmatprep.subr.bf16.mxu1 %v5070_v19 }
0x19d3   :  { %5073 = vmatpush3.bf16.msra.mxu1 %v5070_v19 }
0x19d4   :  { %4867 = vmatprep.subr.mxu1 %v5462_v1 }
0x19d6   :  { %4860 = vmatmul.mubr.msk.f32.vlgmr.msra.gmra.mrb[16].mxu1 %vm126_vm6, %v5756_v12 }
0x19d7   :  { %4869 = vmatprep.mubr.msk.f32.mxu1 %vm5461_vm0, %v5462_v1 }
0x19dc   :  { %4868 = vmatpush3.xpose.msk.msra.mxu1 %vm126_vm6, %v5756_v12 }
0x19dd   :  { %4877 = vmatprep.subr.mxu1 %v5462_v1 }
0x19ff   :  { %v5804_v37 = vpop.f32.mrb[12].mxu0 }
0x1a00   :  { %v4834_v49 = vpop.f32.mrb[13].mxu0 }
0x1a07   :  { %v4850_v10 = vpop.f32.mrb[14].mxu0 }
0x1a08   :  { %v1863_v54 = vpop.f32.mrb[15].mxu0  ;;  %4870 = vmatmul.mubr.msk.f32.vlgmr.msra.gmra.mrb[18].mxu1 %vm126_vm6, %v4850_v10 }
0x1a09   :  { %4865 = vmatmul.mubr.msk.f32.vlgmr.msra.gmra.mrb[16].mxu0 %vm126_vm6, %v1863_v54  ;;  %4879 = vmatprep.mubr.msk.f32.mxu1 %vm5461_vm0, %v5462_v1 }
0x1a0a   :  { %4874 = vmatprep.mubr.msk.f32.mxu0 %vm5461_vm0, %v5462_v1 }
0x1aa1   :  { %v5812_v15 = vpop.f32.mrb[14].mxu1 }
0x1aa2   :  { %v4839_v55 = vpop.f32.mrb[15].mxu1 }
0x1aa9   :  { %v4861_v56 = vpop.f32.mrb[16].mxu1 }
0x1aaa   :  { %v1938_v57 = vpop.f32.mrb[17].mxu1  ;;  %4878 = vmatpush3.msra.mxu1 %v4861_v56 }
0x1aab   :  { %4873 = vmatpush3.msra.mxu0 %v1938_v57  ;;  %5083 = vmatprep.subr.bf16.mxu1 %v5082_v26 }
0x1aac   :  { %4882 = vmatprep.subr.mxu0 %v2267_v27 }
0x1adb   :  { %v2089_v58 = vpop.f32.mrb[18].mxu1 }
0x1adc   :  { %v2094_v59 = vmul.f32 0.25, %v2089_v58  ;;  %v2016_v60 = vpop.f32.mrb[16].mxu0  ;;  %v4871_v61 = vpop.f32.mrb[19].mxu1 }
0x1add   :  { %v2093_v62 = vmul.f32 0.25, %v2016_v60  ;;  %v4866_v63 = vpop.f32.mrb[17].mxu0 }
0x1ade   :  { %v2098_v2 = vsel %vm1620_vm15, %v2094_v59, -inf }
0x1adf   :  { %2099 = vmax.xlane.f32.xlu1 %v2098_v2  ;;  %v2095_v3 = vsel %vm1620_vm15, %v2093_v62, -inf }
0x1ae0   :  { %2096 = vmax.xlane.f32.xlu0 %v2095_v3 }
0x1b6c   :  { %v2100_v4 = vpop.xlane.xlu1 %2099 }
0x1b6d   :  { %v2102_v5 = vsub.f32 %v2094_v59, %v2100_v4  ;;  %v2097_v8 = vpop.xlane.xlu0 %2096 }
0x1b6e   :  { %v2101_v9 = vsub.f32 %v2093_v62, %v2097_v8 }
0x1b6f   :  { %v2105_v13 = vmul.f32 1.442695, %v2102_v5 }
0x1b70   :  { %v2103_v14 = vmul.f32 1.442695, %v2101_v9 }
0x1b71   :  { %5281 = vpow2.f32 %v2105_v13 }
0x1b72   :  { %5283 = vpow2.f32 %v2103_v14 }
0x1b7b   :  { %v5282_v16 = vpop.eup %5281 }
0x1b7c   :  { %v5284_v17 = vpop.eup %5283  ;;  %v2110_v20 = vsel %vm1620_vm15, %v5282_v16, 0.0 }
0x1b7d   :  { %2111 = vadd.xlane.f32.xlu1 %v2110_v20  ;;  %v2107_v22 = vsel %vm1620_vm15, %v5284_v17, 0.0 }
0x1b7e   :  { %2108 = vadd.xlane.f32.xlu0 %v2107_v22 }
0x1c0a   :  { %v2112_v28 = vpop.xlane.xlu1 %2111 }
0x1c0b   :  { %5285 = vrcp.f32 %v2112_v28  ;;  %v2109_v31 = vpop.xlane.xlu0 %2108 }
0x1c0c   :  { %5287 = vrcp.f32 %v2109_v31 }
0x1c15   :  { %v5286_v32 = vpop.eup %5285 }
0x1c16   :  { %v5288_v35 = vpop.eup %5287  ;;  %v2116_v38 = vmul.f32 %v5286_v32, %v5282_v16 }
0x1c17   :  { %v2114_v39 = vmul.f32 %v5288_v35, %v5284_v17 }
0x1c18   :  { %4880 = vmatmul.mubr.msk.f32.vlgmr.msra.gmra.mrb[20].mxu1 %vm1620_vm15, %v2116_v38 }
0x1c19   :  { %5085 = vmatpush3.bf16.msra.mxu1 %v5082_v26  ;;  %4875 = vmatmul.mubr.msk.f32.vlgmr.msra.gmra.mrb[18].mxu0 %vm1620_vm15, %v2114_v39 }
0x1c1a   :  { %4911 = vmatprep.mubr.msk.f32.mxu1 %vm126_vm6, %v5750_v11  ;;  %4884 = vmatprep.mubr.msk.f32.mxu0 %vm1620_vm15, %v5804_v37 }
0x1c1b   :  { %5087 = vmatprep.subr.bf16.mxu1 %v5086_v40  ;;  %4883 = vmatpush3.msra.mxu0 %v2267_v27 }
0x1c1c   :  { %5075 = vmatprep.subr.bf16.mxu0 %v5074_v41 }
0x1c1d   :  { %5089 = vmatpush3.bf16.msra.mxu1 %v5086_v40  ;;  %4885 = vmatmul.mubr.msk.f32.vlgmr.msra.gmra.mrb[20].mxu0 %vm1620_vm15, %v5812_v15 }
0x1c1e   :  { %5077 = vmatpush3.bf16.msra.mxu0 %v5074_v41  ;;  %4895 = vmatprep.mubr.msk.f32.mxu0 %vm126_vm6, %v5750_v11 }
0x1c1f   :  { %5079 = vmatprep.subr.bf16.mxu0 %v5078_v46  ;;  %5090 = vmatprep.subr.bf16.mxu1 %v5460_v0 }
0x1c20   :  { %4912 = vmatmul.mubr.msk.f32.vlgmr.msra.gmra.mrb[22].mxu1 %vm126_vm6, %v5756_v12 }
0x1c21   :  { %5092 = vmatpush3.bf16.msra.mxu1 %v5826_v47  ;;  %4918 = vmatprep.mubr.msk.f32.mxu1 %vm5461_vm0, %v5462_v1 }
0x1c22   :  { %5081 = vmatpush3.bf16.msra.mxu0 %v5078_v46  ;;  %5093 = vmatprep.subr.bf16.mxu1 %v5460_v0 }
0x1c23   :  { %4898 = vmatprep.subr.mxu0 %v2424_v53 }
0x1c24   :  { %4919 = vmatmul.mubr.f32.vlgmr.msra.gmra.mrb[24].mxu1 %v5462_v1 }
0x1c25   :  { %4896 = vmatmul.mubr.msk.f32.vlgmr.msra.gmra.mrb[20].mxu0 %vm126_vm6, %v5756_v12  ;;  %5095 = vmatpush3.bf16.msra.mxu1 %v5826_v47  ;;  %v5851_v12 = vld [vmem:[#allocation3 + $0x130] ss:$0 sm:$0xff] }
0x1c26   :  { %4899 = vmatpush3.msra.mxu0 %v2424_v53  ;;  %4925 = vmatprep.mubr.msk.f32.mxu1 %vm5461_vm0, %v5462_v1 }
0x1c27   :  { %5096 = vmatprep.subr.bf16.mxu0 %v5460_v0  ;;  %5099 = vmatprep.subr.bf16.mxu1 %v5460_v0 }
0x1ceb   :  { %v2259_v11 = vpop.f32.mrb[20].mxu1 }
0x1cec   :  { %v2186_v48 = vpop.f32.mrb[18].mxu0  ;;  %v4881_v29 = vpop.f32.mrb[21].mxu1 }
0x1ced   :  { %v4876_v30 = vpop.f32.mrb[19].mxu0  ;;  %4900 = vmatprep.mubr.msk.f32.mxu0 %vm1620_vm15, %v2186_v48 }
0x1cee   :  { %4901 = vmatmul.mubr.msk.f32.vlgmr.msra.gmra.mrb[20].mxu0 %vm1620_vm15, %v2259_v11 }
0x1cef   :  { %5098 = vmatpush3.bf16.msra.mxu0 %v5826_v47  ;;  %4932 = vmatprep.mubr.msk.f32.mxu0 %vm5461_vm0, %v5462_v1 }
0x1cf0   :  { %5102 = vmatprep.subr.bf16.mxu0 %v5460_v0 }
0x1cf3   :  { %v4913_v50 = vpop.f32.mrb[22].mxu1 }
0x1cf4   :  { %v5854_v6 = vadd.f32 %v4913_v50, %v5851_v12  ;;  %v5856_v51 = vpop.f32.mrb[23].mxu1 }
0x1cf7   :  { %v2811_v36 = vpop.f32.mrb[24].mxu1 }
0x1cf8   :  { %v4920_v52 = vpop.f32.mrb[25].mxu1  ;;  %v2816_v18 = vrot.slane %v2811_v36, 1 }
0x1dc1   :  { %v4902_v19 = vpop.f32.mrb[20].mxu0 }
0x1dc2   :  { %v5858_v37 = vadd.f32 %v4902_v19, %v4532_v7  ;;  %v2497_v49 = vpop.f32.mrb[21].mxu0 }
0x1dc3   :  { %v5860_v10 = vadd.f32 %v4532_v7, %v2497_v49 }
0x1dc4   :  { %v2820_v54 = vadd.f32 %v2816_v18, %v5858_v37 }
0x1dc5   :  { %v2819_v15 = vadd.f32 %v2811_v36, %v5860_v10 }
0x1dc6   :  { %5289 = vtanh.f32 %v2820_v54  ;;  %v4539_v57 = vmul.f32 -1.442695, %v2820_v54 }
0x1dc7   :  { %5291 = vtanh.f32 %v2819_v15  ;;  %v4538_v58 = vmul.f32 -1.442695, %v2819_v15 }
0x1dc8   :  { %5293 = vpow2.f32 %v4539_v57 }
0x1dc9   :  { %5295 = vpow2.f32 %v4538_v58 }
0x1dd0   :  { %v5290_v55 = vpop.eup %5289 }
0x1dd1   :  { %v5292_v56 = vpop.eup %5291  ;;  %2841 = vrot.lane.b32.xlu0 %v5290_v55, %s5466_s29 }
0x1dd2   :  { %2839 = vrot.lane.b32.xlu1 %v5292_v56, %s5466_s29  ;;  %v5294_v59 = vpop.eup %5293 }
0x1dd3   :  { %v5296_v60 = vpop.eup %5295  ;;  %v2828_v61 = vadd.f32 1.0, %v5294_v59 }
0x1dd4   :  { %v2827_v62 = vadd.f32 1.0, %v5296_v60 }
0x1dd5   :  { %5297 = vrcp.f32 %v2828_v61 }
0x1dd6   :  { %5299 = vrcp.f32 %v2827_v62 }
0x1ddf   :  { %v5298_v63 = vpop.eup %5297 }
0x1de0   :  { %v5300_v3 = vpop.eup %5299  ;;  %v2836_v9 = vmul.f32 0.0, %v5298_v63 }
0x1de1   :  { %v2835_v14 = vmul.f32 0.0, %v5300_v3 }
0x1e43   :  { %v2842_v2 = vpop.permute.xlu0 %2841 }
0x1e44   :  { %v2846_v4 = vmul.f32 %v5298_v63, %v2842_v2  ;;  %v2840_v5 = vpop.permute.xlu1 %2839 }
0x1e45   :  { %v2845_v8 = vmul.f32 %v5300_v3, %v2840_v5 }
0x1e46   :  { %2851 = vrot.lane.b32.xlu1 %v2846_v4, %s5467_s30 }
0x1e47   :  { %2849 = vrot.lane.b32.xlu0 %v2845_v8, %s5467_s30 }
0x1eb8   :  { %v2852_v13 = vpop.permute.xlu1 %2851 }
0x1eb9   :  { %v2856_v16 = vadd.f32 %v2852_v13, %v2836_v9  ;;  %v2850_v17 = vpop.permute.xlu0 %2849 }
0x1eba   :  { %v2855_v20 = vadd.f32 %v2850_v17, %v2835_v14 }
0x1ebb   :  { %5301 = vtanh.f32 %v2856_v16  ;;  %v3016_v36 = vrot.slane %v2856_v16, 7 }
0x1ebc   :  { %5303 = vtanh.f32 %v2855_v20  ;;  %v3015_v7 = vrot.slane %v2855_v20, 7 }
0x1ec5   :  { %v5302_v22 = vpop.eup %5301 }
0x1ec6   :  { %v5304_v23 = vpop.eup %5303  ;;  %2863 = vrot.lane.b32.xlu1 %v5302_v22, %s5467_s30 }
0x1ec7   :  { %2861 = vrot.lane.b32.xlu0 %v5304_v23, %s5467_s30 }
0x1f38   :  { %v2864_v25 = vpop.permute.xlu1 %2863 }
0x1f39   :  { %v5870_v26 = vmul.f32 %v5298_v63, %v2864_v25  ;;  %v2862_v27 = vpop.permute.xlu0 %2861 }
0x1f3a   :  { %v5872_v28 = vmul.f32 %v5300_v3, %v2862_v27 }
0x1f3b   :  { %v2917_v31 = vrot.slane %v5870_v26, 7 }
0x1f3d   :  { %v2918_v24 = vsel %vm266_vm5, %v2917_v31, %v5872_v28 }
0x1f3e   :  { %2919 = vrot.lane.b32.xlu1 %v2918_v24, %s5468_s3 }
0x1fb0   :  { %v2920_v21 = vpop.permute.xlu1 %2919 }
0x1fb1   :  { %4926 = vmatmul.mubr.msk.f32.vlgmr.msra.gmra.mrb[26].mxu1 %vm2601_vm1, %v2920_v21 }
0x1fb2   :  { %5101 = vmatpush3.bf16.msra.mxu1 %v5826_v47  ;;  %4939 = vmatprep.mubr.msk.f32.mxu1 %vm5461_vm0, %v5462_v1 }
0x1fb3   :  { %5105 = vmatprep.subr.bf16.mxu1 %v5460_v0 }
0x2084   :  { %v2989_v32 = vpop.f32.mrb[26].mxu1 }
0x2085   :  { %v2994_v33 = vrot.slane %v2989_v32, 7  ;;  %v2998_v34 = vadd.f32 %v2989_v32, %v5858_v37  ;;  %v4927_v35 = vpop.f32.mrb[27].mxu1 }
0x2087   :  { %v2997_v38 = vadd.f32 %v2994_v33, %v5860_v10  ;;  %5305 = vtanh.f32 %v2998_v34  ;;  %v4542_v41 = vmul.f32 -1.442695, %v2998_v34 }
0x2089   :  { %5307 = vtanh.f32 %v2997_v38  ;;  %v4541_v42 = vmul.f32 -1.442695, %v2997_v38 }
0x208a   :  { %5309 = vpow2.f32 %v4542_v41 }
0x208b   :  { %5311 = vpow2.f32 %v4541_v42 }
0x2091   :  { %v5306_v39 = vpop.eup %5305 }
0x2092   :  { %3025 = vrot.lane.b32.xlu1 %v5306_v39, %s5466_s29 }
0x2093   :  { %v5308_v40 = vpop.eup %5307 }
0x2094   :  { %3023 = vrot.lane.b32.xlu0 %v5308_v40, %s5466_s29  ;;  %v5310_v43 = vpop.eup %5309 }
0x2095   :  { %v5312_v44 = vpop.eup %5311  ;;  %v3006_v45 = vadd.f32 1.0, %v5310_v43 }
0x2096   :  { %v3005_v46 = vadd.f32 1.0, %v5312_v44 }
0x2097   :  { %5313 = vrcp.f32 %v3006_v45 }
0x2098   :  { %5315 = vrcp.f32 %v3005_v46 }
0x20a1   :  { %v5314_v53 = vpop.eup %5313 }
0x20a2   :  { %v5316_v29 = vpop.eup %5315  ;;  %v3020_v52 = vmul.f32 %v5314_v53, %v3016_v36 }
0x20a3   :  { %v3019_v49 = vmul.f32 %v5316_v29, %v3015_v7 }
0x2104   :  { %v3026_v11 = vpop.permute.xlu1 %3025 }
0x2105   :  { %v3030_v48 = vmul.f32 %v5314_v53, %v3026_v11 }
0x2106   :  { %v3024_v30 = vpop.permute.xlu0 %3023 }
0x2107   :  { %3035 = vrot.lane.b32.xlu1 %v3030_v48, %s5467_s30  ;;  %v3029_v50 = vmul.f32 %v5316_v29, %v3024_v30 }
0x2109   :  { %3033 = vrot.lane.b32.xlu0 %v3029_v50, %s5467_s30 }
0x2179   :  { %v3036_v18 = vpop.permute.xlu1 %3035 }
0x217a   :  { %v3040_v19 = vadd.f32 %v3036_v18, %v3020_v52 }
0x217b   :  { %v3034_v54 = vpop.permute.xlu0 %3033 }
0x217c   :  { %5317 = vtanh.f32 %v3040_v19  ;;  %v3039_v15 = vadd.f32 %v3034_v54, %v3019_v49  ;;  %v3204_v35 = vrot.slane %v3040_v19, 7 }
0x217e   :  { %5319 = vtanh.f32 %v3039_v15  ;;  %v3203_v34 = vrot.slane %v3039_v15, 7 }
0x2186   :  { %v5318_v55 = vpop.eup %5317 }
0x2187   :  { %3047 = vrot.lane.b32.xlu1 %v5318_v55, %s5467_s30 }
0x2188   :  { %v5320_v56 = vpop.eup %5319 }
0x2189   :  { %3045 = vrot.lane.b32.xlu0 %v5320_v56, %s5467_s30 }
0x21f9   :  { %v3048_v57 = vpop.permute.xlu1 %3047 }
0x21fa   :  { %v5893_v60 = vmul.f32 %v5314_v53, %v3048_v57 }
0x21fb   :  { %v3046_v58 = vpop.permute.xlu0 %3045 }
0x21fc   :  { %v5891_v59 = vmul.f32 %v5316_v29, %v3046_v58  ;;  %v3056_v46 = vrot.slane %v5893_v60, 1 }
0x21fe   :  { %v3055_v61 = vrot.slane %v5891_v59, 1  ;;  %v3060_v36 = vadd.f32 %v3056_v46, %v5870_v26 }
0x2200   :  { %v3105_v62 = vsel %vm266_vm5, %v5893_v60, %v3055_v61  ;;  %v3059_v30 = vadd.f32 %v3055_v61, %v5872_v28 }
0x2201   :  { %3106 = vrot.lane.b32.xlu0 %v3105_v62, %s5468_s3 }
0x2273   :  { %v3107_v63 = vpop.permute.xlu0 %3106 }
0x2274   :  { %4933 = vmatmul.mubr.msk.f32.vlgmr.msra.gmra.mrb[22].mxu0 %vm2601_vm1, %v3107_v63 }
0x2275   :  { %5104 = vmatpush3.bf16.msra.mxu0 %v5826_v47  ;;  %4946 = vmatprep.mubr.msk.f32.mxu0 %vm5461_vm0, %v5462_v1 }
0x2276   :  { %5108 = vmatprep.subr.bf16.mxu0 %v5460_v0 }
0x2347   :  { %v3176_v2 = vpop.f32.mrb[22].mxu0 }
0x2348   :  { %v3181_v3 = vrot.slane %v3176_v2, 6  ;;  %v3182_v4 = vrot.slane %v3176_v2, 7  ;;  %v4934_v5 = vpop.f32.mrb[23].mxu0 }
0x234a   :  { %v3185_v8 = vadd.f32 %v3181_v3, %v5860_v10  ;;  %v3186_v9 = vadd.f32 %v3182_v4, %v5858_v37 }
0x234c   :  { %5321 = vtanh.f32 %v3185_v8  ;;  %v4544_v16 = vmul.f32 -1.442695, %v3185_v8  ;;  %v4545_v17 = vmul.f32 -1.442695, %v3186_v9 }
0x234d   :  { %5323 = vtanh.f32 %v3186_v9 }
0x234e   :  { %5325 = vpow2.f32 %v4544_v16 }
0x234f   :  { %5327 = vpow2.f32 %v4545_v17 }
0x2356   :  { %v5322_v13 = vpop.eup %5321 }
0x2357   :  { %v5324_v14 = vpop.eup %5323  ;;  %3211 = vrot.lane.b32.xlu1 %v5322_v13, %s5466_s29 }
0x2358   :  { %3213 = vrot.lane.b32.xlu0 %v5324_v14, %s5466_s29  ;;  %v5326_v20 = vpop.eup %5325 }
0x2359   :  { %v5328_v22 = vpop.eup %5327  ;;  %v3193_v23 = vadd.f32 1.0, %v5326_v20 }
0x235a   :  { %v3194_v25 = vadd.f32 1.0, %v5328_v22 }
0x235b   :  { %5329 = vrcp.f32 %v3193_v23 }
0x235c   :  { %5331 = vrcp.f32 %v3194_v25 }
0x2365   :  { %v5330_v27 = vpop.eup %5329 }
0x2366   :  { %v5332_v24 = vpop.eup %5331  ;;  %v3207_v38 = vmul.f32 %v5330_v27, %v3203_v34 }
0x2367   :  { %v3208_v39 = vmul.f32 %v5332_v24, %v3204_v35 }
0x23c9   :  { %v3212_v31 = vpop.permute.xlu1 %3211 }
0x23ca   :  { %v3214_v21 = vpop.permute.xlu0 %3213  ;;  %v3217_v32 = vmul.f32 %v5330_v27, %v3212_v31 }
0x23cb   :  { %v3218_v33 = vmul.f32 %v5332_v24, %v3214_v21 }
0x23cc   :  { %3221 = vrot.lane.b32.xlu1 %v3217_v32, %s5467_s30 }
0x23cd   :  { %3223 = vrot.lane.b32.xlu0 %v3218_v33, %s5467_s30 }
0x243e   :  { %v3222_v40 = vpop.permute.xlu1 %3221 }
0x243f   :  { %v3224_v41 = vpop.permute.xlu0 %3223  ;;  %v3227_v42 = vadd.f32 %v3222_v40, %v3207_v38 }
0x2440   :  { %v3228_v43 = vadd.f32 %v3224_v41, %v3208_v39 }
0x2441   :  { %5333 = vtanh.f32 %v3227_v42  ;;  %v3392_v23 = vrot.slane %v3227_v42, 7 }
0x2442   :  { %5335 = vtanh.f32 %v3228_v43  ;;  %v3393_v25 = vrot.slane %v3228_v43, 7 }
0x244b   :  { %v5334_v44 = vpop.eup %5333 }
0x244c   :  { %v5336_v45 = vpop.eup %5335  ;;  %3233 = vrot.lane.b32.xlu1 %v5334_v44, %s5467_s30 }
0x244d   :  { %3235 = vrot.lane.b32.xlu0 %v5336_v45, %s5467_s30 }
0x24be   :  { %v3234_v53 = vpop.permute.xlu1 %3233 }
0x24bf   :  { %v3236_v11 = vpop.permute.xlu0 %3235  ;;  %v5913_v48 = vmul.f32 %v5330_v27, %v3234_v53 }
0x24c0   :  { %v5915_v29 = vmul.f32 %v5332_v24, %v3236_v11 }
0x24c1   :  { %v3243_v50 = vrot.slane %v5913_v48, 2 }
0x24c2   :  { %v3244_v52 = vrot.slane %v5915_v29, 2  ;;  %v3293_v7 = vrot.slane %v5915_v29, 1 }
0x24c3   :  { %v3247_v18 = vadd.f32 %v3243_v50, %v3059_v30 }
0x24c4   :  { %v3248_v19 = vadd.f32 %v3244_v52, %v3060_v36  ;;  %v3294_v49 = vsel %vm266_vm5, %v3293_v7, %v3243_v50 }
0x24c5   :  { %3295 = vrot.lane.b32.xlu1 %v3294_v49, %s5468_s3 }
0x2537   :  { %v3296_v54 = vpop.permute.xlu1 %3295 }
0x2538   :  { %4940 = vmatmul.mubr.msk.f32.vlgmr.msra.gmra.mrb[28].mxu1 %vm2601_vm1, %v3296_v54 }
0x2539   :  { %5107 = vmatpush3.bf16.msra.mxu1 %v5826_v47  ;;  %4953 = vmatprep.mubr.msk.f32.mxu1 %vm5461_vm0, %v5462_v1 }
0x253a   :  { %5111 = vmatprep.subr.bf16.mxu1 %v5460_v0 }
0x260b   :  { %v3365_v15 = vpop.f32.mrb[28].mxu1 }
0x260c   :  { %v3370_v55 = vrot.slane %v3365_v15, 5  ;;  %v3371_v56 = vrot.slane %v3365_v15, 6  ;;  %v4941_v57 = vpop.f32.mrb[29].mxu1 }
0x260e   :  { %v3374_v58 = vadd.f32 %v3370_v55, %v5860_v10  ;;  %v3375_v61 = vadd.f32 %v3371_v56, %v5858_v37 }
0x2610   :  { %5337 = vtanh.f32 %v3374_v58  ;;  %v4547_v2 = vmul.f32 -1.442695, %v3374_v58  ;;  %v4548_v3 = vmul.f32 -1.442695, %v3375_v61 }
0x2611   :  { %5339 = vtanh.f32 %v3375_v61 }
0x2612   :  { %5341 = vpow2.f32 %v4547_v2 }
0x2613   :  { %5343 = vpow2.f32 %v4548_v3 }
0x261a   :  { %v5338_v62 = vpop.eup %5337 }
0x261b   :  { %v5340_v63 = vpop.eup %5339  ;;  %3400 = vrot.lane.b32.xlu0 %v5338_v62, %s5466_s29 }
0x261c   :  { %3402 = vrot.lane.b32.xlu1 %v5340_v63, %s5466_s29  ;;  %v5342_v4 = vpop.eup %5341 }
0x261d   :  { %v5344_v5 = vpop.eup %5343  ;;  %v3382_v8 = vadd.f32 1.0, %v5342_v4 }
0x261e   :  { %v3383_v9 = vadd.f32 1.0, %v5344_v5 }
0x261f   :  { %5345 = vrcp.f32 %v3382_v8 }
0x2620   :  { %5347 = vrcp.f32 %v3383_v9 }
0x2629   :  { %v5346_v13 = vpop.eup %5345 }
0x262a   :  { %v5348_v16 = vpop.eup %5347  ;;  %v3396_v27 = vmul.f32 %v5346_v13, %v3392_v23 }
0x262b   :  { %v3397_v31 = vmul.f32 %v5348_v16, %v3393_v25 }
0x268d   :  { %v3401_v14 = vpop.permute.xlu0 %3400 }
0x268e   :  { %v3403_v17 = vpop.permute.xlu1 %3402  ;;  %v3406_v20 = vmul.f32 %v5346_v13, %v3401_v14 }
0x268f   :  { %v3407_v22 = vmul.f32 %v5348_v16, %v3403_v17 }
0x2690   :  { %3410 = vrot.lane.b32.xlu0 %v3406_v20, %s5467_s30 }
0x2691   :  { %3412 = vrot.lane.b32.xlu1 %v3407_v22, %s5467_s30 }
0x2702   :  { %v3411_v24 = vpop.permute.xlu0 %3410 }
0x2703   :  { %v3413_v21 = vpop.permute.xlu1 %3412  ;;  %v3416_v32 = vadd.f32 %v3411_v24, %v3396_v27 }
0x2704   :  { %v3417_v33 = vadd.f32 %v3413_v21, %v3397_v31 }
0x2705   :  { %5349 = vtanh.f32 %v3416_v32  ;;  %v3581_v5 = vrot.slane %v3416_v32, 7 }
0x2706   :  { %5351 = vtanh.f32 %v3417_v33  ;;  %v3582_v8 = vrot.slane %v3417_v33, 7 }
0x270f   :  { %v5350_v34 = vpop.eup %5349 }
0x2710   :  { %v5352_v35 = vpop.eup %5351  ;;  %3422 = vrot.lane.b32.xlu0 %v5350_v34, %s5467_s30 }
0x2711   :  { %3424 = vrot.lane.b32.xlu1 %v5352_v35, %s5467_s30 }
0x2782   :  { %v3423_v38 = vpop.permute.xlu0 %3422 }
0x2783   :  { %v3425_v39 = vpop.permute.xlu1 %3424  ;;  %v5937_v40 = vmul.f32 %v5346_v13, %v3423_v38 }
0x2784   :  { %v5939_v41 = vmul.f32 %v5348_v16, %v3425_v39 }
0x2785   :  { %v3432_v42 = vrot.slane %v5937_v40, 3 }
0x2786   :  { %v3433_v43 = vrot.slane %v5939_v41, 3  ;;  %v3482_v44 = vrot.slane %v5939_v41, 2 }
0x2787   :  { %v3436_v45 = vadd.f32 %v3432_v42, %v3247_v18 }
0x2788   :  { %v3437_v46 = vadd.f32 %v3433_v43, %v3248_v19  ;;  %v3483_v53 = vsel %vm266_vm5, %v3482_v44, %v3432_v42 }
0x2789   :  { %3484 = vrot.lane.b32.xlu0 %v3483_v53, %s5468_s3 }
0x27fb   :  { %v3485_v11 = vpop.permute.xlu0 %3484 }
0x27fc   :  { %4947 = vmatmul.mubr.msk.f32.vlgmr.msra.gmra.mrb[24].mxu0 %vm2601_vm1, %v3485_v11 }
0x27fd   :  { %5110 = vmatpush3.bf16.msra.mxu0 %v5826_v47  ;;  %4960 = vmatprep.mubr.msk.f32.mxu0 %vm5461_vm0, %v5462_v1 }
0x27fe   :  { %5114 = vmatprep.subr.bf16.mxu0 %v5460_v0 }
0x28cf   :  { %v3554_v30 = vpop.f32.mrb[24].mxu0 }
0x28d0   :  { %v3559_v50 = vrot.slane %v3554_v30, 4  ;;  %v3560_v36 = vrot.slane %v3554_v30, 5  ;;  %v4948_v52 = vpop.f32.mrb[25].mxu0 }
0x28d2   :  { %v3563_v7 = vadd.f32 %v3559_v50, %v5860_v10  ;;  %v3564_v18 = vadd.f32 %v3560_v36, %v5858_v37 }
0x28d4   :  { %5353 = vtanh.f32 %v3563_v7  ;;  %v4550_v54 = vmul.f32 -1.442695, %v3563_v7  ;;  %v4551_v15 = vmul.f32 -1.442695, %v3564_v18 }
0x28d5   :  { %5355 = vtanh.f32 %v3564_v18 }
0x28d6   :  { %5357 = vpow2.f32 %v4550_v54 }
0x28d7   :  { %5359 = vpow2.f32 %v4551_v15 }
0x28de   :  { %v5354_v19 = vpop.eup %5353 }
0x28df   :  { %v5356_v49 = vpop.eup %5355  ;;  %3589 = vrot.lane.b32.xlu1 %v5354_v19, %s5466_s29 }
0x28e0   :  { %3591 = vrot.lane.b32.xlu0 %v5356_v49, %s5466_s29  ;;  %v5358_v55 = vpop.eup %5357 }
0x28e1   :  { %v5360_v56 = vpop.eup %5359  ;;  %v3571_v57 = vadd.f32 1.0, %v5358_v55 }
0x28e2   :  { %v3572_v58 = vadd.f32 1.0, %v5360_v56 }
0x28e3   :  { %5361 = vrcp.f32 %v3571_v57 }
0x28e4   :  { %5363 = vrcp.f32 %v3572_v58 }
0x28ed   :  { %v5362_v61 = vpop.eup %5361 }
0x28ee   :  { %v5364_v63 = vpop.eup %5363  ;;  %v3585_v9 = vmul.f32 %v5362_v61, %v3581_v5 }
0x28ef   :  { %v3586_v13 = vmul.f32 %v5364_v63, %v3582_v8 }
0x2951   :  { %v3590_v62 = vpop.permute.xlu1 %3589 }
0x2952   :  { %v3592_v2 = vpop.permute.xlu0 %3591  ;;  %v3595_v3 = vmul.f32 %v5362_v61, %v3590_v62 }
0x2953   :  { %v3596_v4 = vmul.f32 %v5364_v63, %v3592_v2 }
0x2954   :  { %3599 = vrot.lane.b32.xlu1 %v3595_v3, %s5467_s30 }
0x2955   :  { %3601 = vrot.lane.b32.xlu0 %v3596_v4, %s5467_s30 }
0x29c6   :  { %v3600_v14 = vpop.permute.xlu1 %3599 }
0x29c7   :  { %v3602_v16 = vpop.permute.xlu0 %3601  ;;  %v3605_v17 = vadd.f32 %v3600_v14, %v3585_v9 }
0x29c8   :  { %v3606_v20 = vadd.f32 %v3602_v16, %v3586_v13 }
0x29c9   :  { %5365 = vtanh.f32 %v3605_v17  ;;  %v3770_v56 = vrot.slane %v3605_v17, 7 }
0x29ca   :  { %5367 = vtanh.f32 %v3606_v20  ;;  %v3771_v57 = vrot.slane %v3606_v20, 7 }
0x29d3   :  { %v5366_v22 = vpop.eup %5365 }
0x29d4   :  { %v5368_v23 = vpop.eup %5367  ;;  %3611 = vrot.lane.b32.xlu1 %v5366_v22, %s5467_s30 }
0x29d5   :  { %3613 = vrot.lane.b32.xlu0 %v5368_v23, %s5467_s30 }
0x2a46   :  { %v3612_v25 = vpop.permute.xlu1 %3611 }
0x2a47   :  { %v3614_v27 = vpop.permute.xlu0 %3613  ;;  %v5959_v31 = vmul.f32 %v5362_v61, %v3612_v25 }
0x2a48   :  { %v5961_v24 = vmul.f32 %v5364_v63, %v3614_v27 }
0x2a49   :  { %v3621_v21 = vrot.slane %v5959_v31, 4 }
0x2a4a   :  { %v3622_v32 = vrot.slane %v5961_v24, 4  ;;  %v3671_v33 = vrot.slane %v5961_v24, 3 }
0x2a4b   :  { %v3625_v34 = vadd.f32 %v3621_v21, %v3436_v45 }
0x2a4c   :  { %v3626_v35 = vadd.f32 %v3622_v32, %v3437_v46  ;;  %v3672_v38 = vsel %vm266_vm5, %v3671_v33, %v3621_v21 }
0x2a4d   :  { %3673 = vrot.lane.b32.xlu1 %v3672_v38, %s5468_s3 }
0x2abf   :  { %v3674_v39 = vpop.permute.xlu1 %3673 }
0x2ac0   :  { %4954 = vmatmul.mubr.msk.f32.vlgmr.msra.gmra.mrb[30].mxu1 %vm2601_vm1, %v3674_v39 }
0x2ac1   :  { %5113 = vmatpush3.bf16.msra.mxu1 %v5826_v47  ;;  %4967 = vmatprep.mubr.msk.f32.mxu1 %vm5461_vm0, %v5462_v1 }
0x2ac2   :  { %5117 = vmatprep.subr.bf16.mxu1 %v5460_v0 }
0x2b93   :  { %v3743_v42 = vpop.f32.mrb[30].mxu1 }
0x2b94   :  { %v3748_v43 = vrot.slane %v3743_v42, 3  ;;  %v3749_v44 = vrot.slane %v3743_v42, 4  ;;  %v4955_v53 = vpop.f32.mrb[31].mxu1 }
0x2b96   :  { %v3752_v45 = vadd.f32 %v3748_v43, %v5860_v10  ;;  %v3753_v46 = vadd.f32 %v3749_v44, %v5858_v37 }
0x2b98   :  { %5369 = vtanh.f32 %v3752_v45  ;;  %v4553_v47 = vmul.f32 -1.442695, %v3752_v45  ;;  %v4554_v50 = vmul.f32 -1.442695, %v3753_v46 }
0x2b99   :  { %5371 = vtanh.f32 %v3753_v46 }
0x2b9a   :  { %5373 = vpow2.f32 %v4553_v47 }
0x2b9b   :  { %5375 = vpow2.f32 %v4554_v50 }
0x2ba2   :  { %v5370_v11 = vpop.eup %5369 }
0x2ba3   :  { %v5372_v30 = vpop.eup %5371  ;;  %3778 = vrot.lane.b32.xlu0 %v5370_v11, %s5466_s29 }
0x2ba4   :  { %3780 = vrot.lane.b32.xlu1 %v5372_v30, %s5466_s29  ;;  %v5374_v0 = vpop.eup %5373 }
0x2ba5   :  { %v5376_v36 = vpop.eup %5375  ;;  %v3760_v52 = vadd.f32 1.0, %v5374_v0 }
0x2ba6   :  { %v3761_v7 = vadd.f32 1.0, %v5376_v36 }
0x2ba7   :  { %5377 = vrcp.f32 %v3760_v52 }
0x2ba8   :  { %5379 = vrcp.f32 %v3761_v7 }
0x2bb1   :  { %v5378_v18 = vpop.eup %5377 }
0x2bb2   :  { %v5380_v49 = vpop.eup %5379  ;;  %v3774_v58 = vmul.f32 %v5378_v18, %v3770_v56 }
0x2bb3   :  { %v3775_v61 = vmul.f32 %v5380_v49, %v3771_v57 }
0x2c15   :  { %v3779_v19 = vpop.permute.xlu0 %3778 }
0x2c16   :  { %v3781_v54 = vpop.permute.xlu1 %3780  ;;  %v3784_v15 = vmul.f32 %v5378_v18, %v3779_v19 }
0x2c17   :  { %v3785_v55 = vmul.f32 %v5380_v49, %v3781_v54 }
0x2c18   :  { %3788 = vrot.lane.b32.xlu0 %v3784_v15, %s5467_s30 }
0x2c19   :  { %3790 = vrot.lane.b32.xlu1 %v3785_v55, %s5467_s30 }
0x2c8a   :  { %v3789_v62 = vpop.permute.xlu0 %3788 }
0x2c8b   :  { %v3791_v63 = vpop.permute.xlu1 %3790  ;;  %v3794_v2 = vadd.f32 %v3789_v62, %v3774_v58 }
0x2c8c   :  { %v3795_v3 = vadd.f32 %v3791_v63, %v3775_v61  ;;  %v2591_v61 = vadd.f32 %v5851_v12, %v5856_v51  ;;  %v6013_v63 = vld [vmem:[#allocation3 + $0x178] sm:$0x1] }
0x2c8d   :  { %5381 = vtanh.f32 %v3794_v2  ;;  %v3959_v7 = vrot.slane %v3794_v2, 7  ;;  %5124 = vpush %v6013_v63 }
0x2c8e   :  { %5383 = vtanh.f32 %v3795_v3  ;;  %v2599_v62 = vmul.f32 %v2591_v61, %v2591_v61 }
0x2c90   :  { %v2602_v2 = vsel %vm2601_vm1, %v2599_v62, 0.0 }
0x2c97   :  { %v5382_v4 = vpop.eup %5381 }
0x2c98   :  { %v5384_v5 = vpop.eup %5383  ;;  %3800 = vrot.lane.b32.xlu0 %v5382_v4, %s5467_s30 }
0x2c99   :  { %3802 = vrot.lane.b32.xlu1 %v5384_v5, %s5467_s30 }
0x2cbe   :  { %s6049_s5 = spop %5124 }
0x2d0a   :  { %v3801_v8 = vpop.permute.xlu0 %3800 }
0x2d0b   :  { %v3803_v9 = vpop.permute.xlu1 %3802  ;;  %v5981_v13 = vmul.f32 %v5378_v18, %v3801_v8  ;;  %v3960_v18 = vrot.slane %v3795_v3, 7 }
0x2d0c   :  { %v5983_v14 = vmul.f32 %v5380_v49, %v3803_v9 }
0x2d0d   :  { %v3810_v16 = vrot.slane %v5981_v13, 5 }
0x2d0e   :  { %v3811_v17 = vrot.slane %v5983_v14, 5  ;;  %v3860_v20 = vrot.slane %v5983_v14, 4 }
0x2d0f   :  { %v5988_v22 = vadd.f32 %v3810_v16, %v3625_v34 }
0x2d10   :  { %v5990_v23 = vadd.f32 %v3811_v17, %v3626_v35  ;;  %v3861_v25 = vsel %vm266_vm5, %v3860_v20, %v3810_v16 }
0x2d11   :  { %3862 = vrot.lane.b32.xlu0 %v3861_v25, %s5468_s3  ;;  %v2600_v25 = vmul.f32 %v5854_v6, %v5854_v6 }
0x2d83   :  { %v3863_v27 = vpop.permute.xlu0 %3862 }
0x2d84   :  { %4961 = vmatmul.mubr.msk.f32.vlgmr.msra.gmra.mrb[26].mxu0 %vm2601_vm1, %v3863_v27  ;;  %v2605_v27 = vsel %vm2601_vm1, %v2600_v25, 0.0 }
0x2d85   :  { %4974 = vmatprep.mubr.msk.f32.mxu0 %vm5461_vm0, %v5462_v1 }
0x2e57   :  { %v3932_v21 = vpop.f32.mrb[26].mxu0 }
0x2e58   :  { %v3937_v32 = vrot.slane %v3932_v21, 2  ;;  %v3938_v33 = vrot.slane %v3932_v21, 3  ;;  %v4962_v38 = vpop.f32.mrb[27].mxu0 }
0x2e5a   :  { %v3941_v39 = vadd.f32 %v3937_v32, %v5860_v10  ;;  %v3942_v34 = vadd.f32 %v3938_v33, %v5858_v37 }
0x2e5c   :  { %5385 = vtanh.f32 %v3941_v39  ;;  %v4556_v43 = vmul.f32 -1.442695, %v3941_v39  ;;  %v4557_v44 = vmul.f32 -1.442695, %v3942_v34 }
0x2e5d   :  { %5387 = vtanh.f32 %v3942_v34 }
0x2e5e   :  { %5389 = vpow2.f32 %v4556_v43  ;;  %v4537_v43 = vld [vmem:[#allocation3 + $0x140] ss:$0 sm:$0xff] }
0x2e5f   :  { %5391 = vpow2.f32 %v4557_v44 }
0x2e66   :  { %v5386_v35 = vpop.eup %5385 }
0x2e67   :  { %v5388_v42 = vpop.eup %5387  ;;  %3967 = vrot.lane.b32.xlu1 %v5386_v35, %s5466_s29 }
0x2e68   :  { %3969 = vrot.lane.b32.xlu0 %v5388_v42, %s5466_s29  ;;  %v5390_v53 = vpop.eup %5389 }
0x2e69   :  { %v5392_v45 = vpop.eup %5391  ;;  %v3949_v46 = vadd.f32 1.0, %v5390_v53 }
0x2e6a   :  { %v3950_v11 = vadd.f32 1.0, %v5392_v45 }
0x2e6b   :  { %5393 = vrcp.f32 %v3949_v46 }
0x2e6c   :  { %5395 = vrcp.f32 %v3950_v11 }
0x2e75   :  { %v5394_v30 = vpop.eup %5393 }
0x2e76   :  { %v5396_v50 = vpop.eup %5395  ;;  %v3963_v19 = vmul.f32 %v5394_v30, %v3959_v7 }
0x2e77   :  { %v3964_v49 = vmul.f32 %v5396_v50, %v3960_v18 }
0x2ed9   :  { %v3968_v47 = vpop.permute.xlu1 %3967 }
0x2eda   :  { %v3970_v0 = vpop.permute.xlu0 %3969  ;;  %v3973_v36 = vmul.f32 %v5394_v30, %v3968_v47 }
0x2edb   :  { %v3974_v52 = vmul.f32 %v5396_v50, %v3970_v0 }
0x2edc   :  { %3977 = vrot.lane.b32.xlu1 %v3973_v36, %s5467_s30 }
0x2edd   :  { %3979 = vrot.lane.b32.xlu0 %v3974_v52, %s5467_s30 }
0x2f4e   :  { %v3978_v54 = vpop.permute.xlu1 %3977 }
0x2f4f   :  { %v3980_v15 = vpop.permute.xlu0 %3979  ;;  %v6003_v55 = vadd.f32 %v3978_v54, %v3963_v19 }
0x2f50   :  { %v6005_v56 = vadd.f32 %v3980_v15, %v3964_v49 }
0x2f51   :  { %5397 = vtanh.f32 %v6003_v55 }
0x2f52   :  { %5399 = vtanh.f32 %v6005_v56 }
0x2f5b   :  { %v5398_v57 = vpop.eup %5397 }
0x2f5c   :  { %v5400_v58 = vpop.eup %5399  ;;  %3989 = vrot.lane.b32.xlu1 %v5398_v57, %s5467_s30 }
0x2f5d   :  { %3991 = vrot.lane.b32.xlu0 %v5400_v58, %s5467_s30 }
0x2f7c   :  { %2603 = vadd.xlane.f32.xlu0 %v2602_v2 }
0x2f92   :  { %2663 = vrot.lane.b32.xlu0 %v6013_v63, %s5469_s4 }
0x2fce   :  { %v3990_v3 = vpop.permute.xlu1 %3989 }
0x2fcf   :  { %v3992_v4 = vpop.permute.xlu0 %3991  ;;  %v6018_v5 = vmul.f32 %v5394_v30, %v3990_v3 }
0x2fd0   :  { %v6020_v8 = vmul.f32 %v5396_v50, %v3992_v4 }
0x2fd1   :  { %v3999_v9 = vrot.slane %v6018_v5, 6 }
0x2fd2   :  { %v4000_v12 = vrot.slane %v6020_v8, 6  ;;  %v4049_v51 = vrot.slane %v6020_v8, 5 }
0x2fd3   :  { %v6026_v16 = vadd.f32 %v3999_v9, %v5988_v22 }
0x2fd4   :  { %v4050_v17 = vsel %vm266_vm5, %v4049_v51, %v3999_v9  ;;  %v6030_v20 = vadd.f32 %v4000_v12, %v5990_v23 }
0x2fd5   :  { %4051 = vrot.lane.b32.xlu1 %v4050_v17, %s5468_s3 }
0x2ff9   :  { %2606 = vadd.xlane.f32.xlu1 %v2605_v27 }
0x3009   :  { %v2604_v21 = vpop.xlane.xlu0 %2603 }
0x300a   :  { %5401 = vrsqrt.f32 %v2604_v21  ;;  %v2622_v32 = vadd.f32 1.0, %v2604_v21  ;;  %vm2610_vm2 = vcmp.eq.f32.partialorder %v2604_v21, inf  ;;  %v2613_v39 = vand.u32 2147483648, %v2604_v21 }
0x300b   :  { %vm2612_vm3 = vcmp.eq.f32.partialorder %v2604_v21, 0.0 }
0x300c   :  { %5403 = vrcp.f32 %v2622_v32 }
0x300d   :  { %v2664_v33 = vpop.permute.xlu0 %2663 }
0x300e   :  { %5126 = vpush %v2664_v33 }
0x3014   :  { %v5402_v22 = vpop.eup %5401 }
0x3015   :  { %v2609_v38 = vmul.f32 %v5402_v22, %v2604_v21 }
0x3016   :  { %v5404_v34 = vpop.eup %5403 }
0x3017   :  { %v2611_v23 = vsel %vm2610_vm2, %v2604_v21, %v2609_v38  ;;  %v5470_v38 = vmov 0  }
0x3018   :  { %v2614_v35 = vsel %vm2612_vm3, %v2613_v39, %v2611_v23  ;;  %5144 = vset.pattern.permute.xlu1 %v5470_v38  ;;  %5143 = vset.pattern.permute.xlu0 %v5470_v38 }
0x3019   :  { %v2625_v42 = vmul.f32 %v5404_v34, %v2614_v35 }
0x301b   :  { %v6036_v44 = vmul.f32 %v2625_v42, %v2591_v61  ;;  %v2672_v61 = vlaneseq }
0x301d   :  { %v2655_v53 = vmul.f32 %v4537_v43, %v6036_v44  ;;  %v6051_v62 = vand.u32 127, %v2672_v61  ;;  %v6053_v3 = vshrl.u32 %v2672_v61, 7 }
0x301f   :  { %v2657_v45 = vsel %vm2601_vm1, %v2655_v53, 0.0  ;;  %v6057_v4 = vsub.s32 %v6051_v62, %v6053_v3  ;;  %v6067_v53 = vsub.s32 1, %v6053_v3 }
0x3020   :  { %2658 = vadd.xlane.f32.xlu1 %v2657_v45 }
0x3021   :  { %v3072_v61 = vrot.slane %v5891_v59, %v6067_v53 }
0x303f   :  { %s5127_s6 = spop %5126 }
0x3040   :  { %v2666_v2 = vstv %s5127_s6 }
0x3047   :  { %v4052_v46 = vpop.permute.xlu1 %4051 }
0x3048   :  { %4968 = vmatmul.mubr.msk.f32.vlgmr.msra.gmra.mrb[32].mxu1 %vm2601_vm1, %v4052_v46 }
0x3049   :  { %4981 = vmatprep.mubr.msk.f32.mxu1 %vm5461_vm0, %v5462_v1  ;;  %vm2684_vm0 = vcmask 58368  }
0x3086   :  { %v2607_v11 = vpop.xlane.xlu1 %2606 }
0x3087   :  { %5405 = vrsqrt.f32 %v2607_v11  ;;  %v2623_v30 = vadd.f32 1.0, %v2607_v11  ;;  %vm2617_vm4 = vcmp.eq.f32.partialorder %v2607_v11, inf  ;;  %v2620_v0 = vand.u32 2147483648, %v2607_v11 }
0x3088   :  { %vm2619_vm6 = vcmp.eq.f32.partialorder %v2607_v11, 0.0 }
0x3089   :  { %5407 = vrcp.f32 %v2623_v30 }
0x3091   :  { %v5406_v47 = vpop.eup %5405 }
0x3092   :  { %v2616_v50 = vmul.f32 %v5406_v47, %v2607_v11 }
0x3093   :  { %v5408_v52 = vpop.eup %5407 }
0x3094   :  { %v2618_v36 = vsel %vm2617_vm4, %v2607_v11, %v2616_v50 }
0x3095   :  { %v2621_v7 = vsel %vm2619_vm6, %v2620_v0, %v2618_v36 }
0x3096   :  { %v2627_v18 = vmul.f32 %v5408_v52, %v2621_v7 }
0x3098   :  { %v6044_v19 = vmul.f32 %v2627_v18, %v5854_v6 }
0x309a   :  { %v2656_v49 = vmul.f32 %v4537_v43, %v6044_v19 }
0x309c   :  { %v2660_v1 = vsel %vm2601_vm1, %v2656_v49, 0.0 }
0x309d   :  { %2661 = vadd.xlane.f32.xlu1 %v2660_v1 }
0x30ad   :  { %v2659_v6 = vpop.xlane.xlu1 %2658 }
0x30ae   :  { %v2668_v9 = vadd.f32 %v2666_v2, %v2659_v6 }
0x311b   :  { %v4121_v54 = vpop.f32.mrb[32].mxu1 }
0x311c   :  { %v4127_v15 = vrot.slane %v4121_v54, 2  ;;  %v4969_v57 = vpop.f32.mrb[33].mxu1  ;;  %v4126_v27 = vrot.slane %v4121_v54, 1 }
0x311e   :  { %v4131_v58 = vadd.f32 %v4127_v15, %v5858_v37  ;;  %v2677_v37 = vrot.slane %v2668_v9, %v6057_v4  ;;  %v4130_v33 = vadd.f32 %v4126_v27, %v5860_v10  ;;  %v6070_v10 = vsub.s32 0, %v6053_v3 }
0x3120   :  { %5409 = vtanh.f32 %v4131_v58  ;;  %v4559_v39 = vmul.f32 -1.442695, %v4130_v33  ;;  %v4560_v23 = vmul.f32 -1.442695, %v4131_v58  ;;  %v2884_v57 = vrot.slane %v5872_v28, %v6070_v10 }
0x3121   :  { %5411 = vtanh.f32 %v4130_v33  ;;  %v2896_v58 = vrot.slane %v5870_v26, %v6070_v10 }
0x3122   :  { %5413 = vpow2.f32 %v4559_v39 }
0x3123   :  { %5415 = vpow2.f32 %v4560_v23 }
0x312a   :  { %v2662_v12 = vpop.xlane.xlu1 %2661  ;;  %v5410_v51 = vpop.eup %5409 }
0x312b   :  { %v2669_v17 = vadd.f32 %v2666_v2, %v2662_v12  ;;  %4158 = vrot.lane.b32.xlu0 %v5410_v51, %s5466_s29  ;;  %v5412_v22 = vpop.eup %5411  ;;  %v4148_v2 = vrot.slane %v6003_v55, 7  ;;  %v4149_v12 = vrot.slane %v6005_v56, 7  ;;  %v3084_v55 = vrot.slane %v5893_v60, %v6067_v53 }
0x312c   :  { %v5414_v34 = vpop.eup %5413 }
0x312d   :  { %v2681_v25 = vrot.slane %v2669_v17, %v6057_v4  ;;  %v4138_v35 = vadd.f32 1.0, %v5414_v34  ;;  %v5416_v42 = vpop.eup %5415  ;;  %v6126_v34 = vsub.s32 5, %v6053_v3 }
0x312e   :  { %v4139_v43 = vadd.f32 1.0, %v5416_v42 }
0x312f   :  { %v2682_v21 = vsel %vm266_vm5, %v2681_v25, %v2677_v37  ;;  %5417 = vrcp.f32 %v4138_v35  ;;  %v6103_v25 = vsub.s32 2, %v6053_v3  ;;  %v3827_v42 = vrot.slane %v5981_v13, %v6126_v34 }
0x3130   :  { %v2685_v32 = vsel %vm2684_vm0, %v2682_v21, -inf  ;;  %5419 = vrcp.f32 %v4139_v43  ;;  %v6110_v21 = vsub.s32 3, %v6053_v3  ;;  %v3839_v43 = vrot.slane %v5983_v14, %v6126_v34 }
0x3131   :  { %2686 = vmax.xlane.f32.xlu1 %v2685_v32  ;;  %v3260_v56 = vrot.slane %v5913_v48, %v6103_v25  ;;  %v3272_v27 = vrot.slane %v5915_v29, %v6103_v25  ;;  %v6118_v29 = vsub.s32 4, %v6053_v3 }
0x3132   :  { %v3449_v60 = vrot.slane %v5937_v40, %v6110_v21  ;;  %v3461_v39 = vrot.slane %v5939_v41, %v6110_v21  ;;  %v6133_v41 = vsub.s32 6, %v6053_v3 }
0x3133   :  { %v3638_v40 = vrot.slane %v5959_v31, %v6118_v29  ;;  %v3650_v35 = vrot.slane %v5961_v24, %v6118_v29 }
0x3134   :  { %v4016_v31 = vrot.slane %v6018_v5, %v6133_v41  ;;  %v4028_v24 = vrot.slane %v6020_v8, %v6133_v41  ;;  %v6144_v5 = vsub.s32 7, %v6053_v3 }
0x3139   :  { %v6074_v50 = vpop.eup %5417 }
0x313a   :  { %v6078_v49 = vpop.eup %5419  ;;  %v4152_v6 = vmul.f32 %v6074_v50, %v4148_v2 }
0x313b   :  { %v4153_v51 = vmul.f32 %v6078_v49, %v4149_v12 }
0x3142   :  { %4156 = vrot.lane.b32.xlu1 %v5412_v22, %s5466_s29 }
0x319d   :  { %v4159_v18 = vpop.permute.xlu0 %4158 }
0x319e   :  { %v4163_v1 = vmul.f32 %v6078_v49, %v4159_v18 }
0x31be   :  { %v2687_v45 = vpop.xlane.xlu1 %2686 }
0x31bf   :  { %v2692_v46 = vrot.slane %v2687_v45, %v6070_v10  ;;  %v2696_v11 = vrot.slane %v2687_v45, %v6067_v53 }
0x31c1   :  { %v2699_v30 = vsub.f32 %v2668_v9, %v2692_v46  ;;  %v2700_v47 = vsub.f32 %v2669_v17, %v2696_v11 }
0x31c2   :  { %v4157_v0 = vpop.permute.xlu1 %4156 }
0x31c3   :  { %v2701_v36 = vmul.f32 1.442695, %v2699_v30  ;;  %v2703_v52 = vmul.f32 1.442695, %v2700_v47  ;;  %v4162_v7 = vmul.f32 %v6074_v50, %v4157_v0 }
0x31c5   :  { %5421 = vpow2.f32 %v2701_v36  ;;  %4166 = vrot.lane.b32.xlu0 %v4162_v7, %s5467_s30 }
0x31c6   :  { %5423 = vpow2.f32 %v2703_v52 }
0x31c9   :  { %4168 = vrot.lane.b32.xlu0 %v4163_v1, %s5467_s30 }
0x31cf   :  { %v6082_v54 = vpop.eup %5421 }
0x31d0   :  { %v6084_v15 = vpop.eup %5423  ;;  %2708 = vperm.xlu0 %5143, %v6082_v54  }
0x31d1   :  { %2711 = vperm.xlu1 %5144, %v6084_v15  }
0x31d4   :  { %2887 = vbcast.lane.b32.xlu0 %v2884_v57, 288 }
0x31d8   :  { %2891 = vbcast.lane.b32.xlu0 %v2884_v57, 296 }
0x31dc   :  { %2899 = vbcast.lane.b32.xlu0 %v2896_v58, 288 }
0x31e0   :  { %2903 = vbcast.lane.b32.xlu0 %v2896_v58, 296 }
0x31e4   :  { %3075 = vbcast.lane.b32.xlu0 %v3072_v61, 288 }
0x31e8   :  { %3079 = vbcast.lane.b32.xlu0 %v3072_v61, 296 }
0x3237   :  { %v4167_v9 = vpop.permute.xlu0 %4166 }
0x3238   :  { %v4172_v28 = vadd.f32 %v4167_v9, %v4152_v6 }
0x323a   :  { %5425 = vtanh.f32 %v4172_v28 }
0x323b   :  { %v4169_v17 = vpop.permute.xlu0 %4168 }
0x323c   :  { %v4173_v26 = vadd.f32 %v4169_v17, %v4153_v51 }
0x323e   :  { %5427 = vtanh.f32 %v4173_v26 }
0x3244   :  { %v5426_v37 = vpop.eup %5425 }
0x3245   :  { %4178 = vrot.lane.b32.xlu1 %v5426_v37, %s5467_s30 }
0x3248   :  { %v5428_v59 = vpop.eup %5427 }
0x3249   :  { %4180 = vrot.lane.b32.xlu0 %v5428_v59, %s5467_s30 }
0x324d   :  { %3087 = vbcast.lane.b32.xlu0 %v3084_v55, 288 }
0x324f   :  { %v2709_v33 = vpop.permute.xlu0 %2708 }
0x3250   :  { %v2712_v32 = vpop.permute.xlu1 %2711  ;;  %v2716_v38 = vrot.slane %v2709_v33, %v6057_v4 }
0x3251   :  { %3091 = vbcast.lane.b32.xlu0 %v3084_v55, 296  ;;  %v2720_v22 = vrot.slane %v2712_v32, %v6057_v4 }
0x3253   :  { %v2721_v48 = vsel %vm266_vm5, %v2720_v22, %v2716_v38  ;;  %v2888_v13 = vpop.permute.xlu0 %2887 }
0x3254   :  { %v2723_v23 = vsel %vm2684_vm0, %v2721_v48, 0.0 }
0x3255   :  { %3263 = vbcast.lane.b32.xlu0 %v3260_v56, 288 }
0x3257   :  { %v2892_v45 = vpop.permute.xlu0 %2891 }
0x3259   :  { %3275 = vbcast.lane.b32.xlu0 %v3272_v27, 288 }
0x325b   :  { %v6141_v14 = vpop.permute.xlu0 %2899 }
0x325d   :  { %3279 = vbcast.lane.b32.xlu0 %v3272_v27, 296 }
0x325f   :  { %v2904_v46 = vpop.permute.xlu0 %2903 }
0x3261   :  { %3452 = vbcast.lane.b32.xlu0 %v3449_v60, 288 }
0x3263   :  { %v3076_v11 = vpop.permute.xlu0 %3075 }
0x3265   :  { %3456 = vbcast.lane.b32.xlu0 %v3449_v60, 296 }
0x3267   :  { %v3080_v30 = vpop.permute.xlu0 %3079 }
0x3269   :  { %2724 = vadd.xlane.f32.xlu1 %v2723_v23  ;;  %3468 = vbcast.lane.b32.xlu0 %v3461_v39, 296 }
0x326d   :  { %3645 = vbcast.lane.b32.xlu0 %v3638_v40, 296 }
0x3271   :  { %3657 = vbcast.lane.b32.xlu0 %v3650_v35, 296 }
0x3275   :  { %3834 = vbcast.lane.b32.xlu0 %v3827_v42, 296 }
0x3279   :  { %3846 = vbcast.lane.b32.xlu0 %v3839_v43, 296 }
0x327a   :  { %3267 = vbcast.lane.b32.xlu1 %v3260_v56, 296 }
0x327d   :  { %4023 = vbcast.lane.b32.xlu0 %v4016_v31, 296 }
0x327e   :  { %3464 = vbcast.lane.b32.xlu1 %v3461_v39, 288 }
0x3281   :  { %4035 = vbcast.lane.b32.xlu0 %v4028_v24, 296 }
0x3282   :  { %3641 = vbcast.lane.b32.xlu1 %v3638_v40, 288 }
0x3286   :  { %3653 = vbcast.lane.b32.xlu1 %v3650_v35, 288 }
0x328a   :  { %3830 = vbcast.lane.b32.xlu1 %v3827_v42, 288 }
0x328e   :  { %3842 = vbcast.lane.b32.xlu1 %v3839_v43, 288 }
0x3292   :  { %4019 = vbcast.lane.b32.xlu1 %v4016_v31, 288 }
0x3296   :  { %4031 = vbcast.lane.b32.xlu1 %v4028_v24, 288 }
0x32b7   :  { %v4179_v47 = vpop.permute.xlu1 %4178 }
0x32b8   :  { %v4184_v8 = vmul.f32 %v6074_v50, %v4179_v47 }
0x32ba   :  { %v4188_v0 = vrot.slane %v4184_v8, 7  ;;  %v4205_v36 = vrot.slane %v4184_v8, %v6144_v5 }
0x32bb   :  { %v4181_v52 = vpop.permute.xlu0 %4180 }
0x32bc   :  { %v4192_v7 = vadd.f32 %v4188_v0, %v6026_v16  ;;  %v4185_v18 = vmul.f32 %v6078_v49, %v4181_v52  ;;  %4208 = vbcast.lane.b32.xlu1 %v4205_v36, 288  ;;  %4212 = vbcast.lane.b32.xlu0 %v4205_v36, 296 }
0x32be   :  { %v4189_v1 = vrot.slane %v4185_v18, 7  ;;  %v4217_v57 = vrot.slane %v4185_v18, %v6144_v5  ;;  %v4238_v2 = vmul.f32 0.125, %v4192_v7 }
0x32bf   :  { %v3088_v9 = vpop.permute.xlu0 %3087 }
0x32c0   :  { %v4193_v58 = vadd.f32 %v4189_v1, %v6030_v20  ;;  %4224 = vbcast.lane.b32.xlu0 %v4217_v57, 296  ;;  %4220 = vbcast.lane.b32.xlu1 %v4217_v57, 288 }
0x32c2   :  { %v4239_v61 = vmul.f32 0.125, %v4193_v58 }
0x32c3   :  { %v3092_v12 = vpop.permute.xlu0 %3091 }
0x32c4   :  { %v4355_v50 = vrot.slane %v4239_v61, 7 }
0x32c6   :  { %v6153_v6 = vsel %vm266_vm5, %v4355_v50, %v4238_v2 }
0x32c7   :  { %v3264_v16 = vpop.permute.xlu0 %3263 }
0x32cb   :  { %v3276_v28 = vpop.permute.xlu0 %3275 }
0x32cf   :  { %v3280_v49 = vpop.permute.xlu0 %3279 }
0x32d3   :  { %v3453_v51 = vpop.permute.xlu0 %3452 }
0x32d7   :  { %v3457_v37 = vpop.permute.xlu0 %3456 }
0x32db   :  { %v3469_v55 = vpop.permute.xlu0 %3468 }
0x32df   :  { %v3646_v32 = vpop.permute.xlu0 %3645 }
0x32e3   :  { %v3658_v38 = vpop.permute.xlu0 %3657 }
0x32e7   :  { %v3835_v47 = vpop.permute.xlu0 %3834 }
0x32f6   :  { %v2725_v17 = vpop.xlane.xlu1 %2724 }
0x32f7   :  { %v2730_v26 = vrot.slane %v2725_v17, %v6070_v10  ;;  %v2734_v20 = vrot.slane %v2725_v17, %v6067_v53 }
0x32f9   :  { %5429 = vrcp.f32 %v2730_v26 }
0x32fa   :  { %v3268_v59 = vpop.permute.xlu1 %3267  ;;  %5431 = vrcp.f32 %v2734_v20 }
0x32fe   :  { %v3465_v56 = vpop.permute.xlu1 %3464 }
0x3302   :  { %v3642_v33 = vpop.permute.xlu1 %3641 }
0x3303   :  { %v5430_v27 = vpop.eup %5429 }
0x3304   :  { %v6158_v60 = vmul.f32 %v5430_v27, %v6082_v54  ;;  %v5432_v22 = vpop.eup %5431 }
0x3305   :  { %v6161_v48 = vmul.f32 %v5432_v22, %v6084_v15 }
0x3306   :  { %v2874_v39 = vrot.slane %v6158_v60, %v6070_v10  ;;  %v3064_v23 = vrot.slane %v6158_v60, %v6067_v53  ;;  %v3654_v40 = vpop.permute.xlu1 %3653  ;;  %v3252_v15 = vrot.slane %v6158_v60, %v6103_v25  ;;  %v3630_v17 = vrot.slane %v6158_v60, %v6118_v29 }
0x3307   :  { %v2878_v43 = vrot.slane %v6161_v48, %v6070_v10  ;;  %v3068_v54 = vrot.slane %v6161_v48, %v6067_v53  ;;  %v3256_v18 = vrot.slane %v6161_v48, %v6103_v25 }
0x3308   :  { %v2910_v35 = vmul.f32 %v2892_v45, %v2874_v39  ;;  %v3098_v42 = vmul.f32 %v3080_v30, %v3064_v23  ;;  %v2909_v31 = vmul.f32 %v2888_v13, %v2874_v39  ;;  %v3097_v24 = vmul.f32 %v3076_v11, %v3064_v23  ;;  %v3847_v11 = vpop.permute.xlu0 %3846 }
0x3309   :  { %v2912_v36 = vmul.f32 %v2904_v46, %v2878_v43  ;;  %v3100_v52 = vmul.f32 %v3092_v12, %v3068_v54  ;;  %v3441_v45 = vrot.slane %v6158_v60, %v6110_v21  ;;  %v3286_v30 = vmul.f32 %v3268_v59, %v3252_v15 }
0x330a   :  { %v3831_v8 = vpop.permute.xlu1 %3830  ;;  %v3102_v0 = vadd.f32 %v3098_v42, %v2910_v35  ;;  %v3101_v7 = vadd.f32 %v3097_v24, %v2909_v31  ;;  %v3285_v1 = vmul.f32 %v3264_v16, %v3252_v15  ;;  %v2911_v53 = vmul.f32 %v6141_v14, %v2878_v43 }
0x330b   :  { %v3099_v13 = vmul.f32 %v3088_v9, %v3068_v54  ;;  %v3104_v58 = vadd.f32 %v3100_v52, %v2912_v36  ;;  %v3475_v50 = vmul.f32 %v3457_v37, %v3441_v45  ;;  %v3445_v46 = vrot.slane %v6161_v48, %v6110_v21 }
0x330c   :  { %v3290_v57 = vadd.f32 %v3286_v30, %v3102_v0  ;;  %v3289_v2 = vadd.f32 %v3285_v1, %v3101_v7  ;;  %v3288_v12 = vmul.f32 %v3280_v49, %v3256_v18  ;;  %v3474_v59 = vmul.f32 %v3453_v51, %v3441_v45  ;;  %v4024_v9 = vpop.permute.xlu0 %4023 }
0x330d   :  { %v3103_v26 = vadd.f32 %v3099_v13, %v2911_v53  ;;  %v3287_v20 = vmul.f32 %v3276_v28, %v3256_v18  ;;  %v3477_v27 = vmul.f32 %v3469_v55, %v3445_v46  ;;  %v3664_v22 = vmul.f32 %v3646_v32, %v3630_v17 }
0x330e   :  { %v3843_v61 = vpop.permute.xlu1 %3842  ;;  %v3479_v25 = vadd.f32 %v3475_v50, %v3290_v57  ;;  %v3292_v16 = vadd.f32 %v3288_v12, %v3104_v58  ;;  %v3478_v14 = vadd.f32 %v3474_v59, %v3289_v2  ;;  %v3634_v39 = vrot.slane %v6161_v48, %v6118_v29 }
0x330f   :  { %v3819_v37 = vrot.slane %v6158_v60, %v6126_v34  ;;  %v3291_v49 = vadd.f32 %v3287_v20, %v3103_v26  ;;  %v3663_v23 = vmul.f32 %v3642_v33, %v3630_v17  ;;  %v3476_v43 = vmul.f32 %v3465_v56, %v3445_v46  ;;  %v4242_v20 = vld [vmem:[#allocation3 + $0x158] sm:$0xff] }
0x3310   :  { %v3481_v35 = vadd.f32 %v3477_v27, %v3292_v16  ;;  %v3668_v42 = vadd.f32 %v3664_v22, %v3479_v25  ;;  %v3666_v54 = vmul.f32 %v3658_v38, %v3634_v39  ;;  %v3823_v28 = vrot.slane %v6161_v48, %v6126_v34  ;;  %v4036_v24 = vpop.permute.xlu0 %4035  ;;  %v4241_v22 = vld [vmem:[#allocation3 + $0x150] sm:$0xff] }
0x3311   :  { %v3667_v51 = vadd.f32 %v3663_v23, %v3478_v14  ;;  %v3853_v31 = vmul.f32 %v3835_v47, %v3819_v37  ;;  %v4008_v55 = vrot.slane %v6158_v60, %v6133_v41  ;;  %v3480_v32 = vadd.f32 %v3476_v43, %v3291_v49  ;;  %v4243_v14 = vld [vmem:[#allocation3 + $0x160] sm:$0xff] }
0x3312   :  { %v4020_v21 = vpop.permute.xlu1 %4019  ;;  %v3852_v29 = vmul.f32 %v3831_v8, %v3819_v37  ;;  %v3670_v15 = vadd.f32 %v3666_v54, %v3481_v35  ;;  %v3665_v52 = vmul.f32 %v3654_v40, %v3634_v39  ;;  %v3855_v45 = vmul.f32 %v3847_v11, %v3823_v28 }
0x3313   :  { %v3857_v36 = vadd.f32 %v3853_v31, %v3668_v42  ;;  %v4041_v7 = vmul.f32 %v4020_v21, %v4008_v55  ;;  %v4042_v56 = vmul.f32 %v4024_v9, %v4008_v55  ;;  %v4012_v38 = vrot.slane %v6161_v48, %v6133_v41  ;;  %v4240_v9 = vld [vmem:[#allocation3 + $0x148] sm:$0xff] }
0x3314   :  { %v3856_v33 = vadd.f32 %v3852_v29, %v3667_v51  ;;  %v3669_v47 = vadd.f32 %v3665_v52, %v3480_v32  ;;  %v3854_v30 = vmul.f32 %v3843_v61, %v3823_v28  ;;  %v4197_v34 = vrot.slane %v6158_v60, %v6144_v5 }
0x3315   :  { %v4046_v1 = vadd.f32 %v4042_v56, %v3857_v36  ;;  %v3859_v53 = vadd.f32 %v3855_v45, %v3670_v15  ;;  %v4044_v2 = vmul.f32 %v4036_v24, %v4012_v38  ;;  %v4201_v41 = vrot.slane %v6161_v48, %v6144_v5  ;;  %v4536_v48 = vld [vmem:[#allocation3 + $0x138] ss:$0 sm:$0xff]  ;;  %v4563_v15 = vld [vmem:[#allocation3 + $0x168] ss:$0 sm:$0xff] }
0x3316   :  { %v4032_v0 = vpop.permute.xlu1 %4031  ;;  %v4045_v13 = vadd.f32 %v4041_v7, %v3856_v33  ;;  %v3858_v50 = vadd.f32 %v3854_v30, %v3669_v47  ;;  %v5115_v27 = vpack.c.bf16 %v4243_v14, %v4242_v20  ;;  %v5118_v5 = vpack.c.bf16 %v4241_v22, %v4240_v9  ;;  %v4564_v7 = vld [vmem:[#allocation3 + $0x170] ss:$0 sm:$0xff] }
0x3317   :  { %v4043_v57 = vmul.f32 %v4032_v0, %v4012_v38  ;;  %v4048_v61 = vadd.f32 %v4044_v2, %v3859_v53  ;;  %v2636_v39 = vmul.f32 %v4536_v48, %v6036_v44  ;;  %v4264_v21 = vadd.s32 4294967288, %v6051_v62 }
0x3318   :  { %5116 = vmatpush3.bf16.msra.mxu0 %v5115_v27  ;;  %5119 = vmatpush3.bf16.msra.mxu1 %v5118_v5  ;;  %v2637_v38 = vmul.f32 %v4536_v48, %v6044_v19  ;;  %v4450_v30 = vrot.slane %v6013_v63, %v6070_v10  ;;  %v2646_v53 = vstv %s6049_s5 }
0x3319   :  { %v4047_v26 = vadd.f32 %v4043_v57, %v3858_v50  ;;  %v2638_v37 = vsel %vm2601_vm1, %v2636_v39, 0.0  ;;  %v4267_v49 = vsub.s32 %v4264_v21, %v6053_v3 }
0x331a   :  { %v2641_v47 = vsel %vm2601_vm1, %v2637_v38, 0.0 }
0x332e   :  { %v4209_v18 = vpop.permute.xlu1 %4208  ;;  %v4213_v8 = vpop.permute.xlu0 %4212 }
0x332f   :  { %v4230_v58 = vmul.f32 %v4209_v18, %v4197_v34  ;;  %v4231_v40 = vmul.f32 %v4213_v8, %v4197_v34  ;;  %v4461_v8 = vadd.s32 4294967295, %v6051_v62 }
0x3331   :  { %v4234_v11 = vadd.f32 %v4230_v58, %v4045_v13  ;;  %v4235_v46 = vadd.f32 %v4231_v40, %v4046_v1  ;;  %v4464_v58 = vsub.s32 %v4461_v8, %v6053_v3 }
0x3332   :  { %v4221_v12 = vpop.permute.xlu1 %4220  ;;  %v4225_v17 = vpop.permute.xlu0 %4224 }
0x3333   :  { %v4232_v60 = vmul.f32 %v4221_v12, %v4201_v41  ;;  %v4233_v59 = vmul.f32 %v4225_v17, %v4201_v41  ;;  %4249 = vperm.xlu1 %5144, %v4234_v11   ;;  %4252 = vperm.xlu0 %5143, %v4235_v46  }
0x3335   :  { %v4236_v25 = vadd.f32 %v4232_v60, %v4047_v26  ;;  %v4237_v16 = vadd.f32 %v4233_v59, %v4048_v61 }
0x3337   :  { %4255 = vperm.xlu1 %5144, %v4236_v25   ;;  %4258 = vperm.xlu0 %5143, %v4237_v16  }
0x333b   :  { %4357 = vrot.lane.b32.xlu1 %v6153_v6, %s5468_s3 }
0x335f   :  { %2639 = vadd.xlane.f32.xlu1 %v2638_v37 }
0x33b2   :  { %v4250_v23 = vpop.permute.xlu1 %4249  ;;  %v4253_v35 = vpop.permute.xlu0 %4252 }
0x33b3   :  { %v4263_v42 = vrot.slane %v4250_v23, %v6057_v4  ;;  %v4268_v43 = vrot.slane %v4253_v35, %v4267_v49 }
0x33b5   :  { %v4270_v28 = vsel %vm4269_vm7, %v4268_v43, %v4263_v42 }
0x33b6   :  { %v4256_v6 = vpop.permute.xlu1 %4255  ;;  %v4259_v51 = vpop.permute.xlu0 %4258 }
0x33b7   :  { %v4274_v54 = vrot.slane %v4256_v6, %v6057_v4  ;;  %v4278_v31 = vrot.slane %v4259_v51, %v4267_v49 }
0x33b9   :  { %v4279_v44 = vsel %vm4269_vm7, %v4278_v31, %v4274_v54 }
0x33ba   :  { %v4358_v55 = vpop.permute.xlu1 %4357  ;;  %v4280_v32 = vsel %vm266_vm5, %v4279_v44, %v4270_v28 }
0x33bb   :  { %4975 = vmatmul.mubr.msk.f32.vlgmr.msra.gmra.mrb[28].mxu0 %vm2601_vm1, %v4280_v32  ;;  %4982 = vmatmul.mubr.msk.f32.vlgmr.msra.gmra.mrb[34].mxu1 %vm2601_vm1, %v4358_v55 }
0x33ec   :  { %v2640_v13 = vpop.xlane.xlu1 %2639 }
0x33ed   :  { %v2648_v19 = vadd.f32 %v2646_v53, %v2640_v13 }
0x33ef   :  { %v4465_v2 = vrot.slane %v2648_v19, %v4464_v58 }
0x348e   :  { %v4349_v29 = vpop.f32.mrb[28].mxu0  ;;  %v4427_v24 = vpop.f32.mrb[34].mxu1 }
0x348f   :  { %v4428_v0 = vadd.f32 %v4427_v24, %v4349_v29  ;;  %v4976_v36 = vpop.f32.mrb[29].mxu0  ;;  %v4983_v52 = vpop.f32.mrb[35].mxu1 }
0x3491   :  { %v4436_v33 = vadd.f32 %v4563_v15, %v4428_v0 }
0x3493   :  { %v4437_v4 = vmax.f32 %v4436_v33, 0.0 }
0x3495   :  { %v4443_v45 = vmul.f32 %v4564_v7, %v4437_v4 }
0x3497   :  { %v4444_v56 = vsel %vm2684_vm0, %v4443_v45, 0.0 }
0x3498   :  { %4445 = vadd.xlane.f32.xlu0 %v4444_v56 }
0x349c   :  { %2642 = vadd.xlane.f32.xlu0 %v2641_v47 }
0x3525   :  { %v4446_v34 = vpop.xlane.xlu0 %4445 }
0x3526   :  { %v4451_v18 = vadd.f32 %v4450_v30, %v4446_v34 }
0x3528   :  { %4454 = vrot.lane.b32.xlu0 %v4451_v18, %s5471_s7 }
0x3529   :  { %v2643_v1 = vpop.xlane.xlu0 %2642 }
0x352a   :  { %v2649_v57 = vadd.f32 %v2646_v53, %v2643_v1 }
0x352c   :  { %v4469_v40 = vrot.slane %v2649_v57, %v4464_v58 }
0x352e   :  { %v4470_v63 = vsel %vm266_vm5, %v4469_v40, %v4465_v2 }
0x359a   :  { %v4455_v50 = vpop.permute.xlu0 %4454 }
0x359b   :  { %4458 = vst.msk [vmem:[%s6224_s2] sm:$0x3] %vm4457_vm8, %v4455_v50 }
0x359c   :  { %4473 = vst.msk [vmem:[%s6224_s2] sm:$0x3] %vm4472_vm9, %v4470_v63 }
0x359d   :  { %4478 = vsyncpa [#allocation4], 1 }

</bundles_post_ra>
